<compile_context>
chip_gen: v7x
topology: tpu7x:2x2x1
jax: 0.10.0
libtpu: 0.0.40
codegen_flags: <defaults>
</compile_context>

<pallas_src>
import math

import jax
import jax.numpy as jnp
from jax.experimental import pallas as pl
from jax.experimental.pallas import tpu as pltpu

# --- small hyperparameters consistent with TransformerModel.__init__ ---
NTOKEN = 50
NTOKEN_PAD = 128          # decoder output padded to a lane-dense 128 columns
D_MODEL = 32
NHEAD = 4
DH = D_MODEL // NHEAD
D_HID = 64
NLAYERS = 2
SEQ = 8
BATCH = 2
BS = BATCH * SEQ
LN_EPS = 1e-5             # nn.LayerNorm default
NEG = -1e30               # finite stand-in for -inf (same softmax result)

PER_LAYER = 16            # number of per-layer parameter refs passed to the kernel


def generate_square_subsequent_mask(sz):
    # Literal translation of the module's helper:
    #   mask = torch.triu(torch.ones(sz, sz)) == 1      -> True on/above the diagonal
    #   torch.full(..., -inf).masked_fill(mask, 0.0)    -> 0.0 where True, -inf below
    # Note: unlike the official nn.Transformer.generate_square_subsequent_mask,
    # this module's helper has no .transpose(0, 1), so the 0.0 entries sit on and
    # ABOVE the diagonal (j >= i).  We reproduce the module exactly.
    keep = jnp.triu(jnp.ones((sz, sz), jnp.float32)) == 1
    return jnp.where(keep, 0.0, float('-inf')).astype(jnp.float32)


def positional_encoding(seq_len, d_model):
    pos = jnp.arange(seq_len, dtype=jnp.float32)[:, None]
    div = jnp.exp(jnp.arange(0, d_model, 2, dtype=jnp.float32) *
                  (-math.log(10000.0) / d_model))
    pe = jnp.zeros((seq_len, d_model), jnp.float32)
    pe = pe.at[:, 0::2].set(jnp.sin(pos * div))
    pe = pe.at[:, 1::2].set(jnp.cos(pos * div))
    return pe


def _layer_norm(x, w, b):
    mu = jnp.mean(x, axis=-1, keepdims=True)
    var = jnp.mean(jnp.square(x - mu), axis=-1, keepdims=True)
    return (x - mu) * jax.lax.rsqrt(var + LN_EPS) * w + b


def fused_forward_kernel(*refs):
    """Whole forward pass in one kernel.

    refs = (tok, emb, pe, mask, dec_w_t, dec_b,
            [per-layer: wq, wk, wv, bq, bk, bv, wo, bo, ln1w, ln1b,
                        w1_t, b1, w2_t, b2, ln2w, ln2b] * NLAYERS,
            out)
    Shapes:
      tok     [BS, 1]   int32       emb      [NTOKEN, D]   bf16
      pe      [BS, D]   f32         mask     [BS, BS]      f32 (block-diag causal)
      dec_w_t [D, 128]  bf16        dec_b    [1, 128]      f32
      wq/wk/wv [H, D, Dh] bf16      bq/bk/bv [H, 1, Dh]    f32
      wo      [H, Dh, D]  bf16      out      [BS, 128]     f32
    """
    tok_ref, emb_ref, pe_ref, mask_ref, dec_w_ref, dec_b_ref = refs[:6]
    o_ref = refs[-1]
    layer_refs = refs[6:-1]

    scale = 1.0 / math.sqrt(DH)

    # --- embedding as a one-hot MXU matmul + sqrt(d_model) scale + PE add ---
    tok = tok_ref[...]                                            # [BS, 1] int32
    iota = jax.lax.broadcasted_iota(jnp.int32, (BS, NTOKEN), 1)
    onehot = jnp.where(iota == tok, 1.0, 0.0).astype(emb_ref.dtype)
    x = jnp.dot(onehot, emb_ref[...],
                preferred_element_type=jnp.float32)               # [BS, D] f32
    x = x * math.sqrt(D_MODEL) + pe_ref[...]
    # TODO(synk): dropout (p=0.5) layers are identity here (eval/inference mode).

    mask = mask_ref[...]                                          # [BS, BS]

    for l in range(NLAYERS):
        (wq_ref, wk_ref, wv_ref, bq_ref, bk_ref, bv_ref,
         wo_ref, bo_ref, ln1w_ref, ln1b_ref,
         w1_ref, b1_ref, w2_ref, b2_ref,
         ln2w_ref, ln2b_ref) = layer_refs[l * PER_LAYER:(l + 1) * PER_LAYER]

        xb = x.astype(jnp.bfloat16)

        # --- multi-head self-attention ---
        # Per-head weights are pre-split on the leading axis (no lane-axis
        # slicing); head outputs are accumulated straight into the output
        # projection (no lane concat / relayout).  The batch dimension lives
        # inside the [BS, BS] score matrix via the block-diagonal mask, so
        # every matmul is a plain 2-D dot.
        attn = jnp.zeros((BS, D_MODEL), jnp.float32)
        for h in range(NHEAD):
            qh = jnp.dot(xb, wq_ref[h], preferred_element_type=jnp.float32) + bq_ref[h]
            kh = jnp.dot(xb, wk_ref[h], preferred_element_type=jnp.float32) + bk_ref[h]
            vh = jnp.dot(xb, wv_ref[h], preferred_element_type=jnp.float32) + bv_ref[h]

            s = jnp.dot(qh, kh.T, preferred_element_type=jnp.float32) * scale + mask
            m = jnp.max(s, axis=-1, keepdims=True)
            p = jnp.exp(s - m)
            p = p * pl.reciprocal(jnp.sum(p, axis=-1, keepdims=True), approx=True)

            oh = jnp.dot(p, vh, preferred_element_type=jnp.float32)   # [BS, Dh]
            attn = attn + jnp.dot(oh.astype(jnp.bfloat16), wo_ref[h],
                                  preferred_element_type=jnp.float32)
        attn = attn + bo_ref[...]

        # --- residual + LayerNorm (post-norm, PyTorch default) ---
        h1 = _layer_norm(x + attn, ln1w_ref[...], ln1b_ref[...])

        # --- feed-forward (ReLU, PyTorch default activation) ---
        f = jnp.dot(h1.astype(jnp.bfloat16), w1_ref[...],
                    preferred_element_type=jnp.float32) + b1_ref[...]
        f = jnp.maximum(f, 0.0)
        f = jnp.dot(f.astype(jnp.bfloat16), w2_ref[...],
                    preferred_element_type=jnp.float32) + b2_ref[...]

        x = _layer_norm(h1 + f, ln2w_ref[...], ln2b_ref[...])

    # --- decoder nn.Linear(d_model, ntoken), padded to 128 lanes for a
    # full-width unmasked store; the wrapper slices off the pad. ---
    o_ref[...] = jnp.dot(x.astype(jnp.bfloat16), dec_w_ref[...],
                         preferred_element_type=jnp.float32) + dec_b_ref[...]


def init_params(key):
    """Parameters, pre-laid-out for the kernel (all reorg done once, host-side)."""
    initrange = 0.1
    keys = jax.random.split(key, 2 + NLAYERS)

    def u(k, shape, scale):
        return jax.random.uniform(k, shape, jnp.float32, -scale, scale)

    # init_weights(): embedding & decoder weight uniform(-0.1, 0.1), decoder bias zero
    emb = u(keys[0], (NTOKEN, D_MODEL), initrange).astype(jnp.bfloat16)

    dec_w = u(keys[1], (NTOKEN, D_MODEL), initrange)
    dec_w_t = jnp.zeros((D_MODEL, NTOKEN_PAD), jnp.float32)
    dec_w_t = dec_w_t.at[:, :NTOKEN].set(dec_w.T).astype(jnp.bfloat16)
    dec_b = jnp.zeros((1, NTOKEN_PAD), jnp.float32)

    # PE slab in kernel row order (row = b*S + s)
    pe = jnp.tile(positional_encoding(SEQ, D_MODEL), (BATCH, 1))

    def split_in_proj(w_t):   # [D, D] (x @ w_t layout) -> per-head [H, D, Dh]
        return jnp.transpose(w_t.reshape(D_MODEL, NHEAD, DH), (1, 0, 2)).astype(jnp.bfloat16)

    layers = []
    for l in range(NLAYERS):
        lk = jax.random.split(keys[2 + l], 6)
        s_d = 1.0 / math.sqrt(D_MODEL)
        s_h = 1.0 / math.sqrt(D_HID)
        wo_t = u(lk[3], (D_MODEL, D_MODEL), s_d)   # out_proj.weight.T
        layers.append(dict(
            wq=split_in_proj(u(lk[0], (D_MODEL, D_MODEL), s_d)),
            wk=split_in_proj(u(lk[1], (D_MODEL, D_MODEL), s_d)),
            wv=split_in_proj(u(lk[2], (D_MODEL, D_MODEL), s_d)),
            bq=jnp.zeros((NHEAD, 1, DH), jnp.float32),
            bk=jnp.zeros((NHEAD, 1, DH), jnp.float32),
            bv=jnp.zeros((NHEAD, 1, DH), jnp.float32),
            wo=wo_t.reshape(NHEAD, DH, D_MODEL).astype(jnp.bfloat16),
            bo=jnp.zeros((1, D_MODEL), jnp.float32),
            ln1_w=jnp.ones((1, D_MODEL), jnp.float32),
            ln1_b=jnp.zeros((1, D_MODEL), jnp.float32),
            w1_t=u(lk[4], (D_MODEL, D_HID), s_d).astype(jnp.bfloat16),
            b1=jnp.zeros((1, D_HID), jnp.float32),
            w2_t=u(lk[5], (D_HID, D_MODEL), s_h).astype(jnp.bfloat16),
            b2=jnp.zeros((1, D_MODEL), jnp.float32),
            ln2_w=jnp.ones((1, D_MODEL), jnp.float32),
            ln2_b=jnp.zeros((1, D_MODEL), jnp.float32),
        ))
    return dict(emb=emb, pe=pe, dec_w_t=dec_w_t, dec_b=dec_b, layers=layers)


def transformer_forward(src, src_mask, params):
    """src: [S, B] int32 tokens; src_mask: [S, S] additive float mask.
    Returns logits [S, B, ntoken] (same axis convention as the torch module)."""
    S, B = src.shape
    # batch-major kernel row order: row = b*S + s
    tok = jnp.transpose(src).reshape(B * S, 1).astype(jnp.int32)

    # Block-diagonal [B*S, B*S] additive mask: src_mask within a batch,
    # large-negative across batches (no cross-batch attention).  Clamp -inf to
    # a finite big-negative so no inf ever enters the kernel; exp underflows
    # to exactly 0 either way, so the softmax is unchanged.
    bidx = jnp.arange(B * S, dtype=jnp.int32) // S
    same = bidx[:, None] == bidx[None, :]
    tiled = jnp.tile(src_mask.astype(jnp.float32), (B, B))
    full_mask = jnp.where(same, tiled, NEG)
    full_mask = jnp.maximum(full_mask, NEG)

    args = [tok, params['emb'], params['pe'], full_mask,
            params['dec_w_t'], params['dec_b']]
    for lp in params['layers']:
        args.extend([lp['wq'], lp['wk'], lp['wv'], lp['bq'], lp['bk'], lp['bv'],
                     lp['wo'], lp['bo'], lp['ln1_w'], lp['ln1_b'],
                     lp['w1_t'], lp['b1'], lp['w2_t'], lp['b2'],
                     lp['ln2_w'], lp['ln2_b']])

    vmem = pl.BlockSpec(memory_space=pltpu.MemorySpace.VMEM)
    # Single fused kernel, grid-less (whole model fits trivially in VMEM on
    # v5e/v6e/v7x).  If B/S are ever scaled up, grid over batch with
    # dimension_semantics=("parallel",) and derive tile sizes from
    # pltpu.get_tpu_info() (v7x has 64 MiB VMEM per TensorCore).
    logits_pad = pl.pallas_call(
        fused_forward_kernel,
        out_shape=jax.ShapeDtypeStruct((B * S, NTOKEN_PAD), jnp.float32),
        in_specs=[vmem] * len(args),
        out_specs=vmem,
    )(*args)

    logits = logits_pad[:, :NTOKEN].reshape(B, S, NTOKEN).transpose(1, 0, 2)
    return logits


if __name__ == "__main__":
    key = jax.random.PRNGKey(0)
    pkey, dkey = jax.random.split(key)
    params = init_params(pkey)

    src = jax.random.randint(dkey, (SEQ, BATCH), 0, NTOKEN, dtype=jnp.int32)
    src_mask = generate_square_subsequent_mask(SEQ)

    fwd = jax.jit(transformer_forward)
    out = jax.block_until_ready(fwd(src, src_mask, params))

    assert out.shape == (SEQ, BATCH, NTOKEN), out.shape
    assert bool(jnp.all(jnp.isfinite(out)))
    print("KERNEL_OK")
</pallas_src>

<mosaic_0001>
module attributes {stable_mosaic.version = 11 : i64} {
  func.func @fused_forward_kernel(%arg0: memref<16x1xi32, #tpu.memory_space<vmem>>, %arg1: memref<50x32xbf16, #tpu.memory_space<vmem>>, %arg2: memref<16x32xf32, #tpu.memory_space<vmem>>, %arg3: memref<16x16xf32, #tpu.memory_space<vmem>>, %arg4: memref<32x128xbf16, #tpu.memory_space<vmem>>, %arg5: memref<1x128xf32, #tpu.memory_space<vmem>>, %arg6: memref<4x32x8xbf16, #tpu.memory_space<vmem>>, %arg7: memref<4x32x8xbf16, #tpu.memory_space<vmem>>, %arg8: memref<4x32x8xbf16, #tpu.memory_space<vmem>>, %arg9: memref<4x1x8xf32, #tpu.memory_space<vmem>>, %arg10: memref<4x1x8xf32, #tpu.memory_space<vmem>>, %arg11: memref<4x1x8xf32, #tpu.memory_space<vmem>>, %arg12: memref<4x8x32xbf16, #tpu.memory_space<vmem>>, %arg13: memref<1x32xf32, #tpu.memory_space<vmem>>, %arg14: memref<1x32xf32, #tpu.memory_space<vmem>>, %arg15: memref<1x32xf32, #tpu.memory_space<vmem>>, %arg16: memref<32x64xbf16, #tpu.memory_space<vmem>>, %arg17: memref<1x64xf32, #tpu.memory_space<vmem>>, %arg18: memref<64x32xbf16, #tpu.memory_space<vmem>>, %arg19: memref<1x32xf32, #tpu.memory_space<vmem>>, %arg20: memref<1x32xf32, #tpu.memory_space<vmem>>, %arg21: memref<1x32xf32, #tpu.memory_space<vmem>>, %arg22: memref<4x32x8xbf16, #tpu.memory_space<vmem>>, %arg23: memref<4x32x8xbf16, #tpu.memory_space<vmem>>, %arg24: memref<4x32x8xbf16, #tpu.memory_space<vmem>>, %arg25: memref<4x1x8xf32, #tpu.memory_space<vmem>>, %arg26: memref<4x1x8xf32, #tpu.memory_space<vmem>>, %arg27: memref<4x1x8xf32, #tpu.memory_space<vmem>>, %arg28: memref<4x8x32xbf16, #tpu.memory_space<vmem>>, %arg29: memref<1x32xf32, #tpu.memory_space<vmem>>, %arg30: memref<1x32xf32, #tpu.memory_space<vmem>>, %arg31: memref<1x32xf32, #tpu.memory_space<vmem>>, %arg32: memref<32x64xbf16, #tpu.memory_space<vmem>>, %arg33: memref<1x64xf32, #tpu.memory_space<vmem>>, %arg34: memref<64x32xbf16, #tpu.memory_space<vmem>>, %arg35: memref<1x32xf32, #tpu.memory_space<vmem>>, %arg36: memref<1x32xf32, #tpu.memory_space<vmem>>, %arg37: memref<1x32xf32, #tpu.memory_space<vmem>>, %arg38: memref<16x128xf32, #tpu.memory_space<vmem>>) attributes {dimension_semantics = [], scalar_prefetch = 0 : i64, scratch_operands = 0 : i64, tpu.core_type = #tpu.core_type<tc>} {
    %c0 = arith.constant 0 : index
    %c0_0 = arith.constant 0 : index
    %0 = vector.load %arg0[%c0, %c0_0] : memref<16x1xi32, #tpu.memory_space<vmem>>, vector<16x1xi32>
    %1 = tpu.iota {dimensions = array<i32: 1>} : vector<16x50xi32>
    %2 = vector.broadcast %0 : vector<16x1xi32> to vector<16x50xi32>
    %3 = arith.cmpi eq, %1, %2 : vector<16x50xi32>
    %cst = arith.constant 1.000000e+00 : f32
    %cst_1 = arith.constant 0.000000e+00 : f32
    %4 = vector.broadcast %cst : f32 to vector<16x50xf32>
    %5 = vector.broadcast %cst_1 : f32 to vector<16x50xf32>
    %6 = arith.select %3, %4, %5 : vector<16x50xi1>, vector<16x50xf32>
    %7 = arith.truncf %6 : vector<16x50xf32> to vector<16x50xbf16>
    %c0_2 = arith.constant 0 : index
    %c0_3 = arith.constant 0 : index
    %8 = vector.load %arg1[%c0_2, %c0_3] : memref<50x32xbf16, #tpu.memory_space<vmem>>, vector<50x32xbf16>
    %cst_4 = arith.constant dense<0.000000e+00> : vector<16x32xf32>
    %9 = tpu.matmul %7, %8, %cst_4 {dimension_numbers = #tpu.dot_dimension_numbers<[1], [0], [0], [1], [0, 0, 1, 1], [], []>} : vector<16x50xbf16>, vector<50x32xbf16>, vector<16x32xf32> -> vector<16x32xf32>
    %cst_5 = arith.constant 5.65685415 : f32
    %10 = vector.broadcast %cst_5 : f32 to vector<16x32xf32>
    %11 = arith.mulf %9, %10 : vector<16x32xf32>
    %c0_6 = arith.constant 0 : index
    %c0_7 = arith.constant 0 : index
    %12 = vector.load %arg2[%c0_6, %c0_7] : memref<16x32xf32, #tpu.memory_space<vmem>>, vector<16x32xf32>
    %13 = arith.addf %11, %12 : vector<16x32xf32>
    %c0_8 = arith.constant 0 : index
    %c0_9 = arith.constant 0 : index
    %14 = vector.load %arg3[%c0_8, %c0_9] : memref<16x16xf32, #tpu.memory_space<vmem>>, vector<16x16xf32>
    %15 = arith.truncf %13 : vector<16x32xf32> to vector<16x32xbf16>
    %cst_10 = arith.constant 0.000000e+00 : f32
    %16 = vector.broadcast %cst_10 : f32 to vector<16x32xf32>
    %c0_11 = arith.constant 0 : index
    %c0_12 = arith.constant 0 : index
    %c0_13 = arith.constant 0 : index
    %17 = vector.load %arg6[%c0_11, %c0_12, %c0_13] : memref<4x32x8xbf16, #tpu.memory_space<vmem>>, vector<1x32x8xbf16>
    %18 = vector.shape_cast %17 : vector<1x32x8xbf16> to vector<32x8xbf16>
    %cst_14 = arith.constant dense<0.000000e+00> : vector<16x8xf32>
    %19 = tpu.matmul %15, %18, %cst_14 {dimension_numbers = #tpu.dot_dimension_numbers<[1], [0], [0], [1], [0, 0, 1, 1], [], []>} : vector<16x32xbf16>, vector<32x8xbf16>, vector<16x8xf32> -> vector<16x8xf32>
    %c0_15 = arith.constant 0 : index
    %c0_16 = arith.constant 0 : index
    %c0_17 = arith.constant 0 : index
    %20 = vector.load %arg9[%c0_15, %c0_16, %c0_17] : memref<4x1x8xf32, #tpu.memory_space<vmem>>, vector<1x1x8xf32>
    %21 = vector.shape_cast %20 : vector<1x1x8xf32> to vector<1x8xf32>
    %22 = vector.broadcast %21 : vector<1x8xf32> to vector<16x8xf32>
    %23 = arith.addf %19, %22 : vector<16x8xf32>
    %c0_18 = arith.constant 0 : index
    %c0_19 = arith.constant 0 : index
    %c0_20 = arith.constant 0 : index
    %24 = vector.load %arg7[%c0_18, %c0_19, %c0_20] : memref<4x32x8xbf16, #tpu.memory_space<vmem>>, vector<1x32x8xbf16>
    %25 = vector.shape_cast %24 : vector<1x32x8xbf16> to vector<32x8xbf16>
    %cst_21 = arith.constant dense<0.000000e+00> : vector<16x8xf32>
    %26 = tpu.matmul %15, %25, %cst_21 {dimension_numbers = #tpu.dot_dimension_numbers<[1], [0], [0], [1], [0, 0, 1, 1], [], []>} : vector<16x32xbf16>, vector<32x8xbf16>, vector<16x8xf32> -> vector<16x8xf32>
    %c0_22 = arith.constant 0 : index
    %c0_23 = arith.constant 0 : index
    %c0_24 = arith.constant 0 : index
    %27 = vector.load %arg10[%c0_22, %c0_23, %c0_24] : memref<4x1x8xf32, #tpu.memory_space<vmem>>, vector<1x1x8xf32>
    %28 = vector.shape_cast %27 : vector<1x1x8xf32> to vector<1x8xf32>
    %29 = vector.broadcast %28 : vector<1x8xf32> to vector<16x8xf32>
    %30 = arith.addf %26, %29 : vector<16x8xf32>
    %c0_25 = arith.constant 0 : index
    %c0_26 = arith.constant 0 : index
    %c0_27 = arith.constant 0 : index
    %31 = vector.load %arg8[%c0_25, %c0_26, %c0_27] : memref<4x32x8xbf16, #tpu.memory_space<vmem>>, vector<1x32x8xbf16>
    %32 = vector.shape_cast %31 : vector<1x32x8xbf16> to vector<32x8xbf16>
    %cst_28 = arith.constant dense<0.000000e+00> : vector<16x8xf32>
    %33 = tpu.matmul %15, %32, %cst_28 {dimension_numbers = #tpu.dot_dimension_numbers<[1], [0], [0], [1], [0, 0, 1, 1], [], []>} : vector<16x32xbf16>, vector<32x8xbf16>, vector<16x8xf32> -> vector<16x8xf32>
    %c0_29 = arith.constant 0 : index
    %c0_30 = arith.constant 0 : index
    %c0_31 = arith.constant 0 : index
    %34 = vector.load %arg11[%c0_29, %c0_30, %c0_31] : memref<4x1x8xf32, #tpu.memory_space<vmem>>, vector<1x1x8xf32>
    %35 = vector.shape_cast %34 : vector<1x1x8xf32> to vector<1x8xf32>
    %36 = vector.broadcast %35 : vector<1x8xf32> to vector<16x8xf32>
    %37 = arith.addf %33, %36 : vector<16x8xf32>
    %38 = tpu.transpose %30, [1, 0] : vector<16x8xf32> -> vector<8x16xf32>
    %cst_32 = arith.constant dense<0.000000e+00> : vector<16x16xf32>
    %39 = tpu.matmul %23, %38, %cst_32 {dimension_numbers = #tpu.dot_dimension_numbers<[1], [0], [0], [1], [0, 0, 1, 1], [], []>} : vector<16x8xf32>, vector<8x16xf32>, vector<16x16xf32> -> vector<16x16xf32>
    %cst_33 = arith.constant 0.353553385 : f32
    %40 = vector.broadcast %cst_33 : f32 to vector<16x16xf32>
    %41 = arith.mulf %39, %40 : vector<16x16xf32>
    %42 = arith.addf %41, %14 : vector<16x16xf32>
    %cst_34 = arith.constant dense<0xFF800000> : vector<16xf32>
    %43 = vector.multi_reduction <maximumf>, %42, %cst_34 [1] : vector<16x16xf32> to vector<16xf32>
    %44 = vector.shape_cast %43 : vector<16xf32> to vector<16x1xf32>
    %45 = vector.broadcast %44 : vector<16x1xf32> to vector<16x16xf32>
    %46 = arith.subf %42, %45 : vector<16x16xf32>
    %47 = math.exp %46 : vector<16x16xf32>
    %cst_35 = arith.constant dense<0.000000e+00> : vector<16xf32>
    %48 = vector.multi_reduction <add>, %47, %cst_35 [1] : vector<16x16xf32> to vector<16xf32>
    %49 = vector.shape_cast %48 : vector<16xf32> to vector<16x1xf32>
    %50 = tpu.reciprocal %49 {approx = true} : vector<16x1xf32> -> vector<16x1xf32>
    %51 = vector.broadcast %50 : vector<16x1xf32> to vector<16x16xf32>
    %52 = arith.mulf %47, %51 : vector<16x16xf32>
    %cst_36 = arith.constant dense<0.000000e+00> : vector<16x8xf32>
    %53 = tpu.matmul %52, %37, %cst_36 {dimension_numbers = #tpu.dot_dimension_numbers<[1], [0], [0], [1], [0, 0, 1, 1], [], []>} : vector<16x16xf32>, vector<16x8xf32>, vector<16x8xf32> -> vector<16x8xf32>
    %54 = arith.truncf %53 : vector<16x8xf32> to vector<16x8xbf16>
    %c0_37 = arith.constant 0 : index
    %c0_38 = arith.constant 0 : index
    %c0_39 = arith.constant 0 : index
    %55 = vector.load %arg12[%c0_37, %c0_38, %c0_39] : memref<4x8x32xbf16, #tpu.memory_space<vmem>>, vector<1x8x32xbf16>
    %56 = vector.shape_cast %55 : vector<1x8x32xbf16> to vector<8x32xbf16>
    %cst_40 = arith.constant dense<0.000000e+00> : vector<16x32xf32>
    %57 = tpu.matmul %54, %56, %cst_40 {dimension_numbers = #tpu.dot_dimension_numbers<[1], [0], [0], [1], [0, 0, 1, 1], [], []>} : vector<16x8xbf16>, vector<8x32xbf16>, vector<16x32xf32> -> vector<16x32xf32>
    %58 = arith.addf %16, %57 : vector<16x32xf32>
    %c1 = arith.constant 1 : index
    %c0_41 = arith.constant 0 : index
    %c0_42 = arith.constant 0 : index
    %59 = vector.load %arg6[%c1, %c0_41, %c0_42] : memref<4x32x8xbf16, #tpu.memory_space<vmem>>, vector<1x32x8xbf16>
    %60 = vector.shape_cast %59 : vector<1x32x8xbf16> to vector<32x8xbf16>
    %cst_43 = arith.constant dense<0.000000e+00> : vector<16x8xf32>
    %61 = tpu.matmul %15, %60, %cst_43 {dimension_numbers = #tpu.dot_dimension_numbers<[1], [0], [0], [1], [0, 0, 1, 1], [], []>} : vector<16x32xbf16>, vector<32x8xbf16>, vector<16x8xf32> -> vector<16x8xf32>
    %c1_44 = arith.constant 1 : index
    %c0_45 = arith.constant 0 : index
    %c0_46 = arith.constant 0 : index
    %62 = vector.load %arg9[%c1_44, %c0_45, %c0_46] : memref<4x1x8xf32, #tpu.memory_space<vmem>>, vector<1x1x8xf32>
    %63 = vector.shape_cast %62 : vector<1x1x8xf32> to vector<1x8xf32>
    %64 = vector.broadcast %63 : vector<1x8xf32> to vector<16x8xf32>
    %65 = arith.addf %61, %64 : vector<16x8xf32>
    %c1_47 = arith.constant 1 : index
    %c0_48 = arith.constant 0 : index
    %c0_49 = arith.constant 0 : index
    %66 = vector.load %arg7[%c1_47, %c0_48, %c0_49] : memref<4x32x8xbf16, #tpu.memory_space<vmem>>, vector<1x32x8xbf16>
    %67 = vector.shape_cast %66 : vector<1x32x8xbf16> to vector<32x8xbf16>
    %cst_50 = arith.constant dense<0.000000e+00> : vector<16x8xf32>
    %68 = tpu.matmul %15, %67, %cst_50 {dimension_numbers = #tpu.dot_dimension_numbers<[1], [0], [0], [1], [0, 0, 1, 1], [], []>} : vector<16x32xbf16>, vector<32x8xbf16>, vector<16x8xf32> -> vector<16x8xf32>
    %c1_51 = arith.constant 1 : index
    %c0_52 = arith.constant 0 : index
    %c0_53 = arith.constant 0 : index
    %69 = vector.load %arg10[%c1_51, %c0_52, %c0_53] : memref<4x1x8xf32, #tpu.memory_space<vmem>>, vector<1x1x8xf32>
    %70 = vector.shape_cast %69 : vector<1x1x8xf32> to vector<1x8xf32>
    %71 = vector.broadcast %70 : vector<1x8xf32> to vector<16x8xf32>
    %72 = arith.addf %68, %71 : vector<16x8xf32>
    %c1_54 = arith.constant 1 : index
    %c0_55 = arith.constant 0 : index
    %c0_56 = arith.constant 0 : index
    %73 = vector.load %arg8[%c1_54, %c0_55, %c0_56] : memref<4x32x8xbf16, #tpu.memory_space<vmem>>, vector<1x32x8xbf16>
    %74 = vector.shape_cast %73 : vector<1x32x8xbf16> to vector<32x8xbf16>
    %cst_57 = arith.constant dense<0.000000e+00> : vector<16x8xf32>
    %75 = tpu.matmul %15, %74, %cst_57 {dimension_numbers = #tpu.dot_dimension_numbers<[1], [0], [0], [1], [0, 0, 1, 1], [], []>} : vector<16x32xbf16>, vector<32x8xbf16>, vector<16x8xf32> -> vector<16x8xf32>
    %c1_58 = arith.constant 1 : index
    %c0_59 = arith.constant 0 : index
    %c0_60 = arith.constant 0 : index
    %76 = vector.load %arg11[%c1_58, %c0_59, %c0_60] : memref<4x1x8xf32, #tpu.memory_space<vmem>>, vector<1x1x8xf32>
    %77 = vector.shape_cast %76 : vector<1x1x8xf32> to vector<1x8xf32>
    %78 = vector.broadcast %77 : vector<1x8xf32> to vector<16x8xf32>
    %79 = arith.addf %75, %78 : vector<16x8xf32>
    %80 = tpu.transpose %72, [1, 0] : vector<16x8xf32> -> vector<8x16xf32>
    %cst_61 = arith.constant dense<0.000000e+00> : vector<16x16xf32>
    %81 = tpu.matmul %65, %80, %cst_61 {dimension_numbers = #tpu.dot_dimension_numbers<[1], [0], [0], [1], [0, 0, 1, 1], [], []>} : vector<16x8xf32>, vector<8x16xf32>, vector<16x16xf32> -> vector<16x16xf32>
    %cst_62 = arith.constant 0.353553385 : f32
    %82 = vector.broadcast %cst_62 : f32 to vector<16x16xf32>
    %83 = arith.mulf %81, %82 : vector<16x16xf32>
    %84 = arith.addf %83, %14 : vector<16x16xf32>
    %cst_63 = arith.constant dense<0xFF800000> : vector<16xf32>
    %85 = vector.multi_reduction <maximumf>, %84, %cst_63 [1] : vector<16x16xf32> to vector<16xf32>
    %86 = vector.shape_cast %85 : vector<16xf32> to vector<16x1xf32>
    %87 = vector.broadcast %86 : vector<16x1xf32> to vector<16x16xf32>
    %88 = arith.subf %84, %87 : vector<16x16xf32>
    %89 = math.exp %88 : vector<16x16xf32>
    %cst_64 = arith.constant dense<0.000000e+00> : vector<16xf32>
    %90 = vector.multi_reduction <add>, %89, %cst_64 [1] : vector<16x16xf32> to vector<16xf32>
    %91 = vector.shape_cast %90 : vector<16xf32> to vector<16x1xf32>
    %92 = tpu.reciprocal %91 {approx = true} : vector<16x1xf32> -> vector<16x1xf32>
    %93 = vector.broadcast %92 : vector<16x1xf32> to vector<16x16xf32>
    %94 = arith.mulf %89, %93 : vector<16x16xf32>
    %cst_65 = arith.constant dense<0.000000e+00> : vector<16x8xf32>
    %95 = tpu.matmul %94, %79, %cst_65 {dimension_numbers = #tpu.dot_dimension_numbers<[1], [0], [0], [1], [0, 0, 1, 1], [], []>} : vector<16x16xf32>, vector<16x8xf32>, vector<16x8xf32> -> vector<16x8xf32>
    %96 = arith.truncf %95 : vector<16x8xf32> to vector<16x8xbf16>
    %c1_66 = arith.constant 1 : index
    %c0_67 = arith.constant 0 : index
    %c0_68 = arith.constant 0 : index
    %97 = vector.load %arg12[%c1_66, %c0_67, %c0_68] : memref<4x8x32xbf16, #tpu.memory_space<vmem>>, vector<1x8x32xbf16>
    %98 = vector.shape_cast %97 : vector<1x8x32xbf16> to vector<8x32xbf16>
    %cst_69 = arith.constant dense<0.000000e+00> : vector<16x32xf32>
    %99 = tpu.matmul %96, %98, %cst_69 {dimension_numbers = #tpu.dot_dimension_numbers<[1], [0], [0], [1], [0, 0, 1, 1], [], []>} : vector<16x8xbf16>, vector<8x32xbf16>, vector<16x32xf32> -> vector<16x32xf32>
    %100 = arith.addf %58, %99 : vector<16x32xf32>
    %c2 = arith.constant 2 : index
    %c0_70 = arith.constant 0 : index
    %c0_71 = arith.constant 0 : index
    %101 = vector.load %arg6[%c2, %c0_70, %c0_71] : memref<4x32x8xbf16, #tpu.memory_space<vmem>>, vector<1x32x8xbf16>
    %102 = vector.shape_cast %101 : vector<1x32x8xbf16> to vector<32x8xbf16>
    %cst_72 = arith.constant dense<0.000000e+00> : vector<16x8xf32>
    %103 = tpu.matmul %15, %102, %cst_72 {dimension_numbers = #tpu.dot_dimension_numbers<[1], [0], [0], [1], [0, 0, 1, 1], [], []>} : vector<16x32xbf16>, vector<32x8xbf16>, vector<16x8xf32> -> vector<16x8xf32>
    %c2_73 = arith.constant 2 : index
    %c0_74 = arith.constant 0 : index
    %c0_75 = arith.constant 0 : index
    %104 = vector.load %arg9[%c2_73, %c0_74, %c0_75] : memref<4x1x8xf32, #tpu.memory_space<vmem>>, vector<1x1x8xf32>
    %105 = vector.shape_cast %104 : vector<1x1x8xf32> to vector<1x8xf32>
    %106 = vector.broadcast %105 : vector<1x8xf32> to vector<16x8xf32>
    %107 = arith.addf %103, %106 : vector<16x8xf32>
    %c2_76 = arith.constant 2 : index
    %c0_77 = arith.constant 0 : index
    %c0_78 = arith.constant 0 : index
    %108 = vector.load %arg7[%c2_76, %c0_77, %c0_78] : memref<4x32x8xbf16, #tpu.memory_space<vmem>>, vector<1x32x8xbf16>
    %109 = vector.shape_cast %108 : vector<1x32x8xbf16> to vector<32x8xbf16>
    %cst_79 = arith.constant dense<0.000000e+00> : vector<16x8xf32>
    %110 = tpu.matmul %15, %109, %cst_79 {dimension_numbers = #tpu.dot_dimension_numbers<[1], [0], [0], [1], [0, 0, 1, 1], [], []>} : vector<16x32xbf16>, vector<32x8xbf16>, vector<16x8xf32> -> vector<16x8xf32>
    %c2_80 = arith.constant 2 : index
    %c0_81 = arith.constant 0 : index
    %c0_82 = arith.constant 0 : index
    %111 = vector.load %arg10[%c2_80, %c0_81, %c0_82] : memref<4x1x8xf32, #tpu.memory_space<vmem>>, vector<1x1x8xf32>
    %112 = vector.shape_cast %111 : vector<1x1x8xf32> to vector<1x8xf32>
    %113 = vector.broadcast %112 : vector<1x8xf32> to vector<16x8xf32>
    %114 = arith.addf %110, %113 : vector<16x8xf32>
    %c2_83 = arith.constant 2 : index
    %c0_84 = arith.constant 0 : index
    %c0_85 = arith.constant 0 : index
    %115 = vector.load %arg8[%c2_83, %c0_84, %c0_85] : memref<4x32x8xbf16, #tpu.memory_space<vmem>>, vector<1x32x8xbf16>
    %116 = vector.shape_cast %115 : vector<1x32x8xbf16> to vector<32x8xbf16>
    %cst_86 = arith.constant dense<0.000000e+00> : vector<16x8xf32>
    %117 = tpu.matmul %15, %116, %cst_86 {dimension_numbers = #tpu.dot_dimension_numbers<[1], [0], [0], [1], [0, 0, 1, 1], [], []>} : vector<16x32xbf16>, vector<32x8xbf16>, vector<16x8xf32> -> vector<16x8xf32>
    %c2_87 = arith.constant 2 : index
    %c0_88 = arith.constant 0 : index
    %c0_89 = arith.constant 0 : index
    %118 = vector.load %arg11[%c2_87, %c0_88, %c0_89] : memref<4x1x8xf32, #tpu.memory_space<vmem>>, vector<1x1x8xf32>
    %119 = vector.shape_cast %118 : vector<1x1x8xf32> to vector<1x8xf32>
    %120 = vector.broadcast %119 : vector<1x8xf32> to vector<16x8xf32>
    %121 = arith.addf %117, %120 : vector<16x8xf32>
    %122 = tpu.transpose %114, [1, 0] : vector<16x8xf32> -> vector<8x16xf32>
    %cst_90 = arith.constant dense<0.000000e+00> : vector<16x16xf32>
    %123 = tpu.matmul %107, %122, %cst_90 {dimension_numbers = #tpu.dot_dimension_numbers<[1], [0], [0], [1], [0, 0, 1, 1], [], []>} : vector<16x8xf32>, vector<8x16xf32>, vector<16x16xf32> -> vector<16x16xf32>
    %cst_91 = arith.constant 0.353553385 : f32
    %124 = vector.broadcast %cst_91 : f32 to vector<16x16xf32>
    %125 = arith.mulf %123, %124 : vector<16x16xf32>
    %126 = arith.addf %125, %14 : vector<16x16xf32>
    %cst_92 = arith.constant dense<0xFF800000> : vector<16xf32>
    %127 = vector.multi_reduction <maximumf>, %126, %cst_92 [1] : vector<16x16xf32> to vector<16xf32>
    %128 = vector.shape_cast %127 : vector<16xf32> to vector<16x1xf32>
    %129 = vector.broadcast %128 : vector<16x1xf32> to vector<16x16xf32>
    %130 = arith.subf %126, %129 : vector<16x16xf32>
    %131 = math.exp %130 : vector<16x16xf32>
    %cst_93 = arith.constant dense<0.000000e+00> : vector<16xf32>
    %132 = vector.multi_reduction <add>, %131, %cst_93 [1] : vector<16x16xf32> to vector<16xf32>
    %133 = vector.shape_cast %132 : vector<16xf32> to vector<16x1xf32>
    %134 = tpu.reciprocal %133 {approx = true} : vector<16x1xf32> -> vector<16x1xf32>
    %135 = vector.broadcast %134 : vector<16x1xf32> to vector<16x16xf32>
    %136 = arith.mulf %131, %135 : vector<16x16xf32>
    %cst_94 = arith.constant dense<0.000000e+00> : vector<16x8xf32>
    %137 = tpu.matmul %136, %121, %cst_94 {dimension_numbers = #tpu.dot_dimension_numbers<[1], [0], [0], [1], [0, 0, 1, 1], [], []>} : vector<16x16xf32>, vector<16x8xf32>, vector<16x8xf32> -> vector<16x8xf32>
    %138 = arith.truncf %137 : vector<16x8xf32> to vector<16x8xbf16>
    %c2_95 = arith.constant 2 : index
    %c0_96 = arith.constant 0 : index
    %c0_97 = arith.constant 0 : index
    %139 = vector.load %arg12[%c2_95, %c0_96, %c0_97] : memref<4x8x32xbf16, #tpu.memory_space<vmem>>, vector<1x8x32xbf16>
    %140 = vector.shape_cast %139 : vector<1x8x32xbf16> to vector<8x32xbf16>
    %cst_98 = arith.constant dense<0.000000e+00> : vector<16x32xf32>
    %141 = tpu.matmul %138, %140, %cst_98 {dimension_numbers = #tpu.dot_dimension_numbers<[1], [0], [0], [1], [0, 0, 1, 1], [], []>} : vector<16x8xbf16>, vector<8x32xbf16>, vector<16x32xf32> -> vector<16x32xf32>
    %142 = arith.addf %100, %141 : vector<16x32xf32>
    %c3 = arith.constant 3 : index
    %c0_99 = arith.constant 0 : index
    %c0_100 = arith.constant 0 : index
    %143 = vector.load %arg6[%c3, %c0_99, %c0_100] : memref<4x32x8xbf16, #tpu.memory_space<vmem>>, vector<1x32x8xbf16>
    %144 = vector.shape_cast %143 : vector<1x32x8xbf16> to vector<32x8xbf16>
    %cst_101 = arith.constant dense<0.000000e+00> : vector<16x8xf32>
    %145 = tpu.matmul %15, %144, %cst_101 {dimension_numbers = #tpu.dot_dimension_numbers<[1], [0], [0], [1], [0, 0, 1, 1], [], []>} : vector<16x32xbf16>, vector<32x8xbf16>, vector<16x8xf32> -> vector<16x8xf32>
    %c3_102 = arith.constant 3 : index
    %c0_103 = arith.constant 0 : index
    %c0_104 = arith.constant 0 : index
    %146 = vector.load %arg9[%c3_102, %c0_103, %c0_104] : memref<4x1x8xf32, #tpu.memory_space<vmem>>, vector<1x1x8xf32>
    %147 = vector.shape_cast %146 : vector<1x1x8xf32> to vector<1x8xf32>
    %148 = vector.broadcast %147 : vector<1x8xf32> to vector<16x8xf32>
    %149 = arith.addf %145, %148 : vector<16x8xf32>
    %c3_105 = arith.constant 3 : index
    %c0_106 = arith.constant 0 : index
    %c0_107 = arith.constant 0 : index
    %150 = vector.load %arg7[%c3_105, %c0_106, %c0_107] : memref<4x32x8xbf16, #tpu.memory_space<vmem>>, vector<1x32x8xbf16>
    %151 = vector.shape_cast %150 : vector<1x32x8xbf16> to vector<32x8xbf16>
    %cst_108 = arith.constant dense<0.000000e+00> : vector<16x8xf32>
    %152 = tpu.matmul %15, %151, %cst_108 {dimension_numbers = #tpu.dot_dimension_numbers<[1], [0], [0], [1], [0, 0, 1, 1], [], []>} : vector<16x32xbf16>, vector<32x8xbf16>, vector<16x8xf32> -> vector<16x8xf32>
    %c3_109 = arith.constant 3 : index
    %c0_110 = arith.constant 0 : index
    %c0_111 = arith.constant 0 : index
    %153 = vector.load %arg10[%c3_109, %c0_110, %c0_111] : memref<4x1x8xf32, #tpu.memory_space<vmem>>, vector<1x1x8xf32>
    %154 = vector.shape_cast %153 : vector<1x1x8xf32> to vector<1x8xf32>
    %155 = vector.broadcast %154 : vector<1x8xf32> to vector<16x8xf32>
    %156 = arith.addf %152, %155 : vector<16x8xf32>
    %c3_112 = arith.constant 3 : index
    %c0_113 = arith.constant 0 : index
    %c0_114 = arith.constant 0 : index
    %157 = vector.load %arg8[%c3_112, %c0_113, %c0_114] : memref<4x32x8xbf16, #tpu.memory_space<vmem>>, vector<1x32x8xbf16>
    %158 = vector.shape_cast %157 : vector<1x32x8xbf16> to vector<32x8xbf16>
    %cst_115 = arith.constant dense<0.000000e+00> : vector<16x8xf32>
    %159 = tpu.matmul %15, %158, %cst_115 {dimension_numbers = #tpu.dot_dimension_numbers<[1], [0], [0], [1], [0, 0, 1, 1], [], []>} : vector<16x32xbf16>, vector<32x8xbf16>, vector<16x8xf32> -> vector<16x8xf32>
    %c3_116 = arith.constant 3 : index
    %c0_117 = arith.constant 0 : index
    %c0_118 = arith.constant 0 : index
    %160 = vector.load %arg11[%c3_116, %c0_117, %c0_118] : memref<4x1x8xf32, #tpu.memory_space<vmem>>, vector<1x1x8xf32>
    %161 = vector.shape_cast %160 : vector<1x1x8xf32> to vector<1x8xf32>
    %162 = vector.broadcast %161 : vector<1x8xf32> to vector<16x8xf32>
    %163 = arith.addf %159, %162 : vector<16x8xf32>
    %164 = tpu.transpose %156, [1, 0] : vector<16x8xf32> -> vector<8x16xf32>
    %cst_119 = arith.constant dense<0.000000e+00> : vector<16x16xf32>
    %165 = tpu.matmul %149, %164, %cst_119 {dimension_numbers = #tpu.dot_dimension_numbers<[1], [0], [0], [1], [0, 0, 1, 1], [], []>} : vector<16x8xf32>, vector<8x16xf32>, vector<16x16xf32> -> vector<16x16xf32>
    %cst_120 = arith.constant 0.353553385 : f32
    %166 = vector.broadcast %cst_120 : f32 to vector<16x16xf32>
    %167 = arith.mulf %165, %166 : vector<16x16xf32>
    %168 = arith.addf %167, %14 : vector<16x16xf32>
    %cst_121 = arith.constant dense<0xFF800000> : vector<16xf32>
    %169 = vector.multi_reduction <maximumf>, %168, %cst_121 [1] : vector<16x16xf32> to vector<16xf32>
    %170 = vector.shape_cast %169 : vector<16xf32> to vector<16x1xf32>
    %171 = vector.broadcast %170 : vector<16x1xf32> to vector<16x16xf32>
    %172 = arith.subf %168, %171 : vector<16x16xf32>
    %173 = math.exp %172 : vector<16x16xf32>
    %cst_122 = arith.constant dense<0.000000e+00> : vector<16xf32>
    %174 = vector.multi_reduction <add>, %173, %cst_122 [1] : vector<16x16xf32> to vector<16xf32>
    %175 = vector.shape_cast %174 : vector<16xf32> to vector<16x1xf32>
    %176 = tpu.reciprocal %175 {approx = true} : vector<16x1xf32> -> vector<16x1xf32>
    %177 = vector.broadcast %176 : vector<16x1xf32> to vector<16x16xf32>
    %178 = arith.mulf %173, %177 : vector<16x16xf32>
    %cst_123 = arith.constant dense<0.000000e+00> : vector<16x8xf32>
    %179 = tpu.matmul %178, %163, %cst_123 {dimension_numbers = #tpu.dot_dimension_numbers<[1], [0], [0], [1], [0, 0, 1, 1], [], []>} : vector<16x16xf32>, vector<16x8xf32>, vector<16x8xf32> -> vector<16x8xf32>
    %180 = arith.truncf %179 : vector<16x8xf32> to vector<16x8xbf16>
    %c3_124 = arith.constant 3 : index
    %c0_125 = arith.constant 0 : index
    %c0_126 = arith.constant 0 : index
    %181 = vector.load %arg12[%c3_124, %c0_125, %c0_126] : memref<4x8x32xbf16, #tpu.memory_space<vmem>>, vector<1x8x32xbf16>
    %182 = vector.shape_cast %181 : vector<1x8x32xbf16> to vector<8x32xbf16>
    %cst_127 = arith.constant dense<0.000000e+00> : vector<16x32xf32>
    %183 = tpu.matmul %180, %182, %cst_127 {dimension_numbers = #tpu.dot_dimension_numbers<[1], [0], [0], [1], [0, 0, 1, 1], [], []>} : vector<16x8xbf16>, vector<8x32xbf16>, vector<16x32xf32> -> vector<16x32xf32>
    %184 = arith.addf %142, %183 : vector<16x32xf32>
    %c0_128 = arith.constant 0 : index
    %c0_129 = arith.constant 0 : index
    %185 = vector.load %arg13[%c0_128, %c0_129] : memref<1x32xf32, #tpu.memory_space<vmem>>, vector<1x32xf32>
    %186 = vector.broadcast %185 : vector<1x32xf32> to vector<16x32xf32>
    %187 = arith.addf %184, %186 : vector<16x32xf32>
    %188 = arith.addf %13, %187 : vector<16x32xf32>
    %c0_130 = arith.constant 0 : index
    %c0_131 = arith.constant 0 : index
    %189 = vector.load %arg14[%c0_130, %c0_131] : memref<1x32xf32, #tpu.memory_space<vmem>>, vector<1x32xf32>
    %c0_132 = arith.constant 0 : index
    %c0_133 = arith.constant 0 : index
    %190 = vector.load %arg15[%c0_132, %c0_133] : memref<1x32xf32, #tpu.memory_space<vmem>>, vector<1x32xf32>
    %cst_134 = arith.constant dense<0.000000e+00> : vector<16xf32>
    %191 = vector.multi_reduction <add>, %188, %cst_134 [1] : vector<16x32xf32> to vector<16xf32>
    %192 = vector.shape_cast %191 : vector<16xf32> to vector<16x1xf32>
    %cst_135 = arith.constant 3.200000e+01 : f32
    %193 = vector.broadcast %cst_135 : f32 to vector<16x1xf32>
    %194 = arith.divf %192, %193 : vector<16x1xf32>
    %195 = vector.broadcast %194 : vector<16x1xf32> to vector<16x32xf32>
    %196 = arith.subf %188, %195 : vector<16x32xf32>
    %197 = arith.mulf %196, %196 : vector<16x32xf32>
    %cst_136 = arith.constant dense<0.000000e+00> : vector<16xf32>
    %198 = vector.multi_reduction <add>, %197, %cst_136 [1] : vector<16x32xf32> to vector<16xf32>
    %199 = vector.shape_cast %198 : vector<16xf32> to vector<16x1xf32>
    %cst_137 = arith.constant 3.200000e+01 : f32
    %200 = vector.broadcast %cst_137 : f32 to vector<16x1xf32>
    %201 = arith.divf %199, %200 : vector<16x1xf32>
    %202 = vector.broadcast %194 : vector<16x1xf32> to vector<16x32xf32>
    %203 = arith.subf %188, %202 : vector<16x32xf32>
    %cst_138 = arith.constant 9.99999974E-6 : f32
    %204 = vector.broadcast %cst_138 : f32 to vector<16x1xf32>
    %205 = arith.addf %201, %204 : vector<16x1xf32>
    %206 = math.rsqrt %205 : vector<16x1xf32>
    %207 = vector.broadcast %206 : vector<16x1xf32> to vector<16x32xf32>
    %208 = arith.mulf %203, %207 : vector<16x32xf32>
    %209 = vector.broadcast %189 : vector<1x32xf32> to vector<16x32xf32>
    %210 = arith.mulf %208, %209 : vector<16x32xf32>
    %211 = vector.broadcast %190 : vector<1x32xf32> to vector<16x32xf32>
    %212 = arith.addf %210, %211 : vector<16x32xf32>
    %213 = arith.truncf %212 : vector<16x32xf32> to vector<16x32xbf16>
    %c0_139 = arith.constant 0 : index
    %c0_140 = arith.constant 0 : index
    %214 = vector.load %arg16[%c0_139, %c0_140] : memref<32x64xbf16, #tpu.memory_space<vmem>>, vector<32x64xbf16>
    %cst_141 = arith.constant dense<0.000000e+00> : vector<16x64xf32>
    %215 = tpu.matmul %213, %214, %cst_141 {dimension_numbers = #tpu.dot_dimension_numbers<[1], [0], [0], [1], [0, 0, 1, 1], [], []>} : vector<16x32xbf16>, vector<32x64xbf16>, vector<16x64xf32> -> vector<16x64xf32>
    %c0_142 = arith.constant 0 : index
    %c0_143 = arith.constant 0 : index
    %216 = vector.load %arg17[%c0_142, %c0_143] : memref<1x64xf32, #tpu.memory_space<vmem>>, vector<1x64xf32>
    %217 = vector.broadcast %216 : vector<1x64xf32> to vector<16x64xf32>
    %218 = arith.addf %215, %217 : vector<16x64xf32>
    %cst_144 = arith.constant 0.000000e+00 : f32
    %219 = vector.broadcast %cst_144 : f32 to vector<16x64xf32>
    %220 = arith.maximumf %218, %219 : vector<16x64xf32>
    %221 = arith.truncf %220 : vector<16x64xf32> to vector<16x64xbf16>
    %c0_145 = arith.constant 0 : index
    %c0_146 = arith.constant 0 : index
    %222 = vector.load %arg18[%c0_145, %c0_146] : memref<64x32xbf16, #tpu.memory_space<vmem>>, vector<64x32xbf16>
    %cst_147 = arith.constant dense<0.000000e+00> : vector<16x32xf32>
    %223 = tpu.matmul %221, %222, %cst_147 {dimension_numbers = #tpu.dot_dimension_numbers<[1], [0], [0], [1], [0, 0, 1, 1], [], []>} : vector<16x64xbf16>, vector<64x32xbf16>, vector<16x32xf32> -> vector<16x32xf32>
    %c0_148 = arith.constant 0 : index
    %c0_149 = arith.constant 0 : index
    %224 = vector.load %arg19[%c0_148, %c0_149] : memref<1x32xf32, #tpu.memory_space<vmem>>, vector<1x32xf32>
    %225 = vector.broadcast %224 : vector<1x32xf32> to vector<16x32xf32>
    %226 = arith.addf %223, %225 : vector<16x32xf32>
    %227 = arith.addf %212, %226 : vector<16x32xf32>
    %c0_150 = arith.constant 0 : index
    %c0_151 = arith.constant 0 : index
    %228 = vector.load %arg20[%c0_150, %c0_151] : memref<1x32xf32, #tpu.memory_space<vmem>>, vector<1x32xf32>
    %c0_152 = arith.constant 0 : index
    %c0_153 = arith.constant 0 : index
    %229 = vector.load %arg21[%c0_152, %c0_153] : memref<1x32xf32, #tpu.memory_space<vmem>>, vector<1x32xf32>
    %cst_154 = arith.constant dense<0.000000e+00> : vector<16xf32>
    %230 = vector.multi_reduction <add>, %227, %cst_154 [1] : vector<16x32xf32> to vector<16xf32>
    %231 = vector.shape_cast %230 : vector<16xf32> to vector<16x1xf32>
    %cst_155 = arith.constant 3.200000e+01 : f32
    %232 = vector.broadcast %cst_155 : f32 to vector<16x1xf32>
    %233 = arith.divf %231, %232 : vector<16x1xf32>
    %234 = vector.broadcast %233 : vector<16x1xf32> to vector<16x32xf32>
    %235 = arith.subf %227, %234 : vector<16x32xf32>
    %236 = arith.mulf %235, %235 : vector<16x32xf32>
    %cst_156 = arith.constant dense<0.000000e+00> : vector<16xf32>
    %237 = vector.multi_reduction <add>, %236, %cst_156 [1] : vector<16x32xf32> to vector<16xf32>
    %238 = vector.shape_cast %237 : vector<16xf32> to vector<16x1xf32>
    %cst_157 = arith.constant 3.200000e+01 : f32
    %239 = vector.broadcast %cst_157 : f32 to vector<16x1xf32>
    %240 = arith.divf %238, %239 : vector<16x1xf32>
    %241 = vector.broadcast %233 : vector<16x1xf32> to vector<16x32xf32>
    %242 = arith.subf %227, %241 : vector<16x32xf32>
    %cst_158 = arith.constant 9.99999974E-6 : f32
    %243 = vector.broadcast %cst_158 : f32 to vector<16x1xf32>
    %244 = arith.addf %240, %243 : vector<16x1xf32>
    %245 = math.rsqrt %244 : vector<16x1xf32>
    %246 = vector.broadcast %245 : vector<16x1xf32> to vector<16x32xf32>
    %247 = arith.mulf %242, %246 : vector<16x32xf32>
    %248 = vector.broadcast %228 : vector<1x32xf32> to vector<16x32xf32>
    %249 = arith.mulf %247, %248 : vector<16x32xf32>
    %250 = vector.broadcast %229 : vector<1x32xf32> to vector<16x32xf32>
    %251 = arith.addf %249, %250 : vector<16x32xf32>
    %252 = arith.truncf %251 : vector<16x32xf32> to vector<16x32xbf16>
    %cst_159 = arith.constant 0.000000e+00 : f32
    %253 = vector.broadcast %cst_159 : f32 to vector<16x32xf32>
    %c0_160 = arith.constant 0 : index
    %c0_161 = arith.constant 0 : index
    %c0_162 = arith.constant 0 : index
    %254 = vector.load %arg22[%c0_160, %c0_161, %c0_162] : memref<4x32x8xbf16, #tpu.memory_space<vmem>>, vector<1x32x8xbf16>
    %255 = vector.shape_cast %254 : vector<1x32x8xbf16> to vector<32x8xbf16>
    %cst_163 = arith.constant dense<0.000000e+00> : vector<16x8xf32>
    %256 = tpu.matmul %252, %255, %cst_163 {dimension_numbers = #tpu.dot_dimension_numbers<[1], [0], [0], [1], [0, 0, 1, 1], [], []>} : vector<16x32xbf16>, vector<32x8xbf16>, vector<16x8xf32> -> vector<16x8xf32>
    %c0_164 = arith.constant 0 : index
    %c0_165 = arith.constant 0 : index
    %c0_166 = arith.constant 0 : index
    %257 = vector.load %arg25[%c0_164, %c0_165, %c0_166] : memref<4x1x8xf32, #tpu.memory_space<vmem>>, vector<1x1x8xf32>
    %258 = vector.shape_cast %257 : vector<1x1x8xf32> to vector<1x8xf32>
    %259 = vector.broadcast %258 : vector<1x8xf32> to vector<16x8xf32>
    %260 = arith.addf %256, %259 : vector<16x8xf32>
    %c0_167 = arith.constant 0 : index
    %c0_168 = arith.constant 0 : index
    %c0_169 = arith.constant 0 : index
    %261 = vector.load %arg23[%c0_167, %c0_168, %c0_169] : memref<4x32x8xbf16, #tpu.memory_space<vmem>>, vector<1x32x8xbf16>
    %262 = vector.shape_cast %261 : vector<1x32x8xbf16> to vector<32x8xbf16>
    %cst_170 = arith.constant dense<0.000000e+00> : vector<16x8xf32>
    %263 = tpu.matmul %252, %262, %cst_170 {dimension_numbers = #tpu.dot_dimension_numbers<[1], [0], [0], [1], [0, 0, 1, 1], [], []>} : vector<16x32xbf16>, vector<32x8xbf16>, vector<16x8xf32> -> vector<16x8xf32>
    %c0_171 = arith.constant 0 : index
    %c0_172 = arith.constant 0 : index
    %c0_173 = arith.constant 0 : index
    %264 = vector.load %arg26[%c0_171, %c0_172, %c0_173] : memref<4x1x8xf32, #tpu.memory_space<vmem>>, vector<1x1x8xf32>
    %265 = vector.shape_cast %264 : vector<1x1x8xf32> to vector<1x8xf32>
    %266 = vector.broadcast %265 : vector<1x8xf32> to vector<16x8xf32>
    %267 = arith.addf %263, %266 : vector<16x8xf32>
    %c0_174 = arith.constant 0 : index
    %c0_175 = arith.constant 0 : index
    %c0_176 = arith.constant 0 : index
    %268 = vector.load %arg24[%c0_174, %c0_175, %c0_176] : memref<4x32x8xbf16, #tpu.memory_space<vmem>>, vector<1x32x8xbf16>
    %269 = vector.shape_cast %268 : vector<1x32x8xbf16> to vector<32x8xbf16>
    %cst_177 = arith.constant dense<0.000000e+00> : vector<16x8xf32>
    %270 = tpu.matmul %252, %269, %cst_177 {dimension_numbers = #tpu.dot_dimension_numbers<[1], [0], [0], [1], [0, 0, 1, 1], [], []>} : vector<16x32xbf16>, vector<32x8xbf16>, vector<16x8xf32> -> vector<16x8xf32>
    %c0_178 = arith.constant 0 : index
    %c0_179 = arith.constant 0 : index
    %c0_180 = arith.constant 0 : index
    %271 = vector.load %arg27[%c0_178, %c0_179, %c0_180] : memref<4x1x8xf32, #tpu.memory_space<vmem>>, vector<1x1x8xf32>
    %272 = vector.shape_cast %271 : vector<1x1x8xf32> to vector<1x8xf32>
    %273 = vector.broadcast %272 : vector<1x8xf32> to vector<16x8xf32>
    %274 = arith.addf %270, %273 : vector<16x8xf32>
    %275 = tpu.transpose %267, [1, 0] : vector<16x8xf32> -> vector<8x16xf32>
    %cst_181 = arith.constant dense<0.000000e+00> : vector<16x16xf32>
    %276 = tpu.matmul %260, %275, %cst_181 {dimension_numbers = #tpu.dot_dimension_numbers<[1], [0], [0], [1], [0, 0, 1, 1], [], []>} : vector<16x8xf32>, vector<8x16xf32>, vector<16x16xf32> -> vector<16x16xf32>
    %cst_182 = arith.constant 0.353553385 : f32
    %277 = vector.broadcast %cst_182 : f32 to vector<16x16xf32>
    %278 = arith.mulf %276, %277 : vector<16x16xf32>
    %279 = arith.addf %278, %14 : vector<16x16xf32>
    %cst_183 = arith.constant dense<0xFF800000> : vector<16xf32>
    %280 = vector.multi_reduction <maximumf>, %279, %cst_183 [1] : vector<16x16xf32> to vector<16xf32>
    %281 = vector.shape_cast %280 : vector<16xf32> to vector<16x1xf32>
    %282 = vector.broadcast %281 : vector<16x1xf32> to vector<16x16xf32>
    %283 = arith.subf %279, %282 : vector<16x16xf32>
    %284 = math.exp %283 : vector<16x16xf32>
    %cst_184 = arith.constant dense<0.000000e+00> : vector<16xf32>
    %285 = vector.multi_reduction <add>, %284, %cst_184 [1] : vector<16x16xf32> to vector<16xf32>
    %286 = vector.shape_cast %285 : vector<16xf32> to vector<16x1xf32>
    %287 = tpu.reciprocal %286 {approx = true} : vector<16x1xf32> -> vector<16x1xf32>
    %288 = vector.broadcast %287 : vector<16x1xf32> to vector<16x16xf32>
    %289 = arith.mulf %284, %288 : vector<16x16xf32>
    %cst_185 = arith.constant dense<0.000000e+00> : vector<16x8xf32>
    %290 = tpu.matmul %289, %274, %cst_185 {dimension_numbers = #tpu.dot_dimension_numbers<[1], [0], [0], [1], [0, 0, 1, 1], [], []>} : vector<16x16xf32>, vector<16x8xf32>, vector<16x8xf32> -> vector<16x8xf32>
    %291 = arith.truncf %290 : vector<16x8xf32> to vector<16x8xbf16>
    %c0_186 = arith.constant 0 : index
    %c0_187 = arith.constant 0 : index
    %c0_188 = arith.constant 0 : index
    %292 = vector.load %arg28[%c0_186, %c0_187, %c0_188] : memref<4x8x32xbf16, #tpu.memory_space<vmem>>, vector<1x8x32xbf16>
    %293 = vector.shape_cast %292 : vector<1x8x32xbf16> to vector<8x32xbf16>
    %cst_189 = arith.constant dense<0.000000e+00> : vector<16x32xf32>
    %294 = tpu.matmul %291, %293, %cst_189 {dimension_numbers = #tpu.dot_dimension_numbers<[1], [0], [0], [1], [0, 0, 1, 1], [], []>} : vector<16x8xbf16>, vector<8x32xbf16>, vector<16x32xf32> -> vector<16x32xf32>
    %295 = arith.addf %253, %294 : vector<16x32xf32>
    %c1_190 = arith.constant 1 : index
    %c0_191 = arith.constant 0 : index
    %c0_192 = arith.constant 0 : index
    %296 = vector.load %arg22[%c1_190, %c0_191, %c0_192] : memref<4x32x8xbf16, #tpu.memory_space<vmem>>, vector<1x32x8xbf16>
    %297 = vector.shape_cast %296 : vector<1x32x8xbf16> to vector<32x8xbf16>
    %cst_193 = arith.constant dense<0.000000e+00> : vector<16x8xf32>
    %298 = tpu.matmul %252, %297, %cst_193 {dimension_numbers = #tpu.dot_dimension_numbers<[1], [0], [0], [1], [0, 0, 1, 1], [], []>} : vector<16x32xbf16>, vector<32x8xbf16>, vector<16x8xf32> -> vector<16x8xf32>
    %c1_194 = arith.constant 1 : index
    %c0_195 = arith.constant 0 : index
    %c0_196 = arith.constant 0 : index
    %299 = vector.load %arg25[%c1_194, %c0_195, %c0_196] : memref<4x1x8xf32, #tpu.memory_space<vmem>>, vector<1x1x8xf32>
    %300 = vector.shape_cast %299 : vector<1x1x8xf32> to vector<1x8xf32>
    %301 = vector.broadcast %300 : vector<1x8xf32> to vector<16x8xf32>
    %302 = arith.addf %298, %301 : vector<16x8xf32>
    %c1_197 = arith.constant 1 : index
    %c0_198 = arith.constant 0 : index
    %c0_199 = arith.constant 0 : index
    %303 = vector.load %arg23[%c1_197, %c0_198, %c0_199] : memref<4x32x8xbf16, #tpu.memory_space<vmem>>, vector<1x32x8xbf16>
    %304 = vector.shape_cast %303 : vector<1x32x8xbf16> to vector<32x8xbf16>
    %cst_200 = arith.constant dense<0.000000e+00> : vector<16x8xf32>
    %305 = tpu.matmul %252, %304, %cst_200 {dimension_numbers = #tpu.dot_dimension_numbers<[1], [0], [0], [1], [0, 0, 1, 1], [], []>} : vector<16x32xbf16>, vector<32x8xbf16>, vector<16x8xf32> -> vector<16x8xf32>
    %c1_201 = arith.constant 1 : index
    %c0_202 = arith.constant 0 : index
    %c0_203 = arith.constant 0 : index
    %306 = vector.load %arg26[%c1_201, %c0_202, %c0_203] : memref<4x1x8xf32, #tpu.memory_space<vmem>>, vector<1x1x8xf32>
    %307 = vector.shape_cast %306 : vector<1x1x8xf32> to vector<1x8xf32>
    %308 = vector.broadcast %307 : vector<1x8xf32> to vector<16x8xf32>
    %309 = arith.addf %305, %308 : vector<16x8xf32>
    %c1_204 = arith.constant 1 : index
    %c0_205 = arith.constant 0 : index
    %c0_206 = arith.constant 0 : index
    %310 = vector.load %arg24[%c1_204, %c0_205, %c0_206] : memref<4x32x8xbf16, #tpu.memory_space<vmem>>, vector<1x32x8xbf16>
    %311 = vector.shape_cast %310 : vector<1x32x8xbf16> to vector<32x8xbf16>
    %cst_207 = arith.constant dense<0.000000e+00> : vector<16x8xf32>
    %312 = tpu.matmul %252, %311, %cst_207 {dimension_numbers = #tpu.dot_dimension_numbers<[1], [0], [0], [1], [0, 0, 1, 1], [], []>} : vector<16x32xbf16>, vector<32x8xbf16>, vector<16x8xf32> -> vector<16x8xf32>
    %c1_208 = arith.constant 1 : index
    %c0_209 = arith.constant 0 : index
    %c0_210 = arith.constant 0 : index
    %313 = vector.load %arg27[%c1_208, %c0_209, %c0_210] : memref<4x1x8xf32, #tpu.memory_space<vmem>>, vector<1x1x8xf32>
    %314 = vector.shape_cast %313 : vector<1x1x8xf32> to vector<1x8xf32>
    %315 = vector.broadcast %314 : vector<1x8xf32> to vector<16x8xf32>
    %316 = arith.addf %312, %315 : vector<16x8xf32>
    %317 = tpu.transpose %309, [1, 0] : vector<16x8xf32> -> vector<8x16xf32>
    %cst_211 = arith.constant dense<0.000000e+00> : vector<16x16xf32>
    %318 = tpu.matmul %302, %317, %cst_211 {dimension_numbers = #tpu.dot_dimension_numbers<[1], [0], [0], [1], [0, 0, 1, 1], [], []>} : vector<16x8xf32>, vector<8x16xf32>, vector<16x16xf32> -> vector<16x16xf32>
    %cst_212 = arith.constant 0.353553385 : f32
    %319 = vector.broadcast %cst_212 : f32 to vector<16x16xf32>
    %320 = arith.mulf %318, %319 : vector<16x16xf32>
    %321 = arith.addf %320, %14 : vector<16x16xf32>
    %cst_213 = arith.constant dense<0xFF800000> : vector<16xf32>
    %322 = vector.multi_reduction <maximumf>, %321, %cst_213 [1] : vector<16x16xf32> to vector<16xf32>
    %323 = vector.shape_cast %322 : vector<16xf32> to vector<16x1xf32>
    %324 = vector.broadcast %323 : vector<16x1xf32> to vector<16x16xf32>
    %325 = arith.subf %321, %324 : vector<16x16xf32>
    %326 = math.exp %325 : vector<16x16xf32>
    %cst_214 = arith.constant dense<0.000000e+00> : vector<16xf32>
    %327 = vector.multi_reduction <add>, %326, %cst_214 [1] : vector<16x16xf32> to vector<16xf32>
    %328 = vector.shape_cast %327 : vector<16xf32> to vector<16x1xf32>
    %329 = tpu.reciprocal %328 {approx = true} : vector<16x1xf32> -> vector<16x1xf32>
    %330 = vector.broadcast %329 : vector<16x1xf32> to vector<16x16xf32>
    %331 = arith.mulf %326, %330 : vector<16x16xf32>
    %cst_215 = arith.constant dense<0.000000e+00> : vector<16x8xf32>
    %332 = tpu.matmul %331, %316, %cst_215 {dimension_numbers = #tpu.dot_dimension_numbers<[1], [0], [0], [1], [0, 0, 1, 1], [], []>} : vector<16x16xf32>, vector<16x8xf32>, vector<16x8xf32> -> vector<16x8xf32>
    %333 = arith.truncf %332 : vector<16x8xf32> to vector<16x8xbf16>
    %c1_216 = arith.constant 1 : index
    %c0_217 = arith.constant 0 : index
    %c0_218 = arith.constant 0 : index
    %334 = vector.load %arg28[%c1_216, %c0_217, %c0_218] : memref<4x8x32xbf16, #tpu.memory_space<vmem>>, vector<1x8x32xbf16>
    %335 = vector.shape_cast %334 : vector<1x8x32xbf16> to vector<8x32xbf16>
    %cst_219 = arith.constant dense<0.000000e+00> : vector<16x32xf32>
    %336 = tpu.matmul %333, %335, %cst_219 {dimension_numbers = #tpu.dot_dimension_numbers<[1], [0], [0], [1], [0, 0, 1, 1], [], []>} : vector<16x8xbf16>, vector<8x32xbf16>, vector<16x32xf32> -> vector<16x32xf32>
    %337 = arith.addf %295, %336 : vector<16x32xf32>
    %c2_220 = arith.constant 2 : index
    %c0_221 = arith.constant 0 : index
    %c0_222 = arith.constant 0 : index
    %338 = vector.load %arg22[%c2_220, %c0_221, %c0_222] : memref<4x32x8xbf16, #tpu.memory_space<vmem>>, vector<1x32x8xbf16>
    %339 = vector.shape_cast %338 : vector<1x32x8xbf16> to vector<32x8xbf16>
    %cst_223 = arith.constant dense<0.000000e+00> : vector<16x8xf32>
    %340 = tpu.matmul %252, %339, %cst_223 {dimension_numbers = #tpu.dot_dimension_numbers<[1], [0], [0], [1], [0, 0, 1, 1], [], []>} : vector<16x32xbf16>, vector<32x8xbf16>, vector<16x8xf32> -> vector<16x8xf32>
    %c2_224 = arith.constant 2 : index
    %c0_225 = arith.constant 0 : index
    %c0_226 = arith.constant 0 : index
    %341 = vector.load %arg25[%c2_224, %c0_225, %c0_226] : memref<4x1x8xf32, #tpu.memory_space<vmem>>, vector<1x1x8xf32>
    %342 = vector.shape_cast %341 : vector<1x1x8xf32> to vector<1x8xf32>
    %343 = vector.broadcast %342 : vector<1x8xf32> to vector<16x8xf32>
    %344 = arith.addf %340, %343 : vector<16x8xf32>
    %c2_227 = arith.constant 2 : index
    %c0_228 = arith.constant 0 : index
    %c0_229 = arith.constant 0 : index
    %345 = vector.load %arg23[%c2_227, %c0_228, %c0_229] : memref<4x32x8xbf16, #tpu.memory_space<vmem>>, vector<1x32x8xbf16>
    %346 = vector.shape_cast %345 : vector<1x32x8xbf16> to vector<32x8xbf16>
    %cst_230 = arith.constant dense<0.000000e+00> : vector<16x8xf32>
    %347 = tpu.matmul %252, %346, %cst_230 {dimension_numbers = #tpu.dot_dimension_numbers<[1], [0], [0], [1], [0, 0, 1, 1], [], []>} : vector<16x32xbf16>, vector<32x8xbf16>, vector<16x8xf32> -> vector<16x8xf32>
    %c2_231 = arith.constant 2 : index
    %c0_232 = arith.constant 0 : index
    %c0_233 = arith.constant 0 : index
    %348 = vector.load %arg26[%c2_231, %c0_232, %c0_233] : memref<4x1x8xf32, #tpu.memory_space<vmem>>, vector<1x1x8xf32>
    %349 = vector.shape_cast %348 : vector<1x1x8xf32> to vector<1x8xf32>
    %350 = vector.broadcast %349 : vector<1x8xf32> to vector<16x8xf32>
    %351 = arith.addf %347, %350 : vector<16x8xf32>
    %c2_234 = arith.constant 2 : index
    %c0_235 = arith.constant 0 : index
    %c0_236 = arith.constant 0 : index
    %352 = vector.load %arg24[%c2_234, %c0_235, %c0_236] : memref<4x32x8xbf16, #tpu.memory_space<vmem>>, vector<1x32x8xbf16>
    %353 = vector.shape_cast %352 : vector<1x32x8xbf16> to vector<32x8xbf16>
    %cst_237 = arith.constant dense<0.000000e+00> : vector<16x8xf32>
    %354 = tpu.matmul %252, %353, %cst_237 {dimension_numbers = #tpu.dot_dimension_numbers<[1], [0], [0], [1], [0, 0, 1, 1], [], []>} : vector<16x32xbf16>, vector<32x8xbf16>, vector<16x8xf32> -> vector<16x8xf32>
    %c2_238 = arith.constant 2 : index
    %c0_239 = arith.constant 0 : index
    %c0_240 = arith.constant 0 : index
    %355 = vector.load %arg27[%c2_238, %c0_239, %c0_240] : memref<4x1x8xf32, #tpu.memory_space<vmem>>, vector<1x1x8xf32>
    %356 = vector.shape_cast %355 : vector<1x1x8xf32> to vector<1x8xf32>
    %357 = vector.broadcast %356 : vector<1x8xf32> to vector<16x8xf32>
    %358 = arith.addf %354, %357 : vector<16x8xf32>
    %359 = tpu.transpose %351, [1, 0] : vector<16x8xf32> -> vector<8x16xf32>
    %cst_241 = arith.constant dense<0.000000e+00> : vector<16x16xf32>
    %360 = tpu.matmul %344, %359, %cst_241 {dimension_numbers = #tpu.dot_dimension_numbers<[1], [0], [0], [1], [0, 0, 1, 1], [], []>} : vector<16x8xf32>, vector<8x16xf32>, vector<16x16xf32> -> vector<16x16xf32>
    %cst_242 = arith.constant 0.353553385 : f32
    %361 = vector.broadcast %cst_242 : f32 to vector<16x16xf32>
    %362 = arith.mulf %360, %361 : vector<16x16xf32>
    %363 = arith.addf %362, %14 : vector<16x16xf32>
    %cst_243 = arith.constant dense<0xFF800000> : vector<16xf32>
    %364 = vector.multi_reduction <maximumf>, %363, %cst_243 [1] : vector<16x16xf32> to vector<16xf32>
    %365 = vector.shape_cast %364 : vector<16xf32> to vector<16x1xf32>
    %366 = vector.broadcast %365 : vector<16x1xf32> to vector<16x16xf32>
    %367 = arith.subf %363, %366 : vector<16x16xf32>
    %368 = math.exp %367 : vector<16x16xf32>
    %cst_244 = arith.constant dense<0.000000e+00> : vector<16xf32>
    %369 = vector.multi_reduction <add>, %368, %cst_244 [1] : vector<16x16xf32> to vector<16xf32>
    %370 = vector.shape_cast %369 : vector<16xf32> to vector<16x1xf32>
    %371 = tpu.reciprocal %370 {approx = true} : vector<16x1xf32> -> vector<16x1xf32>
    %372 = vector.broadcast %371 : vector<16x1xf32> to vector<16x16xf32>
    %373 = arith.mulf %368, %372 : vector<16x16xf32>
    %cst_245 = arith.constant dense<0.000000e+00> : vector<16x8xf32>
    %374 = tpu.matmul %373, %358, %cst_245 {dimension_numbers = #tpu.dot_dimension_numbers<[1], [0], [0], [1], [0, 0, 1, 1], [], []>} : vector<16x16xf32>, vector<16x8xf32>, vector<16x8xf32> -> vector<16x8xf32>
    %375 = arith.truncf %374 : vector<16x8xf32> to vector<16x8xbf16>
    %c2_246 = arith.constant 2 : index
    %c0_247 = arith.constant 0 : index
    %c0_248 = arith.constant 0 : index
    %376 = vector.load %arg28[%c2_246, %c0_247, %c0_248] : memref<4x8x32xbf16, #tpu.memory_space<vmem>>, vector<1x8x32xbf16>
    %377 = vector.shape_cast %376 : vector<1x8x32xbf16> to vector<8x32xbf16>
    %cst_249 = arith.constant dense<0.000000e+00> : vector<16x32xf32>
    %378 = tpu.matmul %375, %377, %cst_249 {dimension_numbers = #tpu.dot_dimension_numbers<[1], [0], [0], [1], [0, 0, 1, 1], [], []>} : vector<16x8xbf16>, vector<8x32xbf16>, vector<16x32xf32> -> vector<16x32xf32>
    %379 = arith.addf %337, %378 : vector<16x32xf32>
    %c3_250 = arith.constant 3 : index
    %c0_251 = arith.constant 0 : index
    %c0_252 = arith.constant 0 : index
    %380 = vector.load %arg22[%c3_250, %c0_251, %c0_252] : memref<4x32x8xbf16, #tpu.memory_space<vmem>>, vector<1x32x8xbf16>
    %381 = vector.shape_cast %380 : vector<1x32x8xbf16> to vector<32x8xbf16>
    %cst_253 = arith.constant dense<0.000000e+00> : vector<16x8xf32>
    %382 = tpu.matmul %252, %381, %cst_253 {dimension_numbers = #tpu.dot_dimension_numbers<[1], [0], [0], [1], [0, 0, 1, 1], [], []>} : vector<16x32xbf16>, vector<32x8xbf16>, vector<16x8xf32> -> vector<16x8xf32>
    %c3_254 = arith.constant 3 : index
    %c0_255 = arith.constant 0 : index
    %c0_256 = arith.constant 0 : index
    %383 = vector.load %arg25[%c3_254, %c0_255, %c0_256] : memref<4x1x8xf32, #tpu.memory_space<vmem>>, vector<1x1x8xf32>
    %384 = vector.shape_cast %383 : vector<1x1x8xf32> to vector<1x8xf32>
    %385 = vector.broadcast %384 : vector<1x8xf32> to vector<16x8xf32>
    %386 = arith.addf %382, %385 : vector<16x8xf32>
    %c3_257 = arith.constant 3 : index
    %c0_258 = arith.constant 0 : index
    %c0_259 = arith.constant 0 : index
    %387 = vector.load %arg23[%c3_257, %c0_258, %c0_259] : memref<4x32x8xbf16, #tpu.memory_space<vmem>>, vector<1x32x8xbf16>
    %388 = vector.shape_cast %387 : vector<1x32x8xbf16> to vector<32x8xbf16>
    %cst_260 = arith.constant dense<0.000000e+00> : vector<16x8xf32>
    %389 = tpu.matmul %252, %388, %cst_260 {dimension_numbers = #tpu.dot_dimension_numbers<[1], [0], [0], [1], [0, 0, 1, 1], [], []>} : vector<16x32xbf16>, vector<32x8xbf16>, vector<16x8xf32> -> vector<16x8xf32>
    %c3_261 = arith.constant 3 : index
    %c0_262 = arith.constant 0 : index
    %c0_263 = arith.constant 0 : index
    %390 = vector.load %arg26[%c3_261, %c0_262, %c0_263] : memref<4x1x8xf32, #tpu.memory_space<vmem>>, vector<1x1x8xf32>
    %391 = vector.shape_cast %390 : vector<1x1x8xf32> to vector<1x8xf32>
    %392 = vector.broadcast %391 : vector<1x8xf32> to vector<16x8xf32>
    %393 = arith.addf %389, %392 : vector<16x8xf32>
    %c3_264 = arith.constant 3 : index
    %c0_265 = arith.constant 0 : index
    %c0_266 = arith.constant 0 : index
    %394 = vector.load %arg24[%c3_264, %c0_265, %c0_266] : memref<4x32x8xbf16, #tpu.memory_space<vmem>>, vector<1x32x8xbf16>
    %395 = vector.shape_cast %394 : vector<1x32x8xbf16> to vector<32x8xbf16>
    %cst_267 = arith.constant dense<0.000000e+00> : vector<16x8xf32>
    %396 = tpu.matmul %252, %395, %cst_267 {dimension_numbers = #tpu.dot_dimension_numbers<[1], [0], [0], [1], [0, 0, 1, 1], [], []>} : vector<16x32xbf16>, vector<32x8xbf16>, vector<16x8xf32> -> vector<16x8xf32>
    %c3_268 = arith.constant 3 : index
    %c0_269 = arith.constant 0 : index
    %c0_270 = arith.constant 0 : index
    %397 = vector.load %arg27[%c3_268, %c0_269, %c0_270] : memref<4x1x8xf32, #tpu.memory_space<vmem>>, vector<1x1x8xf32>
    %398 = vector.shape_cast %397 : vector<1x1x8xf32> to vector<1x8xf32>
    %399 = vector.broadcast %398 : vector<1x8xf32> to vector<16x8xf32>
    %400 = arith.addf %396, %399 : vector<16x8xf32>
    %401 = tpu.transpose %393, [1, 0] : vector<16x8xf32> -> vector<8x16xf32>
    %cst_271 = arith.constant dense<0.000000e+00> : vector<16x16xf32>
    %402 = tpu.matmul %386, %401, %cst_271 {dimension_numbers = #tpu.dot_dimension_numbers<[1], [0], [0], [1], [0, 0, 1, 1], [], []>} : vector<16x8xf32>, vector<8x16xf32>, vector<16x16xf32> -> vector<16x16xf32>
    %cst_272 = arith.constant 0.353553385 : f32
    %403 = vector.broadcast %cst_272 : f32 to vector<16x16xf32>
    %404 = arith.mulf %402, %403 : vector<16x16xf32>
    %405 = arith.addf %404, %14 : vector<16x16xf32>
    %cst_273 = arith.constant dense<0xFF800000> : vector<16xf32>
    %406 = vector.multi_reduction <maximumf>, %405, %cst_273 [1] : vector<16x16xf32> to vector<16xf32>
    %407 = vector.shape_cast %406 : vector<16xf32> to vector<16x1xf32>
    %408 = vector.broadcast %407 : vector<16x1xf32> to vector<16x16xf32>
    %409 = arith.subf %405, %408 : vector<16x16xf32>
    %410 = math.exp %409 : vector<16x16xf32>
    %cst_274 = arith.constant dense<0.000000e+00> : vector<16xf32>
    %411 = vector.multi_reduction <add>, %410, %cst_274 [1] : vector<16x16xf32> to vector<16xf32>
    %412 = vector.shape_cast %411 : vector<16xf32> to vector<16x1xf32>
    %413 = tpu.reciprocal %412 {approx = true} : vector<16x1xf32> -> vector<16x1xf32>
    %414 = vector.broadcast %413 : vector<16x1xf32> to vector<16x16xf32>
    %415 = arith.mulf %410, %414 : vector<16x16xf32>
    %cst_275 = arith.constant dense<0.000000e+00> : vector<16x8xf32>
    %416 = tpu.matmul %415, %400, %cst_275 {dimension_numbers = #tpu.dot_dimension_numbers<[1], [0], [0], [1], [0, 0, 1, 1], [], []>} : vector<16x16xf32>, vector<16x8xf32>, vector<16x8xf32> -> vector<16x8xf32>
    %417 = arith.truncf %416 : vector<16x8xf32> to vector<16x8xbf16>
    %c3_276 = arith.constant 3 : index
    %c0_277 = arith.constant 0 : index
    %c0_278 = arith.constant 0 : index
    %418 = vector.load %arg28[%c3_276, %c0_277, %c0_278] : memref<4x8x32xbf16, #tpu.memory_space<vmem>>, vector<1x8x32xbf16>
    %419 = vector.shape_cast %418 : vector<1x8x32xbf16> to vector<8x32xbf16>
    %cst_279 = arith.constant dense<0.000000e+00> : vector<16x32xf32>
    %420 = tpu.matmul %417, %419, %cst_279 {dimension_numbers = #tpu.dot_dimension_numbers<[1], [0], [0], [1], [0, 0, 1, 1], [], []>} : vector<16x8xbf16>, vector<8x32xbf16>, vector<16x32xf32> -> vector<16x32xf32>
    %421 = arith.addf %379, %420 : vector<16x32xf32>
    %c0_280 = arith.constant 0 : index
    %c0_281 = arith.constant 0 : index
    %422 = vector.load %arg29[%c0_280, %c0_281] : memref<1x32xf32, #tpu.memory_space<vmem>>, vector<1x32xf32>
    %423 = vector.broadcast %422 : vector<1x32xf32> to vector<16x32xf32>
    %424 = arith.addf %421, %423 : vector<16x32xf32>
    %425 = arith.addf %251, %424 : vector<16x32xf32>
    %c0_282 = arith.constant 0 : index
    %c0_283 = arith.constant 0 : index
    %426 = vector.load %arg30[%c0_282, %c0_283] : memref<1x32xf32, #tpu.memory_space<vmem>>, vector<1x32xf32>
    %c0_284 = arith.constant 0 : index
    %c0_285 = arith.constant 0 : index
    %427 = vector.load %arg31[%c0_284, %c0_285] : memref<1x32xf32, #tpu.memory_space<vmem>>, vector<1x32xf32>
    %cst_286 = arith.constant dense<0.000000e+00> : vector<16xf32>
    %428 = vector.multi_reduction <add>, %425, %cst_286 [1] : vector<16x32xf32> to vector<16xf32>
    %429 = vector.shape_cast %428 : vector<16xf32> to vector<16x1xf32>
    %cst_287 = arith.constant 3.200000e+01 : f32
    %430 = vector.broadcast %cst_287 : f32 to vector<16x1xf32>
    %431 = arith.divf %429, %430 : vector<16x1xf32>
    %432 = vector.broadcast %431 : vector<16x1xf32> to vector<16x32xf32>
    %433 = arith.subf %425, %432 : vector<16x32xf32>
    %434 = arith.mulf %433, %433 : vector<16x32xf32>
    %cst_288 = arith.constant dense<0.000000e+00> : vector<16xf32>
    %435 = vector.multi_reduction <add>, %434, %cst_288 [1] : vector<16x32xf32> to vector<16xf32>
    %436 = vector.shape_cast %435 : vector<16xf32> to vector<16x1xf32>
    %cst_289 = arith.constant 3.200000e+01 : f32
    %437 = vector.broadcast %cst_289 : f32 to vector<16x1xf32>
    %438 = arith.divf %436, %437 : vector<16x1xf32>
    %439 = vector.broadcast %431 : vector<16x1xf32> to vector<16x32xf32>
    %440 = arith.subf %425, %439 : vector<16x32xf32>
    %cst_290 = arith.constant 9.99999974E-6 : f32
    %441 = vector.broadcast %cst_290 : f32 to vector<16x1xf32>
    %442 = arith.addf %438, %441 : vector<16x1xf32>
    %443 = math.rsqrt %442 : vector<16x1xf32>
    %444 = vector.broadcast %443 : vector<16x1xf32> to vector<16x32xf32>
    %445 = arith.mulf %440, %444 : vector<16x32xf32>
    %446 = vector.broadcast %426 : vector<1x32xf32> to vector<16x32xf32>
    %447 = arith.mulf %445, %446 : vector<16x32xf32>
    %448 = vector.broadcast %427 : vector<1x32xf32> to vector<16x32xf32>
    %449 = arith.addf %447, %448 : vector<16x32xf32>
    %450 = arith.truncf %449 : vector<16x32xf32> to vector<16x32xbf16>
    %c0_291 = arith.constant 0 : index
    %c0_292 = arith.constant 0 : index
    %451 = vector.load %arg32[%c0_291, %c0_292] : memref<32x64xbf16, #tpu.memory_space<vmem>>, vector<32x64xbf16>
    %cst_293 = arith.constant dense<0.000000e+00> : vector<16x64xf32>
    %452 = tpu.matmul %450, %451, %cst_293 {dimension_numbers = #tpu.dot_dimension_numbers<[1], [0], [0], [1], [0, 0, 1, 1], [], []>} : vector<16x32xbf16>, vector<32x64xbf16>, vector<16x64xf32> -> vector<16x64xf32>
    %c0_294 = arith.constant 0 : index
    %c0_295 = arith.constant 0 : index
    %453 = vector.load %arg33[%c0_294, %c0_295] : memref<1x64xf32, #tpu.memory_space<vmem>>, vector<1x64xf32>
    %454 = vector.broadcast %453 : vector<1x64xf32> to vector<16x64xf32>
    %455 = arith.addf %452, %454 : vector<16x64xf32>
    %cst_296 = arith.constant 0.000000e+00 : f32
    %456 = vector.broadcast %cst_296 : f32 to vector<16x64xf32>
    %457 = arith.maximumf %455, %456 : vector<16x64xf32>
    %458 = arith.truncf %457 : vector<16x64xf32> to vector<16x64xbf16>
    %c0_297 = arith.constant 0 : index
    %c0_298 = arith.constant 0 : index
    %459 = vector.load %arg34[%c0_297, %c0_298] : memref<64x32xbf16, #tpu.memory_space<vmem>>, vector<64x32xbf16>
    %cst_299 = arith.constant dense<0.000000e+00> : vector<16x32xf32>
    %460 = tpu.matmul %458, %459, %cst_299 {dimension_numbers = #tpu.dot_dimension_numbers<[1], [0], [0], [1], [0, 0, 1, 1], [], []>} : vector<16x64xbf16>, vector<64x32xbf16>, vector<16x32xf32> -> vector<16x32xf32>
    %c0_300 = arith.constant 0 : index
    %c0_301 = arith.constant 0 : index
    %461 = vector.load %arg35[%c0_300, %c0_301] : memref<1x32xf32, #tpu.memory_space<vmem>>, vector<1x32xf32>
    %462 = vector.broadcast %461 : vector<1x32xf32> to vector<16x32xf32>
    %463 = arith.addf %460, %462 : vector<16x32xf32>
    %464 = arith.addf %449, %463 : vector<16x32xf32>
    %c0_302 = arith.constant 0 : index
    %c0_303 = arith.constant 0 : index
    %465 = vector.load %arg36[%c0_302, %c0_303] : memref<1x32xf32, #tpu.memory_space<vmem>>, vector<1x32xf32>
    %c0_304 = arith.constant 0 : index
    %c0_305 = arith.constant 0 : index
    %466 = vector.load %arg37[%c0_304, %c0_305] : memref<1x32xf32, #tpu.memory_space<vmem>>, vector<1x32xf32>
    %cst_306 = arith.constant dense<0.000000e+00> : vector<16xf32>
    %467 = vector.multi_reduction <add>, %464, %cst_306 [1] : vector<16x32xf32> to vector<16xf32>
    %468 = vector.shape_cast %467 : vector<16xf32> to vector<16x1xf32>
    %cst_307 = arith.constant 3.200000e+01 : f32
    %469 = vector.broadcast %cst_307 : f32 to vector<16x1xf32>
    %470 = arith.divf %468, %469 : vector<16x1xf32>
    %471 = vector.broadcast %470 : vector<16x1xf32> to vector<16x32xf32>
    %472 = arith.subf %464, %471 : vector<16x32xf32>
    %473 = arith.mulf %472, %472 : vector<16x32xf32>
    %cst_308 = arith.constant dense<0.000000e+00> : vector<16xf32>
    %474 = vector.multi_reduction <add>, %473, %cst_308 [1] : vector<16x32xf32> to vector<16xf32>
    %475 = vector.shape_cast %474 : vector<16xf32> to vector<16x1xf32>
    %cst_309 = arith.constant 3.200000e+01 : f32
    %476 = vector.broadcast %cst_309 : f32 to vector<16x1xf32>
    %477 = arith.divf %475, %476 : vector<16x1xf32>
    %478 = vector.broadcast %470 : vector<16x1xf32> to vector<16x32xf32>
    %479 = arith.subf %464, %478 : vector<16x32xf32>
    %cst_310 = arith.constant 9.99999974E-6 : f32
    %480 = vector.broadcast %cst_310 : f32 to vector<16x1xf32>
    %481 = arith.addf %477, %480 : vector<16x1xf32>
    %482 = math.rsqrt %481 : vector<16x1xf32>
    %483 = vector.broadcast %482 : vector<16x1xf32> to vector<16x32xf32>
    %484 = arith.mulf %479, %483 : vector<16x32xf32>
    %485 = vector.broadcast %465 : vector<1x32xf32> to vector<16x32xf32>
    %486 = arith.mulf %484, %485 : vector<16x32xf32>
    %487 = vector.broadcast %466 : vector<1x32xf32> to vector<16x32xf32>
    %488 = arith.addf %486, %487 : vector<16x32xf32>
    %489 = arith.truncf %488 : vector<16x32xf32> to vector<16x32xbf16>
    %c0_311 = arith.constant 0 : index
    %c0_312 = arith.constant 0 : index
    %490 = vector.load %arg4[%c0_311, %c0_312] : memref<32x128xbf16, #tpu.memory_space<vmem>>, vector<32x128xbf16>
    %cst_313 = arith.constant dense<0.000000e+00> : vector<16x128xf32>
    %491 = tpu.matmul %489, %490, %cst_313 {dimension_numbers = #tpu.dot_dimension_numbers<[1], [0], [0], [1], [0, 0, 1, 1], [], []>} : vector<16x32xbf16>, vector<32x128xbf16>, vector<16x128xf32> -> vector<16x128xf32>
    %c0_314 = arith.constant 0 : index
    %c0_315 = arith.constant 0 : index
    %492 = vector.load %arg5[%c0_314, %c0_315] : memref<1x128xf32, #tpu.memory_space<vmem>>, vector<1x128xf32>
    %493 = vector.broadcast %492 : vector<1x128xf32> to vector<16x128xf32>
    %494 = arith.addf %491, %493 : vector<16x128xf32>
    %c0_316 = arith.constant 0 : index
    %c0_317 = arith.constant 0 : index
    %495 = vector.load %arg38[%c0_316, %c0_317] : memref<16x128xf32, #tpu.memory_space<vmem>>, vector<16x128xf32>
    tpu.vector_store %arg38[%c0_316, %c0_317], %494 {strides = array<i32>} : memref<16x128xf32, #tpu.memory_space<vmem>>, vector<16x128xf32>,
    return
  }
}

</mosaic_0001>

<bundles_post_ra>
// kernel: tile.8
= control target key start
LH: loop header
LB: loop body
LE: loop exit
PB: predicated region body
PF: predicated region fallthrough
CT: control target
= control target key end

     0   :  { %s154_s0 = inlined_call_operand.vmem [shape: f32[8,8], index: 0, kind: input, shape index: {}]   ;;  %s155_s1 = inlined_call_operand.vmem [shape: f32[2,8,2,8], index: 1, kind: output, shape index: {}]  }
   0x1   :  { %v4_v0 = vld [vmem:[%s154_s0] ss:$0 sm:$0xff]  ;;  %v51_v1 = vld [vmem:[%s154_s0 + $0x1] ss:$0 sm:$0xff]  ;;  %v54_v2 = vld [vmem:[%s154_s0 + $0x2] ss:$0 sm:$0xff] }
   0x2   :  { %5 = vst [vmem:[%s155_s1] sm:$0x3] %v4_v0  ;;  %50 = vst [vmem:[%s155_s1 + $0x10] sm:$0x3] %v4_v0  ;;  %v57_v3 = vld [vmem:[%s154_s0 + $0x3] ss:$0 sm:$0xff] }
   0x3   :  { %52 = vst [vmem:[%s155_s1 + $0x2] sm:$0x3] %v51_v1  ;;  %53 = vst [vmem:[%s155_s1 + $0x12] sm:$0x3] %v51_v1  ;;  %v60_v4 = vld [vmem:[%s154_s0 + $0x4] ss:$0 sm:$0xff] }
   0x4   :  { %55 = vst [vmem:[%s155_s1 + $0x4] sm:$0x3] %v54_v2  ;;  %56 = vst [vmem:[%s155_s1 + $0x14] sm:$0x3] %v54_v2  ;;  %v63_v5 = vld [vmem:[%s154_s0 + $0x5] ss:$0 sm:$0xff] }
   0x5   :  { %58 = vst [vmem:[%s155_s1 + $0x6] sm:$0x3] %v57_v3  ;;  %59 = vst [vmem:[%s155_s1 + $0x16] sm:$0x3] %v57_v3  ;;  %v66_v6 = vld [vmem:[%s154_s0 + $0x6] ss:$0 sm:$0xff] }
   0x6   :  { %61 = vst [vmem:[%s155_s1 + $0x8] sm:$0x3] %v60_v4  ;;  %62 = vst [vmem:[%s155_s1 + $0x18] sm:$0x3] %v60_v4  ;;  %v69_v7 = vld [vmem:[%s154_s0 + $0x7] ss:$0 sm:$0xff] }
   0x7   :  { %64 = vst [vmem:[%s155_s1 + $0xa] sm:$0x3] %v63_v5  ;;  %65 = vst [vmem:[%s155_s1 + $0x1a] sm:$0x3] %v63_v5 }
   0x8   :  { %67 = vst [vmem:[%s155_s1 + $0xc] sm:$0x3] %v66_v6  ;;  %68 = vst [vmem:[%s155_s1 + $0x1c] sm:$0x3] %v66_v6 }
   0x9   :  { %70 = vst [vmem:[%s155_s1 + $0xe] sm:$0x3] %v69_v7  ;;  %71 = vst [vmem:[%s155_s1 + $0x1e] sm:$0x3] %v69_v7 }

// kernel: tile.9
= control target key start
LH: loop header
LB: loop body
LE: loop exit
PB: predicated region body
PF: predicated region fallthrough
CT: control target
= control target key end

     0   :  { %vm82_vm0 = vcmask 1047556   ;;  %vm84_vm1 = vcmask 64512   ;;  %vm103_vm2 = vcmask 130112   ;;  %s225_s0 = inlined_call_operand.vmem [shape: f32[2,8,2,8], index: 0, kind: input, shape index: {}]   ;;  %s226_s1 = inlined_call_operand.vmem [shape: f32[16,16], index: 1, kind: output, shape index: {}]  }
   0x1   :  { %v138_v0 = vld [vmem:[%s225_s0 + $0xe] sm:$0x3]  ;;  %v139_v1 = vld [vmem:[%s225_s0 + $0xc] sm:$0x3]  ;;  %v140_v2 = vld [vmem:[%s225_s0 + $0xa] sm:$0x3] }
   0x2   :  { %48 = vst [vmem:[#allocation0 + $0x38] sm:$0x3] %v138_v0  ;;  %53 = vst [vmem:[#allocation0 + $0x30] sm:$0x3] %v139_v1  ;;  %v141_v3 = vld [vmem:[%s225_s0 + $0x8] sm:$0x3] }
   0x3   :  { %58 = vst [vmem:[#allocation0 + $0x28] sm:$0x3] %v140_v2  ;;  %v142_v4 = vld [vmem:[%s225_s0 + $0x6] sm:$0x3]  ;;  %v143_v5 = vld [vmem:[%s225_s0 + $0x4] sm:$0x3] }
   0x4   :  { %63 = vst [vmem:[#allocation0 + $0x20] sm:$0x3] %v141_v3  ;;  %68 = vst [vmem:[#allocation0 + $0x18] sm:$0x3] %v142_v4  ;;  %v144_v6 = vld [vmem:[%s225_s0 + $0x2] sm:$0x3] }
   0x5   :  { %73 = vst [vmem:[#allocation0 + $0x10] sm:$0x3] %v143_v5  ;;  %v78_v7 = vld [vmem:[%s225_s0] sm:$0x3]  ;;  %77 = vst [vmem:[#allocation0 + $0x8] sm:$0x3] %v144_v6 }
   0x6   :  { %79 = vst [vmem:[#allocation0] sm:$0x3] %v78_v7  ;;  %v130_v8 = vld [vmem:[%s225_s0 + $0x1e] sm:$0x3]  ;;  %v131_v9 = vld [vmem:[%s225_s0 + $0x1c] sm:$0x3] }
   0x7   :  { %v132_v10 = vld [vmem:[%s225_s0 + $0x1a] sm:$0x3]  ;;  %8 = vst [vmem:[#allocation0 + $0x78] sm:$0x3] %v130_v8  ;;  %13 = vst [vmem:[#allocation0 + $0x70] sm:$0x3] %v131_v9 }
   0x8   :  { %18 = vst [vmem:[#allocation0 + $0x68] sm:$0x3] %v132_v10  ;;  %v133_v11 = vld [vmem:[%s225_s0 + $0x18] sm:$0x3]  ;;  %v134_v12 = vld [vmem:[%s225_s0 + $0x16] sm:$0x3] }
   0x9   :  { %v135_v13 = vld [vmem:[%s225_s0 + $0x14] sm:$0x3]  ;;  %23 = vst [vmem:[#allocation0 + $0x60] sm:$0x3] %v133_v11  ;;  %28 = vst [vmem:[#allocation0 + $0x58] sm:$0x3] %v134_v12 }
   0xa   :  { %33 = vst [vmem:[#allocation0 + $0x50] sm:$0x3] %v135_v13  ;;  %v136_v14 = vld [vmem:[%s225_s0 + $0x12] sm:$0x3]  ;;  %v137_v15 = vld [vmem:[%s225_s0 + $0x10] sm:$0x3] }
   0xb   :  { %38 = vst [vmem:[#allocation0 + $0x48] sm:$0x3] %v136_v14  ;;  %43 = vst [vmem:[#allocation0 + $0x40] sm:$0x3] %v137_v15  ;;  %s148_s0 = smov 8  }
   0xc   :  { %v98_v16 = vld [vmem:[#allocation0 + $0x1] ss:$8 sm:$0xf0]   ;;  %v81_v17 = vld [vmem:[#allocation0] ss:$8 sm:$0xf0]  }
   0xd   :  { %v96_v18 = vld [vmem:[#allocation0 + $0x1] ss:$8 sm:$0xf]   ;;  %v80_v19 = vld [vmem:[#allocation0] ss:$8 sm:$0xf]  }
   0xe   :  { %v100_v20 = vsel %vm82_vm0, %v98_v16, %v96_v18  ;;  %v83_v21 = vsel %vm82_vm0, %v81_v17, %v80_v19 }
   0xf   :  { %101 = vrot.lane.b32.xlu0 %v100_v20, %s148_s0  ;;  %85 = vst.msk [vmem:[%s226_s1] sm:$0xff] %vm84_vm1, %v83_v21  }
  0x10   :  { %v108_v22 = vld [vmem:[#allocation0 + $0x41] ss:$8 sm:$0xf0]   ;;  %v89_v23 = vld [vmem:[#allocation0 + $0x40] ss:$8 sm:$0xf0]  }
  0x12   :  { %v106_v24 = vld [vmem:[#allocation0 + $0x41] ss:$8 sm:$0xf]   ;;  %v87_v25 = vld [vmem:[#allocation0 + $0x40] ss:$8 sm:$0xf]  }
  0x13   :  { %v110_v26 = vsel %vm82_vm0, %v108_v22, %v106_v24  ;;  %v91_v27 = vsel %vm82_vm0, %v89_v23, %v87_v25 }
  0x14   :  { %145 = vst.msk [vmem:[%s226_s1 + $0x8] sm:$0xff] %vm84_vm1, %v91_v27   ;;  %111 = vrot.lane.b32.xlu0 %v110_v26, %s148_s0 }
  0x81   :  { %v102_v28 = vpop.permute.xlu0 %101  }
  0x82   :  { %104 = vst.msk [vmem:[%s226_s1] sm:$0xff] %vm103_vm2, %v102_v28  }
  0x86   :  { %v112_v29 = vpop.permute.xlu0 %111  }
  0x87   :  { %146 = vst.msk [vmem:[%s226_s1 + $0x8] sm:$0xff] %vm103_vm2, %v112_v29  }

// kernel: transformer_forward.1
= control target key start
LH: loop header
LB: loop body
LE: loop exit
PB: predicated region body
PF: predicated region fallthrough
CT: control target
= control target key end

     0   :  { %v5570_v0 = vmov 0   ;;  %v5571_v1 = vmov 0.0   ;;  %s5572_s6 = smov 1   ;;  %vm5573_vm0 = vmmov 0   ;;  %vm206_vm1 = vcmask 1040384   ;;  %s5574_s10 = smov 6   ;;  %s6282_s0 = inlined_call_operand.smem [shape: u32[39], index: -1, kind: input, shape index: {}] }
   0x1   :  { %5421 = vset.pattern.permute.xlu0 %v5570_v0  ;;  %s1_s5 = sld [smem:[%s6282_s0]]   ;;  %4888 = vmatprep.subr.bf16.mxu0 %v5571_v1  ;;  %v161_v9 = vlaneseq  ;;  %vm202_vm4 = vcmask 408576   ;;  %s5575_s14 = smov 8   ;;  %vm283_vm5 = vcmask 261120   ;;  %vm456_vm6 = vcmask 64512  }
   0x2   :  { %s4387_s9 = sld [smem:[%s6282_s0 + %s5572_s6]]   ;;  %4900 = vmatprep.subr.bf16.mxu1 %v5571_v1  ;;  %4896 = vmatprep.mubr.msk.bf16.mxu0 %vm5573_vm0, %v5571_v1  ;;  %s5576_s18 = smov 7   ;;  %vm5725_vm7 = vmpackc.low %vm456_vm6, %vm456_vm6  ;;  %vm548_vm8 = vcmask 130048   ;;  %vm1052_vm9 = vcmask 1043456   ;;  %vm2198_vm10 = vcmask 523264  }
   0x3   :  { %4904 = vmatprep.mubr.msk.bf16.mxu1 %vm5573_vm0, %v5571_v1  ;;  %v162_v10 = vand.u32 127, %v161_v9  ;;  %s5639_s13 = sld [smem:[%s6282_s0 + %s5574_s10]]   ;;  %s5577_s22 = smov 2  }
   0x4   :  { %s5644_s17 = sld [smem:[%s6282_s0 + %s5575_s14]]   ;;  %s5578_s26 = smov 9  }
   0x5   :  { %s5651_s21 = sld [smem:[%s6282_s0 + %s5576_s18]]   ;;  %s5579_s30 = smov 11  }
   0x6   :  { %s4388_s25 = sld [smem:[%s6282_s0 + %s5577_s22]]   ;;  %s5580_s4 = smov 10  }
   0x7   :  { %v159_v2 = vld [vmem:[%s1_s5] sm:$0xff]  ;;  %v160_v4 = vld [vmem:[%s1_s5 + $0x8] sm:$0xff]  ;;  %s5699_s29 = sld [smem:[%s6282_s0 + %s5578_s26]]   ;;  %s5581_s8 = smov 3  }
   0x8   :  { %164 = vperm.xlu0 %5421, %v159_v2   ;;  %v5422_v3 = vld [vmem:[%s4387_s9] sm:$0xff]   ;;  %v5423_v5 = vld [vmem:[%s4387_s9 + $0x8] sm:$0xff]   ;;  %v5424_v6 = vld [vmem:[%s4387_s9 + $0x10] sm:$0xff]   ;;  %s5704_s3 = sld [smem:[%s6282_s0 + %s5579_s30]]   ;;  %s5582_s12 = smov 12  }
   0x9   :  { %4889 = vmatpush3.bf16.msra.mxu0 %v5422_v3  ;;  %v5425_v7 = vld [vmem:[%s4387_s9 + $0x18] ss:$0 sps:$4 sm:$0x11]   ;;  %v5426_v16 = vld [vmem:[%s5639_s13] sm:$0xff]   ;;  %v5428_v18 = vld [vmem:[%s5639_s13 + $0x8] sm:$0xff]   ;;  %s5711_s7 = sld [smem:[%s6282_s0 + %s5580_s4]]   ;;  %s5584_s20 = smov 16  }
   0xa   :  { %4890 = vmatprep.subr.bf16.mxu0 %v5571_v1  ;;  %v208_v8 = vsel %vm206_vm1, %v5425_v7, 0  ;;  %4901 = vmatpush3.bf16.msra.mxu1 %v5426_v16  ;;  %v5427_v17 = vld [vmem:[%s5644_s17] sm:$0xff]   ;;  %v5429_v19 = vld [vmem:[%s5644_s17 + $0x8] sm:$0xff]   ;;  %v5431_v31 = vld [vmem:[%s5639_s13 + $0x10] sm:$0xff]   ;;  %s5740_s11 = sld [smem:[%s6282_s0 + %s5581_s8]]   ;;  %s5585_s24 = smov 18  }
   0xb   :  { %4902 = vmatprep.subr.bf16.mxu1 %v5571_v1  ;;  %v5430_v30 = vld [vmem:[%s5651_s21] sm:$0xff]   ;;  %v5432_v33 = vld [vmem:[%s5651_s21 + $0x8] sm:$0xff]   ;;  %v5433_v34 = vld [vmem:[%s5639_s13 + $0x18] sm:$0xff]   ;;  %s5785_s16 = sld [smem:[%s6282_s0 + %s5582_s12]]   ;;  %s5586_s28 = smov 14  }
   0xc   :  { %167 = vperm.xlu0 %5421, %v160_v4   ;;  %v253_v23 = vld [vmem:[%s4388_s25] sm:$0xff]  ;;  %v254_v25 = vld [vmem:[%s4388_s25 + $0x8] sm:$0xff]  ;;  %v5434_v35 = vld [vmem:[%s5644_s17 + $0x10] sm:$0xff]   ;;  %s4402_s23 = sld [smem:[%s6282_s0 + %s5584_s20]]   ;;  %s5587_s2 = smov 15  }
   0xd   :  { %4891 = vmatpush3.bf16.msra.mxu0 %v5423_v5  ;;  %v5435_v36 = vld [vmem:[%s5644_s17 + $0x18] sm:$0xff]   ;;  %v4430_v37 = vld [vmem:[%s5699_s29] ss:$0 sm:$0xff]  ;;  %v5718_v56 = vld [vmem:[%s5699_s29 + $0x1] ss:$0 sm:$0xff]  ;;  %s5926_s27 = sld [smem:[%s6282_s0 + %s5585_s24]]   ;;  %s5588_s6 = smov 17  }
   0xe   :  { %4892 = vmatprep.subr.bf16.mxu0 %v5571_v1  ;;  %4903 = vmatpush3.bf16.msra.mxu1 %v5428_v18  ;;  %v4438_v39 = vld [vmem:[%s5704_s3] ss:$0 sm:$0xff]  ;;  %v4471_v3 = vld [vmem:[%s5704_s3 + $0x1] ss:$0 sm:$0xff]  ;;  %s4400_s1 = sld [smem:[%s6282_s0 + %s5586_s28]]   ;;  %s5589_s10 = smov 19  }
   0xf   :  { %4908 = vmatprep.subr.bf16.mxu1 %v5571_v1  ;;  %v4434_v51 = vld [vmem:[%s5711_s7] ss:$0 sm:$0xff]  ;;  %s4401_s5 = sld [smem:[%s6282_s0 + %s5587_s2]]   ;;  %s5600_s25 = smov 32  }
  0x10   :  { %s4403_s9 = sld [smem:[%s6282_s0 + %s5588_s6]]   ;;  %s5604_s12 = smov 33  }
  0x11   :  { %4893 = vmatpush3.bf16.msra.mxu0 %v5424_v6  ;;  %s4405_s15 = sld [smem:[%s6282_s0 + %s5589_s10]]   ;;  %s5606_s20 = smov 4  }
  0x12   :  { %4894 = vmatprep.subr.bf16.mxu0 %v5571_v1  ;;  %s4418_s28 = sld [smem:[%s6282_s0 + %s5600_s25]]  }
  0x15   :  { %4895 = vmatpush3.bf16.msra.mxu0 %v208_v8 }
  0x16   :  { %4916 = vmatprep.subr.bf16.mxu0 %v5571_v1 }
  0x87   :  { %v165_v11 = vpop.permute.xlu0 %164 }
  0x88   :  { %vm169_vm2 = vcmp.eq.s32.totalorder %v162_v10, %v165_v11 }
  0x89   :  { %v171_v13 = vsel %vm169_vm2, 1.0, %v5571_v1 }
  0x8b   :  { %v168_v12 = vpop.permute.xlu0 %167 }
  0x8c   :  { %vm170_vm3 = vcmp.eq.s32.totalorder %v162_v10, %v168_v12 }
  0x8d   :  { %v172_v14 = vsel %vm170_vm3, 1.0, %v5571_v1 }
  0x8e   :  { %v173_v15 = vpack.c.bf16 %v172_v14, %v171_v13  ;;  %v5743_v14 = vld [vmem:[%s5740_s11] sm:$0xff] }
  0x90   :  { %4897 = vmatmul.mubr.msk.bf16.vlgmr.msra.gmra.mrb[0].mxu0 %vm202_vm4, %v173_v15 }
  0x91   :  { %4920 = vmatprep.mubr.msk.bf16.mxu0 %vm5573_vm0, %v5571_v1  ;;  %4917 = vmatpush3.bf16.msra.mxu0 %v5427_v17  ;;  %v5746_v17 = vld [vmem:[%s5740_s11 + $0x8] sm:$0xff] }
  0x92   :  { %4918 = vmatprep.subr.bf16.mxu0 %v5571_v1 }
  0x95   :  { %4919 = vmatpush3.bf16.msra.mxu0 %v5429_v19 }
  0x96   :  { %4938 = vmatprep.subr.bf16.mxu0 %v5571_v1 }
 0x163   :  { %v244_v20 = vpop.f32.mrb[0].mxu0 }
 0x164   :  { %v251_v21 = vmul.f32 5.656854, %v244_v20  ;;  %v4898_v22 = vpop.f32.mrb[1].mxu0 }
 0x165   :  { %v247_v24 = vpop.f32.mrb[2].mxu0 }
 0x166   :  { %v252_v26 = vmul.f32 5.656854, %v247_v24  ;;  %v4899_v27 = vpop.f32.mrb[3].mxu0  ;;  %v5662_v28 = vadd.f32 %v253_v23, %v251_v21 }
 0x168   :  { %v5664_v29 = vadd.f32 %v254_v25, %v252_v26 }
 0x16a   :  { %v5670_v32 = vpack.c.bf16 %v5664_v29, %v5662_v28 }
 0x16c   :  { %4905 = vmatmul.mubr.msk.bf16.vlgmr.msra.gmra.mrb[0].mxu1 %vm283_vm5, %v5670_v32  ;;  %4921 = vmatmul.mubr.msk.bf16.vlgmr.msra.gmra.mrb[4].mxu0 %vm283_vm5, %v5670_v32 }
 0x16d   :  { %4909 = vmatpush3.bf16.msra.mxu1 %v5430_v30  ;;  %4939 = vmatpush3.bf16.msra.mxu0 %v5431_v31 }
 0x16e   :  { %4910 = vmatprep.subr.bf16.mxu1 %v5571_v1  ;;  %4940 = vmatprep.subr.bf16.mxu0 %v5571_v1 }
 0x16f   :  { %4912 = vmatprep.mubr.msk.bf16.mxu1 %vm5573_vm0, %v5571_v1  ;;  %4942 = vmatprep.mubr.msk.bf16.mxu0 %vm5573_vm0, %v5571_v1 }
 0x171   :  { %4911 = vmatpush3.bf16.msra.mxu1 %v5432_v33  ;;  %4941 = vmatpush3.bf16.msra.mxu0 %v5433_v34 }
 0x172   :  { %4954 = vmatprep.subr.bf16.mxu0 %v5571_v1 }
 0x174   :  { %4913 = vmatmul.mubr.msk.bf16.vlgmr.msra.gmra.mrb[4].mxu1 %vm283_vm5, %v5670_v32  ;;  %4943 = vmatmul.mubr.msk.bf16.vlgmr.msra.gmra.mrb[8].mxu0 %vm283_vm5, %v5670_v32 }
 0x175   :  { %4955 = vmatpush3.bf16.msra.mxu0 %v5434_v35  ;;  %4958 = vmatprep.mubr.msk.bf16.mxu0 %vm5573_vm0, %v5571_v1 }
 0x176   :  { %4956 = vmatprep.subr.bf16.mxu0 %v5571_v1 }
 0x179   :  { %4957 = vmatpush3.bf16.msra.mxu0 %v5435_v36 }
 0x17c   :  { %4959 = vmatmul.mubr.msk.bf16.vlgmr.msra.gmra.mrb[12].mxu0 %vm283_vm5, %v5670_v32 }
 0x23f   :  { %v321_v38 = vpop.f32.mrb[0].mxu1  ;;  %v449_v40 = vpop.f32.mrb[4].mxu0 }
 0x240   :  { %v322_v41 = vadd.f32 %v4430_v37, %v321_v38  ;;  %v4906_v42 = vpop.f32.mrb[1].mxu1  ;;  %v4922_v43 = vpop.f32.mrb[5].mxu0  ;;  %v450_v46 = vadd.f32 %v4438_v39, %v449_v40  ;;  %v5436_v40 = vld [vmem:[%s5651_s21 + $0x10] sm:$0xff]  }
 0x241   :  { %v324_v44 = vpop.f32.mrb[2].mxu1  ;;  %v452_v45 = vpop.f32.mrb[6].mxu0  ;;  %v5437_v42 = vld [vmem:[%s5651_s21 + $0x18] sm:$0xff]  }
 0x242   :  { %v453_v47 = vadd.f32 %v4438_v39, %v452_v45  ;;  %v4907_v48 = vpop.f32.mrb[3].mxu1  ;;  %v4923_v49 = vpop.f32.mrb[7].mxu0  ;;  %4928 = vmatprep.mubr.msk.f32.mxu1 %vm456_vm6, %v322_v41  ;;  %v325_v10 = vadd.f32 %v4430_v37, %v324_v44 }
 0x244   :  { %v5306_v50 = vpack.c.bf16 %v453_v47, %v450_v46  ;;  %v4462_v47 = vld [vmem:[%s5711_s7 + $0x1] ss:$0 sm:$0xff] }
 0x247   :  { %v385_v52 = vpop.f32.mrb[4].mxu1  ;;  %v5715_v53 = vpop.f32.mrb[8].mxu0 }
 0x248   :  { %v4914_v54 = vpop.f32.mrb[5].mxu1  ;;  %v4944_v55 = vpop.f32.mrb[9].mxu0  ;;  %v386_v59 = vadd.f32 %v4434_v51, %v385_v52  ;;  %v714_v43 = vadd.f32 %v5718_v56, %v5715_v53 }
 0x249   :  { %v388_v57 = vpop.f32.mrb[6].mxu1  ;;  %v716_v58 = vpop.f32.mrb[10].mxu0 }
 0x24a   :  { %v389_v60 = vadd.f32 %v4434_v51, %v388_v57  ;;  %v5721_v61 = vadd.f32 %v5718_v56, %v716_v58  ;;  %v4915_v62 = vpop.f32.mrb[7].mxu1  ;;  %v4945_v63 = vpop.f32.mrb[11].mxu0 }
 0x24c   :  { %v5300_v2 = vpack.c.bf16 %v389_v60, %v386_v59 }
 0x24e   :  { %5302 = vmatprep.subr.msk.bf16.mxu1 %vm5725_vm7, %v5300_v2 }
 0x24f   :  { %5305 = vmatpush3.bf16.xpose.msk.msra.mxu1 %vm5725_vm7, %v5300_v2  ;;  %v845_v4 = vpop.f32.mrb[12].mxu0 }
 0x250   :  { %5307 = vmatprep.subr.bf16.mxu1 %v5306_v50  ;;  %v4960_v5 = vpop.f32.mrb[13].mxu0  ;;  %v846_v7 = vadd.f32 %v4471_v3, %v845_v4 }
 0x251   :  { %v848_v6 = vpop.f32.mrb[14].mxu0 }
 0x252   :  { %v849_v8 = vadd.f32 %v4471_v3, %v848_v6  ;;  %v4961_v9 = vpop.f32.mrb[15].mxu0 }
 0x254   :  { %v5316_v11 = vpack.c.bf16 %v849_v8, %v846_v7 }
 0x256   :  { %4929 = vmatmul.mubr.msk.f32.vlgmr.msra.gmra.mrb[8].mxu1 %vm456_vm6, %v325_v10  ;;  %5317 = vmatprep.subr.bf16.mxu0 %v5316_v11 }
 0x257   :  { %5309 = vmatpush3.bf16.msra.mxu1 %v5306_v50  ;;  %5319 = vmatpush3.bf16.msra.mxu0 %v5316_v11 }
 0x258   :  { %4946 = vmatprep.subr.bf16.mxu1 %v5571_v1  ;;  %4982 = vmatprep.subr.bf16.mxu0 %v5571_v1 }
 0x329   :  { %v4930_v12 = vpop.f32.mrb[8].mxu1 }
 0x32a   :  { %v535_v13 = vpop.f32.mrb[9].mxu1  ;;  %v545_v15 = vmul.f32 0.35355338, %v4930_v12 }
 0x32b   :  { %v544_v16 = vmul.f32 0.35355338, %v535_v13 }
 0x32c   :  { %v547_v20 = vadd.f32 %v545_v15, %v5746_v17 }
 0x32d   :  { %v546_v18 = vadd.f32 %v544_v16, %v5743_v14  ;;  %v653_v16 = vld [vmem:[%s5785_s16] sm:$0xf] }
 0x32e   :  { %v552_v21 = vsel %vm548_vm8, %v547_v20, -inf }
 0x32f   :  { %v549_v19 = vsel %vm548_vm8, %v546_v18, -inf }
 0x330   :  { %550 = vmax.xlane.f32.xlu1 %v549_v19 }
 0x334   :  { %553 = vmax.xlane.f32.xlu1 %v552_v21  ;;  %v5438_v21 = vld [vmem:[%s5651_s21 + $0x20] sm:$0xff]  }
 0x3bd   :  { %v551_v22 = vpop.xlane.xlu1 %550 }
 0x3be   :  { %v555_v23 = vsub.f32 %v546_v18, %v551_v22  ;;  %v5439_v22 = vld [vmem:[%s5651_s21 + $0x28] sm:$0xff]  }
 0x3c0   :  { %v557_v24 = vmul.f32 1.442695, %v555_v23  ;;  %v4481_v23 = vld [vmem:[%s5785_s16 + $0x4] sm:$0xf] }
 0x3c1   :  { %v554_v25 = vpop.xlane.xlu1 %553 }
 0x3c2   :  { %5488 = vpow2.f32 %v557_v24  ;;  %v556_v26 = vsub.f32 %v547_v20, %v554_v25  ;;  %v1101_v20 = vsel %vm1052_vm9, %v653_v16, 0  ;;  %v1054_v24 = vsel %vm1052_vm9, %v4481_v23, 0 }
 0x3c4   :  { %v559_v27 = vmul.f32 1.442695, %v556_v26 }
 0x3c6   :  { %5490 = vpow2.f32 %v559_v27  ;;  %v5440_v27 = vld [vmem:[%s5639_s13 + $0x20] sm:$0xff]  }
 0x3cc   :  { %v5489_v30 = vpop.eup %5488 }
 0x3cd   :  { %v561_v31 = vsel %vm548_vm8, %v5489_v30, 0.0 }
 0x3ce   :  { %562 = vadd.xlane.f32.xlu0 %v561_v31 }
 0x3d0   :  { %v5491_v33 = vpop.eup %5490 }
 0x3d1   :  { %v564_v34 = vsel %vm548_vm8, %v5491_v33, 0.0 }
 0x3d2   :  { %565 = vadd.xlane.f32.xlu1 %v564_v34  ;;  %v5441_v34 = vld [vmem:[%s5639_s13 + $0x28] sm:$0xff]  }
 0x45b   :  { %v563_v35 = vpop.xlane.xlu0 %562 }
 0x45c   :  { %5492 = vrcp.f32 %v563_v35 }
 0x45f   :  { %v566_v36 = vpop.xlane.xlu1 %565 }
 0x460   :  { %5494 = vrcp.f32 %v566_v36 }
 0x466   :  { %v5493_v37 = vpop.eup %5492 }
 0x467   :  { %v569_v38 = vmul.f32 %v5493_v37, %v5489_v30  ;;  %v5442_v37 = vld [vmem:[%s5644_s17 + $0x20] sm:$0xff]  }
 0x469   :  { %4935 = vmatprep.mubr.msk.f32.mxu1 %vm548_vm8, %v569_v38  ;;  %v4498_v38 = vld [vmem:[%s5711_s7 + $0x2] ss:$0 sm:$0xff] }
 0x46a   :  { %v5495_v39 = vpop.eup %5494 }
 0x46b   :  { %v570_v41 = vmul.f32 %v5495_v39, %v5491_v33 }
 0x46d   :  { %4936 = vmatmul.mubr.msk.f32.vlgmr.msra.gmra.mrb[10].mxu1 %vm548_vm8, %v570_v41  ;;  %v5443_v41 = vld [vmem:[%s5644_s17 + $0x28] sm:$0xff]  }
 0x46e   :  { %4947 = vmatpush3.bf16.msra.mxu1 %v5436_v40  ;;  %4950 = vmatprep.mubr.msk.bf16.mxu1 %vm5573_vm0, %v5571_v1 }
 0x46f   :  { %4948 = vmatprep.subr.bf16.mxu1 %v5571_v1 }
 0x472   :  { %4949 = vmatpush3.bf16.msra.mxu1 %v5437_v42 }
 0x475   :  { %4951 = vmatmul.mubr.msk.bf16.vlgmr.msra.gmra.mrb[12].mxu1 %vm283_vm5, %v5670_v32 }
 0x476   :  { %4966 = vmatprep.mubr.msk.f32.mxu1 %vm456_vm6, %v714_v43 }
 0x540   :  { %v4937_v44 = vpop.f32.mrb[10].mxu1 }
 0x541   :  { %v643_v45 = vpop.f32.mrb[11].mxu1 }
 0x542   :  { %v652_v46 = vpack.c.bf16 %v4937_v44, %v643_v45 }
 0x548   :  { %v779_v48 = vpop.f32.mrb[12].mxu1 }
 0x549   :  { %v4952_v49 = vpop.f32.mrb[13].mxu1  ;;  %v780_v51 = vadd.f32 %v4462_v47, %v779_v48 }
 0x54a   :  { %v782_v50 = vpop.f32.mrb[14].mxu1 }
 0x54b   :  { %v783_v52 = vadd.f32 %v4462_v47, %v782_v50  ;;  %v4953_v54 = vpop.f32.mrb[15].mxu1 }
 0x54c   :  { %v4489_v54 = vld [vmem:[%s5699_s29 + $0x2] ss:$0 sm:$0xff] }
 0x54d   :  { %v5310_v55 = vpack.c.bf16 %v783_v52, %v780_v51 }
 0x54f   :  { %5312 = vmatprep.subr.msk.bf16.mxu1 %vm5725_vm7, %v5310_v55 }
 0x550   :  { %5315 = vmatpush3.bf16.xpose.msk.msra.mxu1 %vm5725_vm7, %v5310_v55 }
 0x551   :  { %4976 = vmatprep.subr.bf16.mxu1 %v5571_v1 }
 0x557   :  { %4967 = vmatmul.mubr.msk.f32.vlgmr.msra.gmra.mrb[16].mxu1 %vm456_vm6, %v5721_v61 }
 0x558   :  { %4978 = vmatprep.mubr.msk.bf16.mxu1 %vm5573_vm0, %v5571_v1  ;;  %4977 = vmatpush3.bf16.msra.mxu1 %v1054_v24 }
 0x559   :  { %4988 = vmatprep.subr.bf16.mxu1 %v5571_v1 }
 0x62a   :  { %v4968_v53 = vpop.f32.mrb[16].mxu1 }
 0x62b   :  { %v930_v56 = vpop.f32.mrb[17].mxu1  ;;  %v940_v57 = vmul.f32 0.35355338, %v4968_v53 }
 0x62c   :  { %v939_v58 = vmul.f32 0.35355338, %v930_v56 }
 0x62d   :  { %v942_v62 = vadd.f32 %v940_v57, %v5746_v17 }
 0x62e   :  { %v941_v59 = vadd.f32 %v939_v58, %v5743_v14 }
 0x62f   :  { %v946_v63 = vsel %vm548_vm8, %v942_v62, -inf }
 0x630   :  { %v943_v60 = vsel %vm548_vm8, %v941_v59, -inf }
 0x631   :  { %944 = vmax.xlane.f32.xlu1 %v943_v60  ;;  %v4507_v60 = vld [vmem:[%s5704_s3 + $0x2] ss:$0 sm:$0xff] }
 0x635   :  { %947 = vmax.xlane.f32.xlu1 %v946_v63 }
 0x6be   :  { %v945_v2 = vpop.xlane.xlu1 %944 }
 0x6bf   :  { %v949_v3 = vsub.f32 %v941_v59, %v945_v2 }
 0x6c1   :  { %v951_v61 = vmul.f32 1.442695, %v949_v3 }
 0x6c2   :  { %v948_v4 = vpop.xlane.xlu1 %947 }
 0x6c3   :  { %5496 = vpow2.f32 %v951_v61  ;;  %v950_v5 = vsub.f32 %v942_v62, %v948_v4 }
 0x6c5   :  { %v953_v6 = vmul.f32 1.442695, %v950_v5 }
 0x6c7   :  { %5498 = vpow2.f32 %v953_v6 }
 0x6cd   :  { %v5497_v7 = vpop.eup %5496 }
 0x6ce   :  { %v955_v8 = vsel %vm548_vm8, %v5497_v7, 0.0 }
 0x6cf   :  { %956 = vadd.xlane.f32.xlu1 %v955_v8 }
 0x6d1   :  { %v5499_v9 = vpop.eup %5498 }
 0x6d2   :  { %v958_v10 = vsel %vm548_vm8, %v5499_v9, 0.0 }
 0x6d3   :  { %959 = vadd.xlane.f32.xlu1 %v958_v10 }
 0x75c   :  { %v957_v11 = vpop.xlane.xlu1 %956 }
 0x75d   :  { %5500 = vrcp.f32 %v957_v11 }
 0x760   :  { %v960_v12 = vpop.xlane.xlu1 %959 }
 0x761   :  { %5502 = vrcp.f32 %v960_v12 }
 0x767   :  { %v5501_v13 = vpop.eup %5500 }
 0x768   :  { %v963_v15 = vmul.f32 %v5501_v13, %v5497_v7 }
 0x76a   :  { %4973 = vmatprep.mubr.msk.f32.mxu0 %vm548_vm8, %v963_v15 }
 0x76b   :  { %v5503_v18 = vpop.eup %5502 }
 0x76c   :  { %v964_v19 = vmul.f32 %v5503_v18, %v5499_v9 }
 0x76e   :  { %4974 = vmatmul.mubr.msk.f32.vlgmr.msra.gmra.mrb[16].mxu0 %vm548_vm8, %v964_v19 }
 0x76f   :  { %4983 = vmatpush3.bf16.msra.mxu0 %v1101_v20  ;;  %4984 = vmatprep.mubr.msk.bf16.mxu0 %vm5573_vm0, %v5571_v1 }
 0x770   :  { %4996 = vmatprep.subr.bf16.mxu0 %v5571_v1 }
 0x772   :  { %4985 = vmatmul.mubr.msk.bf16.vlgmr.msra.gmra.mrb[20].mxu0 %vm456_vm6, %v652_v46 }
 0x773   :  { %4997 = vmatpush3.bf16.msra.mxu0 %v5438_v21  ;;  %5000 = vmatprep.mubr.msk.bf16.mxu0 %vm5573_vm0, %v5571_v1 }
 0x774   :  { %4998 = vmatprep.subr.bf16.mxu0 %v5571_v1 }
 0x777   :  { %4999 = vmatpush3.bf16.msra.mxu0 %v5439_v22 }
 0x77a   :  { %5001 = vmatmul.mubr.msk.bf16.vlgmr.msra.gmra.mrb[24].mxu0 %vm283_vm5, %v5670_v32 }
 0x841   :  { %v4975_v25 = vpop.f32.mrb[16].mxu0 }
 0x842   :  { %v1037_v26 = vpop.f32.mrb[17].mxu0 }
 0x843   :  { %v1046_v30 = vpack.c.bf16 %v4975_v25, %v1037_v26  ;;  %v4517_v26 = vld [vmem:[%s5785_s16 + $0x8] sm:$0xf] }
 0x845   :  { %4979 = vmatmul.mubr.msk.bf16.vlgmr.msra.gmra.mrb[20].mxu1 %vm456_vm6, %v1046_v30  ;;  %v1137_v31 = vpop.f32.mrb[20].mxu0 }
 0x846   :  { %v4986_v33 = vpop.f32.mrb[21].mxu0  ;;  %4989 = vmatpush3.bf16.msra.mxu1 %v5440_v27  ;;  %4992 = vmatprep.mubr.msk.bf16.mxu1 %vm5573_vm0, %v5571_v1  ;;  %v1543_v27 = vsel %vm1052_vm9, %v4517_v26, 0 }
 0x847   :  { %v1140_v35 = vpop.f32.mrb[22].mxu0  ;;  %4990 = vmatprep.subr.bf16.mxu1 %v5571_v1 }
 0x848   :  { %v4987_v36 = vpop.f32.mrb[23].mxu0 }
 0x849   :  { %v5444_v36 = vld [vmem:[%s5639_s13 + $0x30] sm:$0xff]  }
 0x84a   :  { %4991 = vmatpush3.bf16.msra.mxu1 %v5441_v34 }
 0x84b   :  { %5004 = vmatprep.subr.bf16.mxu1 %v5571_v1 }
 0x84d   :  { %4993 = vmatmul.mubr.msk.bf16.vlgmr.msra.gmra.mrb[24].mxu1 %vm283_vm5, %v5670_v32  ;;  %v1269_v39 = vpop.f32.mrb[24].mxu0 }
 0x84e   :  { %v5002_v40 = vpop.f32.mrb[25].mxu0  ;;  %5005 = vmatpush3.bf16.msra.mxu1 %v5442_v37  ;;  %5008 = vmatprep.mubr.msk.bf16.mxu1 %vm5573_vm0, %v5571_v1  ;;  %v1270_v43 = vadd.f32 %v4498_v38, %v1269_v39  ;;  %v5446_v39 = vld [vmem:[%s5644_s17 + $0x30] sm:$0xff]  }
 0x84f   :  { %v1272_v42 = vpop.f32.mrb[26].mxu0  ;;  %5006 = vmatprep.subr.bf16.mxu1 %v5571_v1  ;;  %v5447_v40 = vld [vmem:[%s5644_s17 + $0x38] sm:$0xff]  }
 0x850   :  { %v1273_v44 = vadd.f32 %v4498_v38, %v1272_v42  ;;  %v5003_v45 = vpop.f32.mrb[27].mxu0  ;;  %v5445_v38 = vld [vmem:[%s5639_s13 + $0x38] sm:$0xff]   ;;  %s5583_s13 = smov 13  }
 0x851   :  { %v5449_v45 = vld [vmem:[%s5651_s21 + $0x38] sm:$0xff]   ;;  %s4399_s19 = sld [smem:[%s6282_s0 + %s5583_s13]]   ;;  %s5605_s13 = smov 35  }
 0x852   :  { %v5320_v46 = vpack.c.bf16 %v1273_v44, %v1270_v43  ;;  %5007 = vmatpush3.bf16.msra.mxu1 %v5443_v41  ;;  %v5448_v43 = vld [vmem:[%s5651_s21 + $0x30] sm:$0xff]  }
 0x853   :  { %5026 = vmatprep.subr.bf16.mxu1 %v5571_v1 }
 0x854   :  { %5322 = vmatprep.subr.msk.bf16.mxu0 %vm5725_vm7, %v5320_v46 }
 0x855   :  { %5009 = vmatmul.mubr.msk.bf16.vlgmr.msra.gmra.mrb[28].mxu1 %vm283_vm5, %v5670_v32  ;;  %5325 = vmatpush3.bf16.xpose.msk.msra.mxu0 %vm5725_vm7, %v5320_v46  ;;  %v4524_v46 = vld [vmem:[%s5699_s29 + $0x3] ss:$0 sm:$0xff]  ;;  %s5601_s29 = smov 34  }
 0x856   :  { %5028 = vmatprep.mubr.msk.bf16.mxu1 %vm5573_vm0, %v5571_v1  ;;  %5027 = vmatpush3.bf16.msra.mxu1 %v1543_v27  ;;  %s6236_s2 = sld [smem:[%s6282_s0 + %s5601_s29]]  }
 0x857   :  { %5040 = vmatprep.subr.bf16.mxu1 %v5571_v1 }
 0x918   :  { %v1090_v47 = vpop.f32.mrb[20].mxu1 }
 0x919   :  { %v5829_v48 = vadd.f32 %v1137_v31, %v1090_v47  ;;  %v4980_v49 = vpop.f32.mrb[21].mxu1 }
 0x91a   :  { %v1093_v50 = vpop.f32.mrb[22].mxu1 }
 0x91b   :  { %v5831_v51 = vadd.f32 %v1140_v35, %v1093_v50  ;;  %v4981_v52 = vpop.f32.mrb[23].mxu1 }
 0x920   :  { %v1203_v55 = vpop.f32.mrb[24].mxu1 }
 0x921   :  { %v1204_v53 = vadd.f32 %v4489_v54, %v1203_v55  ;;  %v4994_v56 = vpop.f32.mrb[25].mxu1 }
 0x922   :  { %v1206_v57 = vpop.f32.mrb[26].mxu1 }
 0x923   :  { %v1207_v58 = vadd.f32 %v4489_v54, %v1206_v57  ;;  %v4995_v59 = vpop.f32.mrb[27].mxu1  ;;  %5016 = vmatprep.mubr.msk.f32.mxu0 %vm456_vm6, %v1204_v53  ;;  %v4542_v53 = vld [vmem:[%s5704_s3 + $0x3] ss:$0 sm:$0xff]  ;;  %s5602_s3 = smov 30  }
 0x924   :  { %s4416_s6 = sld [smem:[%s6282_s0 + %s5602_s3]]  }
 0x925   :  { %5017 = vmatmul.mubr.msk.f32.vlgmr.msra.gmra.mrb[18].mxu0 %vm456_vm6, %v1207_v58 }
 0x928   :  { %v1335_v62 = vpop.f32.mrb[28].mxu1 }
 0x929   :  { %v5010_v63 = vpop.f32.mrb[29].mxu1  ;;  %v1336_v3 = vadd.f32 %v4507_v60, %v1335_v62 }
 0x92a   :  { %v1338_v2 = vpop.f32.mrb[30].mxu1 }
 0x92b   :  { %v1339_v61 = vadd.f32 %v4507_v60, %v1338_v2  ;;  %v5011_v4 = vpop.f32.mrb[31].mxu1 }
 0x92d   :  { %v5326_v5 = vpack.c.bf16 %v1339_v61, %v1336_v3 }
 0x92f   :  { %5327 = vmatprep.subr.bf16.mxu0 %v5326_v5 }
 0x930   :  { %5329 = vmatpush3.bf16.msra.mxu0 %v5326_v5 }
 0x931   :  { %5032 = vmatprep.subr.bf16.mxu0 %v5571_v1 }
 0x9f8   :  { %v5018_v6 = vpop.f32.mrb[18].mxu0 }
 0x9f9   :  { %v1420_v7 = vpop.f32.mrb[19].mxu0  ;;  %v1430_v8 = vmul.f32 0.35355338, %v5018_v6  ;;  %v4533_v6 = vld [vmem:[%s5711_s7 + $0x3] ss:$0 sm:$0xff]  ;;  %s5603_s7 = smov 31  }
 0x9fa   :  { %v1429_v9 = vmul.f32 0.35355338, %v1420_v7  ;;  %s4417_s10 = sld [smem:[%s6282_s0 + %s5603_s7]]  }
 0x9fb   :  { %v1432_v12 = vadd.f32 %v1430_v8, %v5746_v17 }
 0x9fc   :  { %v1431_v10 = vadd.f32 %v1429_v9, %v5743_v14 }
 0x9fd   :  { %v1436_v13 = vsel %vm548_vm8, %v1432_v12, -inf }
 0x9fe   :  { %v1433_v11 = vsel %vm548_vm8, %v1431_v10, -inf }
 0x9ff   :  { %1434 = vmax.xlane.f32.xlu1 %v1433_v11 }
 0xa03   :  { %1437 = vmax.xlane.f32.xlu1 %v1436_v13 }
 0xa8c   :  { %v1435_v15 = vpop.xlane.xlu1 %1434 }
 0xa8d   :  { %v1439_v16 = vsub.f32 %v1431_v10, %v1435_v15 }
 0xa8f   :  { %v1441_v18 = vmul.f32 1.442695, %v1439_v16 }
 0xa90   :  { %v1438_v19 = vpop.xlane.xlu1 %1437 }
 0xa91   :  { %5504 = vpow2.f32 %v1441_v18  ;;  %v1440_v20 = vsub.f32 %v1432_v12, %v1438_v19 }
 0xa93   :  { %v1443_v21 = vmul.f32 1.442695, %v1440_v20 }
 0xa95   :  { %5506 = vpow2.f32 %v1443_v21 }
 0xa9b   :  { %v5505_v22 = vpop.eup %5504 }
 0xa9c   :  { %v1445_v23 = vsel %vm548_vm8, %v5505_v22, 0.0 }
 0xa9d   :  { %1446 = vadd.xlane.f32.xlu1 %v1445_v23 }
 0xa9f   :  { %v5507_v24 = vpop.eup %5506 }
 0xaa0   :  { %v1448_v25 = vsel %vm548_vm8, %v5507_v24, 0.0 }
 0xaa1   :  { %1449 = vadd.xlane.f32.xlu0 %v1448_v25 }
 0xb2a   :  { %v1447_v30 = vpop.xlane.xlu1 %1446 }
 0xb2b   :  { %5508 = vrcp.f32 %v1447_v30 }
 0xb2e   :  { %v1450_v31 = vpop.xlane.xlu0 %1449 }
 0xb2f   :  { %5510 = vrcp.f32 %v1450_v31 }
 0xb35   :  { %v5509_v33 = vpop.eup %5508 }
 0xb36   :  { %v1453_v34 = vmul.f32 %v5509_v33, %v5505_v22  ;;  %v4552_v33 = vld [vmem:[%s5785_s16 + $0xc] sm:$0xf]  ;;  %s5590_s16 = smov 22  }
 0xb37   :  { %s5961_s18 = sld [smem:[%s6282_s0 + %s5590_s16]]  }
 0xb38   :  { %5023 = vmatprep.mubr.msk.f32.mxu0 %vm548_vm8, %v1453_v34  ;;  %v1987_v34 = vsel %vm1052_vm9, %v4552_v33, 0  ;;  %s4419_s16 = sld [smem:[%s6282_s0 + %s5604_s12]]  }
 0xb39   :  { %v5511_v35 = vpop.eup %5510 }
 0xb3a   :  { %v1454_v37 = vmul.f32 %v5511_v35, %v5507_v24 }
 0xb3c   :  { %5024 = vmatmul.mubr.msk.f32.vlgmr.msra.gmra.mrb[28].mxu0 %vm548_vm8, %v1454_v37 }
 0xb3d   :  { %5033 = vmatpush3.bf16.msra.mxu0 %v5444_v36  ;;  %5036 = vmatprep.mubr.msk.bf16.mxu0 %vm5573_vm0, %v5571_v1 }
 0xb3e   :  { %5034 = vmatprep.subr.bf16.mxu0 %v5571_v1 }
 0xb41   :  { %5035 = vmatpush3.bf16.msra.mxu0 %v5445_v38 }
 0xb42   :  { %5048 = vmatprep.subr.bf16.mxu0 %v5571_v1 }
 0xb44   :  { %5037 = vmatmul.mubr.msk.bf16.vlgmr.msra.gmra.mrb[32].mxu0 %vm283_vm5, %v5670_v32 }
 0xb45   :  { %5049 = vmatpush3.bf16.msra.mxu0 %v5446_v39  ;;  %5052 = vmatprep.mubr.msk.bf16.mxu0 %vm5573_vm0, %v5571_v1 }
 0xb46   :  { %5050 = vmatprep.subr.bf16.mxu0 %v5571_v1 }
 0xb49   :  { %5051 = vmatpush3.bf16.msra.mxu0 %v5447_v40 }
 0xb4a   :  { %5070 = vmatprep.subr.bf16.mxu0 %v5571_v1 }
 0xb4c   :  { %5053 = vmatmul.mubr.msk.bf16.vlgmr.msra.gmra.mrb[36].mxu0 %vm283_vm5, %v5670_v32 }
 0xb4d   :  { %5072 = vmatprep.mubr.msk.bf16.mxu0 %vm5573_vm0, %v5571_v1  ;;  %5071 = vmatpush3.bf16.msra.mxu0 %v1987_v34 }
 0xb4e   :  { %5084 = vmatprep.subr.bf16.mxu0 %v5571_v1 }
 0xc0f   :  { %v5025_v41 = vpop.f32.mrb[28].mxu0 }
 0xc10   :  { %v1527_v42 = vpop.f32.mrb[29].mxu0 }
 0xc11   :  { %v1536_v44 = vpack.c.bf16 %v5025_v41, %v1527_v42 }
 0xc13   :  { %5029 = vmatmul.mubr.msk.bf16.vlgmr.msra.gmra.mrb[32].mxu1 %vm456_vm6, %v1536_v44 }
 0xc14   :  { %5041 = vmatpush3.bf16.msra.mxu1 %v5448_v43  ;;  %5044 = vmatprep.mubr.msk.bf16.mxu1 %vm5573_vm0, %v5571_v1 }
 0xc15   :  { %5042 = vmatprep.subr.bf16.mxu1 %v5571_v1 }
 0xc17   :  { %v1647_v47 = vpop.f32.mrb[32].mxu0 }
 0xc18   :  { %v5038_v49 = vpop.f32.mrb[33].mxu0  ;;  %5043 = vmatpush3.bf16.msra.mxu1 %v5449_v45  ;;  %v1648_v52 = vadd.f32 %v4524_v46, %v1647_v47  ;;  %v4554_v45 = vld [vmem:[%s4399_s19] ss:$0 sm:$0xff]  ;;  %s5591_s19 = smov 24  }
 0xc19   :  { %v1650_v50 = vpop.f32.mrb[34].mxu0  ;;  %s5966_s22 = sld [smem:[%s6282_s0 + %s5591_s19]]  }
 0xc1a   :  { %v1651_v54 = vadd.f32 %v4524_v46, %v1650_v50  ;;  %v5039_v55 = vpop.f32.mrb[35].mxu0  ;;  %s4421_s19 = sld [smem:[%s6282_s0 + %s5605_s13]]  }
 0xc1b   :  { %5045 = vmatmul.mubr.msk.bf16.vlgmr.msra.gmra.mrb[36].mxu1 %vm283_vm5, %v5670_v32 }
 0xc1c   :  { %5060 = vmatprep.mubr.msk.f32.mxu1 %vm456_vm6, %v1648_v52 }
 0xc1f   :  { %v1779_v56 = vpop.f32.mrb[36].mxu0 }
 0xc20   :  { %v5054_v57 = vpop.f32.mrb[37].mxu0  ;;  %v1780_v59 = vadd.f32 %v4542_v53, %v1779_v56 }
 0xc21   :  { %v1782_v58 = vpop.f32.mrb[38].mxu0 }
 0xc22   :  { %v1783_v60 = vadd.f32 %v4542_v53, %v1782_v58  ;;  %v5055_v62 = vpop.f32.mrb[39].mxu0 }
 0xc24   :  { %v5336_v63 = vpack.c.bf16 %v1783_v60, %v1780_v59 }
 0xce6   :  { %v1579_v2 = vpop.f32.mrb[32].mxu1 }
 0xce7   :  { %v5879_v3 = vadd.f32 %v1579_v2, %v5829_v48  ;;  %v5030_v61 = vpop.f32.mrb[33].mxu1 }
 0xce8   :  { %v1582_v4 = vpop.f32.mrb[34].mxu1 }
 0xce9   :  { %v5882_v5 = vadd.f32 %v1582_v4, %v5831_v51  ;;  %v5031_v32 = vpop.f32.mrb[35].mxu1 }
 0xcea   :  { %v5451_v32 = vld [vmem:[%s4402_s23 + $0x8] sm:$0xff]  }
 0xcee   :  { %v1713_v7 = vpop.f32.mrb[36].mxu1 }
 0xcef   :  { %v5046_v8 = vpop.f32.mrb[37].mxu1  ;;  %v1714_v10 = vadd.f32 %v4533_v6, %v1713_v7  ;;  %v5453_v7 = vld [vmem:[%s5926_s27 + $0x8] sm:$0xff]  }
 0xcf0   :  { %v1716_v9 = vpop.f32.mrb[38].mxu1 }
 0xcf1   :  { %v1717_v11 = vadd.f32 %v4533_v6, %v1716_v9  ;;  %v5047_v12 = vpop.f32.mrb[39].mxu1  ;;  %v5452_v6 = vld [vmem:[%s5926_s27] sm:$0xff]  }
 0xcf3   :  { %v5330_v13 = vpack.c.bf16 %v1717_v11, %v1714_v10 }
 0xcf5   :  { %5332 = vmatprep.subr.msk.bf16.mxu1 %vm5725_vm7, %v5330_v13 }
 0xcf6   :  { %5335 = vmatpush3.bf16.xpose.msk.msra.mxu1 %vm5725_vm7, %v5330_v13 }
 0xcf7   :  { %5337 = vmatprep.subr.bf16.mxu1 %v5336_v63 }
 0xcfd   :  { %5061 = vmatmul.mubr.msk.f32.vlgmr.msra.gmra.mrb[18].mxu1 %vm456_vm6, %v1651_v54 }
 0xcfe   :  { %5339 = vmatpush3.bf16.msra.mxu1 %v5336_v63 }
 0xcff   :  { %5076 = vmatprep.subr.bf16.mxu1 %v5571_v1 }
 0xdd0   :  { %v5062_v48 = vpop.f32.mrb[18].mxu1 }
 0xdd1   :  { %v1874_v51 = vmul.f32 0.35355338, %v5062_v48  ;;  %v1864_v15 = vpop.f32.mrb[19].mxu1 }
 0xdd2   :  { %v1873_v16 = vmul.f32 0.35355338, %v1864_v15 }
 0xdd3   :  { %v1876_v18 = vadd.f32 %v1874_v51, %v5746_v17  ;;  %v4555_v51 = vld [vmem:[%s4400_s1] ss:$0 sm:$0xff]  ;;  %s5594_s1 = smov 21  }
 0xdd4   :  { %v1875_v19 = vadd.f32 %v1873_v16, %v5743_v14  ;;  %s4407_s4 = sld [smem:[%s6282_s0 + %s5594_s1]]   ;;  %s5609_s1 = smov 5  }
 0xdd5   :  { %v1880_v20 = vsel %vm548_vm8, %v1876_v18, -inf }
 0xdd6   :  { %1881 = vmax.xlane.f32.xlu0 %v1880_v20  ;;  %v1877_v21 = vsel %vm548_vm8, %v1875_v19, -inf  ;;  %v4556_v20 = vld [vmem:[%s4401_s5] ss:$0 sm:$0xff]  ;;  %s5595_s5 = smov 25  }
 0xdd7   :  { %1878 = vmax.xlane.f32.xlu1 %v1877_v21  ;;  %s6008_s8 = sld [smem:[%s6282_s0 + %s5595_s5]]   ;;  %s5610_s5 = smov 38  }
 0xe63   :  { %v1882_v22 = vpop.xlane.xlu0 %1881 }
 0xe64   :  { %v1884_v23 = vsub.f32 %v1876_v18, %v1882_v22  ;;  %v1879_v24 = vpop.xlane.xlu1 %1878 }
 0xe65   :  { %v1883_v25 = vsub.f32 %v1875_v19, %v1879_v24 }
 0xe66   :  { %v1887_v26 = vmul.f32 1.442695, %v1884_v23 }
 0xe67   :  { %v1885_v27 = vmul.f32 1.442695, %v1883_v25  ;;  %v5454_v25 = vld [vmem:[%s5926_s27 + $0x10] sm:$0xff]  }
 0xe68   :  { %5512 = vpow2.f32 %v1887_v26  ;;  %v5455_v26 = vld [vmem:[%s5926_s27 + $0x18] sm:$0xff]   ;;  %s5593_s27 = smov 20  }
 0xe69   :  { %5514 = vpow2.f32 %v1885_v27  ;;  %v4557_v27 = vld [vmem:[%s4403_s9] ss:$0 sm:$0xff]  ;;  %s4406_s30 = sld [smem:[%s6282_s0 + %s5593_s27]]   ;;  %s5596_s9 = smov 27  }
 0xe6a   :  { %s6013_s14 = sld [smem:[%s6282_s0 + %s5596_s9]]   ;;  %s5608_s27 = smov 37  }
 0xe72   :  { %v5513_v30 = vpop.eup %5512 }
 0xe73   :  { %v5515_v31 = vpop.eup %5514  ;;  %v1892_v17 = vsel %vm548_vm8, %v5513_v30, 0.0 }
 0xe74   :  { %1893 = vadd.xlane.f32.xlu0 %v1892_v17  ;;  %v1889_v14 = vsel %vm548_vm8, %v5515_v31, 0.0 }
 0xe75   :  { %1890 = vadd.xlane.f32.xlu1 %v1889_v14 }
 0xf01   :  { %v1894_v35 = vpop.xlane.xlu0 %1893 }
 0xf02   :  { %5516 = vrcp.f32 %v1894_v35  ;;  %v1891_v36 = vpop.xlane.xlu1 %1890 }
 0xf03   :  { %5518 = vrcp.f32 %v1891_v36 }
 0xf0c   :  { %v5517_v37 = vpop.eup %5516 }
 0xf0d   :  { %v5519_v38 = vpop.eup %5518  ;;  %v1898_v40 = vmul.f32 %v5517_v37, %v5513_v30 }
 0xf0e   :  { %v1897_v39 = vmul.f32 %v5519_v38, %v5515_v31  ;;  %v4561_v38 = vld [vmem:[%s4405_s15] ss:$0 sm:$0xff]  ;;  %s5597_s15 = smov 26  }
 0xf0f   :  { %s6020_s17 = sld [smem:[%s6282_s0 + %s5597_s15]]  }
 0xf10   :  { %5067 = vmatprep.mubr.msk.f32.mxu1 %vm548_vm8, %v1897_v39 }
 0xf11   :  { %5068 = vmatmul.mubr.msk.f32.vlgmr.msra.gmra.mrb[40].mxu1 %vm548_vm8, %v1898_v40 }
 0xf12   :  { %5080 = vmatprep.mubr.msk.bf16.mxu1 %vm5573_vm0, %v5571_v1 }
 0xfe4   :  { %v5069_v41 = vpop.f32.mrb[40].mxu1 }
 0xfe5   :  { %v1971_v42 = vpop.f32.mrb[41].mxu1 }
 0xfe6   :  { %v1980_v43 = vpack.c.bf16 %v5069_v41, %v1971_v42 }
 0xfe8   :  { %5073 = vmatmul.mubr.msk.bf16.vlgmr.msra.gmra.mrb[40].mxu0 %vm456_vm6, %v1980_v43 }
 0xfe9   :  { %5092 = vmatprep.mubr.msk.bf16.mxu0 %vm5573_vm0, %v5571_v1  ;;  %5085 = vmatpush3.bf16.msra.mxu0 %v5452_v6 }
 0xfea   :  { %5086 = vmatprep.subr.bf16.mxu0 %v5571_v1 }
 0xfed   :  { %5087 = vmatpush3.bf16.msra.mxu0 %v5453_v7  ;;  %v4567_v7 = vld [vmem:[%s4406_s30] ss:$0 sm:$0xff]  ;;  %s4423_s30 = sld [smem:[%s6282_s0 + %s5608_s27]]  }
 0xfee   :  { %5088 = vmatprep.subr.bf16.mxu0 %v5571_v1 }
 0xff1   :  { %5089 = vmatpush3.bf16.msra.mxu0 %v5454_v25 }
 0xff2   :  { %5090 = vmatprep.subr.bf16.mxu0 %v5571_v1 }
 0xff5   :  { %5091 = vmatpush3.bf16.msra.mxu0 %v5455_v26 }
 0xff6   :  { %5112 = vmatprep.subr.bf16.mxu0 %v5571_v1 }
0x10bb   :  { %v2023_v44 = vpop.f32.mrb[40].mxu0 }
0x10bc   :  { %v2030_v46 = vadd.f32 %v2023_v44, %v5879_v3  ;;  %v5074_v47 = vpop.f32.mrb[41].mxu0 }
0x10bd   :  { %v2026_v49 = vpop.f32.mrb[42].mxu0 }
0x10be   :  { %v2039_v50 = vadd.f32 %v4554_v45, %v2030_v46  ;;  %v2031_v52 = vadd.f32 %v2026_v49, %v5882_v5  ;;  %v5075_v54 = vpop.f32.mrb[43].mxu0 }
0x10c0   :  { %v2040_v55 = vadd.f32 %v4554_v45, %v2031_v52  ;;  %v2041_v53 = vadd.f32 %v2039_v50, %v5662_v28 }
0x10c2   :  { %v2045_v56 = vsel %vm283_vm5, %v2041_v53, 0.0  ;;  %v2042_v57 = vadd.f32 %v2040_v55, %v5664_v29  ;;  %v5450_v29 = vld [vmem:[%s4402_s23] sm:$0xff]   ;;  %s5592_s23 = smov 23  }
0x10c3   :  { %2046 = vadd.xlane.f32.xlu1 %v2045_v56  ;;  %5077 = vmatpush3.bf16.msra.mxu1 %v5450_v29  ;;  %s5973_s26 = sld [smem:[%s6282_s0 + %s5592_s23]]   ;;  %s5607_s23 = smov 36  }
0x10c4   :  { %v2048_v58 = vsel %vm283_vm5, %v2042_v57, 0.0  ;;  %5078 = vmatprep.subr.bf16.mxu1 %v5571_v1 }
0x10c5   :  { %2049 = vadd.xlane.f32.xlu0 %v2048_v58 }
0x10c7   :  { %5079 = vmatpush3.bf16.msra.mxu1 %v5451_v32 }
0x10c8   :  { %5096 = vmatprep.subr.bf16.mxu1 %v5571_v1 }
0x1150   :  { %v2047_v59 = vpop.xlane.xlu1 %2046 }
0x1151   :  { %v2052_v60 = vmul.f32 0.03125, %v2047_v59 }
0x1152   :  { %v2050_v62 = vpop.xlane.xlu0 %2049 }
0x1153   :  { %v2054_v63 = vsub.f32 %v2041_v53, %v2052_v60  ;;  %v2053_v2 = vmul.f32 0.03125, %v2050_v62  ;;  %v5456_v62 = vld [vmem:[%s5961_s18] sm:$0xff]  }
0x1155   :  { %v2055_v3 = vsub.f32 %v2042_v57, %v2053_v2  ;;  %v2056_v61 = vmul.f32 %v2054_v63, %v2054_v63  ;;  %v5458_v2 = vld [vmem:[%s5961_s18 + $0x8] sm:$0xff]  }
0x1157   :  { %v2058_v4 = vsel %vm283_vm5, %v2056_v61, 0.0  ;;  %v2057_v5 = vmul.f32 %v2055_v3, %v2055_v3 }
0x1158   :  { %2059 = vadd.xlane.f32.xlu1 %v2058_v4 }
0x1159   :  { %v2061_v28 = vsel %vm283_vm5, %v2057_v5, 0.0 }
0x115a   :  { %2062 = vadd.xlane.f32.xlu0 %v2061_v28 }
0x11e5   :  { %v2060_v8 = vpop.xlane.xlu1 %2059 }
0x11e6   :  { %v2064_v9 = vmul.f32 0.03125, %v2060_v8 }
0x11e7   :  { %v2063_v10 = vpop.xlane.xlu0 %2062 }
0x11e8   :  { %v2066_v11 = vadd.f32 1e-05, %v2064_v9  ;;  %v2065_v12 = vmul.f32 0.03125, %v2063_v10 }
0x11ea   :  { %5520 = vrsqrt.f32 %v2066_v11  ;;  %v2067_v13 = vadd.f32 1e-05, %v2065_v12  ;;  %v4568_v12 = vld [vmem:[%s4407_s4] ss:$0 sm:$0xff]  ;;  %s4391_s4 = sld [smem:[%s6282_s0 + %s5609_s1]]  }
0x11ec   :  { %5522 = vrsqrt.f32 %v2067_v13 }
0x11f4   :  { %v5521_v48 = vpop.eup %5520 }
0x11f5   :  { %v2070_v15 = vmul.f32 %v5521_v48, %v2054_v63  ;;  %v5457_v63 = vld [vmem:[%s5966_s22] sm:$0xff]  }
0x11f6   :  { %v5523_v16 = vpop.eup %5522 }
0x11f7   :  { %v2078_v18 = vmul.f32 %v4555_v51, %v2070_v15  ;;  %v2071_v19 = vmul.f32 %v5523_v16, %v2055_v3  ;;  %v5459_v3 = vld [vmem:[%s5966_s22 + $0x8] sm:$0xff]   ;;  %v5460_v15 = vld [vmem:[%s5973_s26] sm:$0xff]  }
0x11f9   :  { %v2079_v21 = vmul.f32 %v4555_v51, %v2071_v19  ;;  %v2086_v22 = vadd.f32 %v4556_v20, %v2078_v18  ;;  %v5461_v18 = vld [vmem:[%s5973_s26 + $0x8] sm:$0xff]   ;;  %v4569_v19 = vld [vmem:[%s6008_s8] ss:$0 sm:$0xff] }
0x11fb   :  { %v2087_v23 = vadd.f32 %v4556_v20, %v2079_v21  ;;  %v4577_v21 = vld [vmem:[%s6013_s14] ss:$0 sm:$0xff] }
0x11fd   :  { %v2088_v24 = vpack.c.bf16 %v2087_v23, %v2086_v22 }
0x11ff   :  { %5081 = vmatmul.mubr.msk.bf16.vlgmr.msra.gmra.mrb[44].mxu1 %vm283_vm5, %v2088_v24 }
0x1200   :  { %5100 = vmatprep.mubr.msk.bf16.mxu1 %vm5573_vm0, %v5571_v1  ;;  %5097 = vmatpush3.bf16.msra.mxu1 %v5456_v62  ;;  %v4592_v62 = vld [vmem:[%s6008_s8 + $0x1] ss:$0 sm:$0xff] }
0x1201   :  { %5098 = vmatprep.subr.bf16.mxu1 %v5571_v1 }
0x1204   :  { %5099 = vmatpush3.bf16.msra.mxu1 %v5458_v2 }
0x1205   :  { %5104 = vmatprep.subr.bf16.mxu1 %v5571_v1 }
0x12d2   :  { %v2149_v30 = vpop.f32.mrb[44].mxu1 }
0x12d3   :  { %v2150_v31 = vadd.f32 %v4557_v27, %v2149_v30  ;;  %v5082_v17 = vpop.f32.mrb[45].mxu1 }
0x12d4   :  { %v2152_v14 = vpop.f32.mrb[46].mxu1 }
0x12d5   :  { %v2153_v33 = vadd.f32 %v4557_v27, %v2152_v14  ;;  %v5083_v34 = vpop.f32.mrb[47].mxu1  ;;  %v2156_v35 = vmax.f32 %v2150_v31, 0.0 }
0x12d6   :  { %v4573_v34 = vld [vmem:[%s6020_s17] ss:$0 sm:$0xff] }
0x12d7   :  { %v2157_v36 = vmax.f32 %v2153_v33, 0.0 }
0x12d9   :  { %v2158_v37 = vpack.c.bf16 %v2157_v36, %v2156_v35 }
0x12db   :  { %5093 = vmatmul.mubr.msk.bf16.vlgmr.msra.gmra.mrb[44].mxu0 %vm2198_vm10, %v2158_v37 }
0x12dc   :  { %5116 = vmatprep.mubr.msk.bf16.mxu0 %vm5573_vm0, %v5571_v1  ;;  %5113 = vmatpush3.bf16.msra.mxu0 %v5457_v63 }
0x12dd   :  { %5114 = vmatprep.subr.bf16.mxu0 %v5571_v1 }
0x12e0   :  { %5115 = vmatpush3.bf16.msra.mxu0 %v5459_v3 }
0x13ae   :  { %v2236_v39 = vpop.f32.mrb[44].mxu0 }
0x13af   :  { %v2237_v40 = vadd.f32 %v4561_v38, %v2236_v39  ;;  %v5094_v41 = vpop.f32.mrb[45].mxu0 }
0x13b0   :  { %v2239_v42 = vpop.f32.mrb[46].mxu0 }
0x13b1   :  { %v2240_v43 = vadd.f32 %v4561_v38, %v2239_v42  ;;  %v5095_v44 = vpop.f32.mrb[47].mxu0  ;;  %v2243_v45 = vadd.f32 %v2237_v40, %v2086_v22  ;;  %v5462_v42 = vld [vmem:[%s5961_s18 + $0x10] sm:$0xff]  }
0x13b2   :  { %v5463_v44 = vld [vmem:[%s5961_s18 + $0x18] sm:$0xff]  }
0x13b3   :  { %v2247_v46 = vsel %vm283_vm5, %v2243_v45, 0.0  ;;  %v2244_v47 = vadd.f32 %v2240_v43, %v2087_v23 }
0x13b4   :  { %2248 = vadd.xlane.f32.xlu1 %v2247_v46  ;;  %v5465_v46 = vld [vmem:[%s5966_s22 + $0x18] sm:$0xff]  }
0x13b5   :  { %v2250_v49 = vsel %vm283_vm5, %v2244_v47, 0.0 }
0x13b6   :  { %2251 = vadd.xlane.f32.xlu0 %v2250_v49 }
0x1441   :  { %v2249_v50 = vpop.xlane.xlu1 %2248 }
0x1442   :  { %v2253_v52 = vmul.f32 0.03125, %v2249_v50 }
0x1443   :  { %v2252_v54 = vpop.xlane.xlu0 %2251 }
0x1444   :  { %v2255_v55 = vsub.f32 %v2243_v45, %v2253_v52  ;;  %v2254_v53 = vmul.f32 0.03125, %v2252_v54  ;;  %v5464_v45 = vld [vmem:[%s5966_s22 + $0x10] sm:$0xff]   ;;  %v6050_v54 = vld [vmem:[%s5740_s11 + $0x8] sm:$0xff] }
0x1446   :  { %v2256_v56 = vsub.f32 %v2244_v47, %v2254_v53  ;;  %v2257_v57 = vmul.f32 %v2255_v55, %v2255_v55  ;;  %v6054_v53 = vld [vmem:[%s5740_s11] sm:$0xff]  ;;  %s5598_s11 = smov 28  }
0x1447   :  { %s6095_s21 = sld [smem:[%s6282_s0 + %s5598_s11]]  }
0x1448   :  { %v2259_v58 = vsel %vm283_vm5, %v2257_v57, 0.0  ;;  %v2258_v59 = vmul.f32 %v2256_v56, %v2256_v56 }
0x1449   :  { %2260 = vadd.xlane.f32.xlu1 %v2259_v58 }
0x144a   :  { %v2262_v60 = vsel %vm283_vm5, %v2258_v59, 0.0 }
0x144b   :  { %2263 = vadd.xlane.f32.xlu0 %v2262_v60 }
0x14d6   :  { %v2261_v61 = vpop.xlane.xlu1 %2260 }
0x14d7   :  { %v2265_v4 = vmul.f32 0.03125, %v2261_v61  ;;  %v4610_v61 = vld [vmem:[%s6013_s14 + $0x1] ss:$0 sm:$0xff] }
0x14d8   :  { %v2264_v5 = vpop.xlane.xlu0 %2263 }
0x14d9   :  { %v2267_v28 = vadd.f32 1e-05, %v2265_v4  ;;  %v2266_v29 = vmul.f32 0.03125, %v2264_v5 }
0x14db   :  { %5524 = vrsqrt.f32 %v2267_v28  ;;  %v2268_v32 = vadd.f32 1e-05, %v2266_v29 }
0x14dd   :  { %5526 = vrsqrt.f32 %v2268_v32 }
0x14e5   :  { %v5525_v6 = vpop.eup %5524 }
0x14e6   :  { %v2271_v8 = vmul.f32 %v5525_v6, %v2255_v55 }
0x14e7   :  { %v5527_v9 = vpop.eup %5526 }
0x14e8   :  { %v2279_v10 = vmul.f32 %v4567_v7, %v2271_v8  ;;  %v2272_v11 = vmul.f32 %v5527_v9, %v2256_v56 }
0x14ea   :  { %v2280_v13 = vmul.f32 %v4567_v7, %v2272_v11  ;;  %v5986_v48 = vadd.f32 %v4568_v12, %v2279_v10 }
0x14ec   :  { %v5988_v51 = vadd.f32 %v4568_v12, %v2280_v13 }
0x14ee   :  { %v5993_v16 = vpack.c.bf16 %v5988_v51, %v5986_v48 }
0x14f0   :  { %5101 = vmatmul.mubr.msk.bf16.vlgmr.msra.gmra.mrb[48].mxu1 %vm283_vm5, %v5993_v16  ;;  %5117 = vmatmul.mubr.msk.bf16.vlgmr.msra.gmra.mrb[48].mxu0 %vm283_vm5, %v5993_v16 }
0x14f1   :  { %5105 = vmatpush3.bf16.msra.mxu1 %v5460_v15  ;;  %5108 = vmatprep.mubr.msk.bf16.mxu1 %vm5573_vm0, %v5571_v1 }
0x14f2   :  { %5106 = vmatprep.subr.bf16.mxu1 %v5571_v1 }
0x14f5   :  { %5107 = vmatpush3.bf16.msra.mxu1 %v5461_v18 }
0x14f8   :  { %5109 = vmatmul.mubr.msk.bf16.vlgmr.msra.gmra.mrb[52].mxu1 %vm283_vm5, %v5993_v16 }
0x15c3   :  { %v2350_v20 = vpop.f32.mrb[48].mxu1  ;;  %v2478_v22 = vpop.f32.mrb[48].mxu0 }
0x15c4   :  { %v2351_v23 = vadd.f32 %v4569_v19, %v2350_v20  ;;  %v5102_v24 = vpop.f32.mrb[49].mxu1  ;;  %v5118_v25 = vpop.f32.mrb[49].mxu0  ;;  %v2479_v30 = vadd.f32 %v4577_v21, %v2478_v22 }
0x15c5   :  { %v2353_v26 = vpop.f32.mrb[50].mxu1  ;;  %v2481_v27 = vpop.f32.mrb[50].mxu0 }
0x15c6   :  { %v2482_v31 = vadd.f32 %v4577_v21, %v2481_v27  ;;  %v5103_v17 = vpop.f32.mrb[51].mxu1  ;;  %v5119_v14 = vpop.f32.mrb[51].mxu0  ;;  %5124 = vmatprep.mubr.msk.f32.mxu1 %vm456_vm6, %v2351_v23  ;;  %v2354_v43 = vadd.f32 %v4569_v19, %v2353_v26  ;;  %v5466_v26 = vld [vmem:[%s5973_s26 + $0x10] sm:$0xff]  }
0x15c8   :  { %v5346_v33 = vpack.c.bf16 %v2482_v31, %v2479_v30  ;;  %v5467_v30 = vld [vmem:[%s5973_s26 + $0x18] sm:$0xff]  }
0x15ca   :  { %5347 = vmatprep.subr.bf16.mxu0 %v5346_v33 }
0x15cb   :  { %v2414_v35 = vpop.f32.mrb[52].mxu1  ;;  %5349 = vmatpush3.bf16.msra.mxu0 %v5346_v33 }
0x15cc   :  { %v5110_v36 = vpop.f32.mrb[53].mxu1  ;;  %5142 = vmatprep.subr.bf16.mxu0 %v5571_v1  ;;  %v2415_v38 = vadd.f32 %v4573_v34, %v2414_v35 }
0x15cd   :  { %v2417_v37 = vpop.f32.mrb[54].mxu1 }
0x15ce   :  { %v2418_v39 = vadd.f32 %v4573_v34, %v2417_v37  ;;  %v5111_v40 = vpop.f32.mrb[55].mxu1  ;;  %v4601_v34 = vld [vmem:[%s6020_s17 + $0x1] ss:$0 sm:$0xff] }
0x15d0   :  { %v5340_v41 = vpack.c.bf16 %v2418_v39, %v2415_v38 }
0x15d2   :  { %5342 = vmatprep.subr.msk.bf16.mxu1 %vm5725_vm7, %v5340_v41 }
0x15d3   :  { %5345 = vmatpush3.bf16.xpose.msk.msra.mxu1 %vm5725_vm7, %v5340_v41 }
0x15d4   :  { %5134 = vmatprep.subr.bf16.mxu1 %v5571_v1 }
0x15da   :  { %5125 = vmatmul.mubr.msk.f32.vlgmr.msra.gmra.mrb[42].mxu1 %vm456_vm6, %v2354_v43 }
0x15db   :  { %5135 = vmatpush3.bf16.msra.mxu1 %v5462_v42  ;;  %5138 = vmatprep.mubr.msk.bf16.mxu1 %vm5573_vm0, %v5571_v1 }
0x15dc   :  { %5136 = vmatprep.subr.bf16.mxu1 %v5571_v1 }
0x15df   :  { %5137 = vmatpush3.bf16.msra.mxu1 %v5463_v44 }
0x15e0   :  { %5150 = vmatprep.subr.bf16.mxu1 %v5571_v1 }
0x15e2   :  { %5139 = vmatmul.mubr.msk.bf16.vlgmr.msra.gmra.mrb[56].mxu1 %vm283_vm5, %v5993_v16 }
0x15e3   :  { %5151 = vmatpush3.bf16.msra.mxu1 %v5464_v45  ;;  %5154 = vmatprep.mubr.msk.bf16.mxu1 %vm5573_vm0, %v5571_v1 }
0x15e4   :  { %5152 = vmatprep.subr.bf16.mxu1 %v5571_v1 }
0x15e7   :  { %5153 = vmatpush3.bf16.msra.mxu1 %v5465_v46 }
0x15e8   :  { %5172 = vmatprep.subr.bf16.mxu1 %v5571_v1 }
0x15ea   :  { %5155 = vmatmul.mubr.msk.bf16.vlgmr.msra.gmra.mrb[60].mxu1 %vm283_vm5, %v5993_v16 }
0x15eb   :  { %5174 = vmatprep.mubr.msk.bf16.mxu1 %vm5573_vm0, %v5571_v1 }
0x16ad   :  { %v5126_v47 = vpop.f32.mrb[42].mxu1 }
0x16ae   :  { %v2573_v49 = vmul.f32 0.35355338, %v5126_v47  ;;  %v2563_v50 = vpop.f32.mrb[43].mxu1 }
0x16af   :  { %v2572_v52 = vmul.f32 0.35355338, %v2563_v50 }
0x16b0   :  { %v2575_v55 = vadd.f32 %v6050_v54, %v2573_v49 }
0x16b1   :  { %v2574_v56 = vadd.f32 %v6054_v53, %v2572_v52 }
0x16b2   :  { %v2579_v57 = vsel %vm548_vm8, %v2575_v55, -inf }
0x16b3   :  { %2580 = vmax.xlane.f32.xlu0 %v2579_v57  ;;  %v2576_v58 = vsel %vm548_vm8, %v2574_v56, -inf }
0x16b4   :  { %2577 = vmax.xlane.f32.xlu1 %v2576_v58 }
0x16b5   :  { %v2740_v59 = vpop.f32.mrb[56].mxu1 }
0x16b6   :  { %v5140_v60 = vpop.f32.mrb[57].mxu1  ;;  %v2741_v31 = vadd.f32 %v4592_v62, %v2740_v59 }
0x16b7   :  { %v2743_v63 = vpop.f32.mrb[58].mxu1 }
0x16b8   :  { %v2744_v2 = vadd.f32 %v4592_v62, %v2743_v63  ;;  %v5141_v3 = vpop.f32.mrb[59].mxu1 }
0x16b9   :  { %v4620_v3 = vld [vmem:[%s6095_s21 + $0x4] sm:$0xf] }
0x16bd   :  { %v2872_v4 = vpop.f32.mrb[60].mxu1 }
0x16be   :  { %v5156_v5 = vpop.f32.mrb[61].mxu1  ;;  %v2873_v29 = vadd.f32 %v4610_v61, %v2872_v4 }
0x16bf   :  { %v2875_v28 = vpop.f32.mrb[62].mxu1 }
0x16c0   :  { %v2876_v32 = vadd.f32 %v4610_v61, %v2875_v28  ;;  %v5157_v6 = vpop.f32.mrb[63].mxu1  ;;  %v3080_v61 = vsel %vm1052_vm9, %v4620_v3, 0 }
0x16c1   :  { %5173 = vmatpush3.bf16.msra.mxu1 %v3080_v61 }
0x16c2   :  { %v5356_v7 = vpack.c.bf16 %v2876_v32, %v2873_v29  ;;  %5184 = vmatprep.subr.bf16.mxu1 %v5571_v1  ;;  %v2680_v29 = vld [vmem:[%s6095_s21] sm:$0xf] }
0x1740   :  { %v2581_v8 = vpop.xlane.xlu0 %2580 }
0x1741   :  { %v2583_v9 = vsub.f32 %v2575_v55, %v2581_v8  ;;  %v2578_v10 = vpop.xlane.xlu1 %2577  ;;  %v3127_v8 = vsel %vm1052_vm9, %v2680_v29, 0 }
0x1742   :  { %v2582_v11 = vsub.f32 %v2574_v56, %v2578_v10  ;;  %v5469_v10 = vld [vmem:[%s5973_s26 + $0x28] sm:$0xff]  }
0x1743   :  { %v2586_v12 = vmul.f32 1.442695, %v2583_v9  ;;  %v5468_v9 = vld [vmem:[%s5973_s26 + $0x20] sm:$0xff]  }
0x1744   :  { %v2584_v13 = vmul.f32 1.442695, %v2582_v11 }
0x1745   :  { %5528 = vpow2.f32 %v2586_v12 }
0x1746   :  { %5530 = vpow2.f32 %v2584_v13  ;;  %v5470_v13 = vld [vmem:[%s5961_s18 + $0x20] sm:$0xff]  }
0x174f   :  { %v5529_v15 = vpop.eup %5528 }
0x1750   :  { %v5531_v18 = vpop.eup %5530  ;;  %v2591_v19 = vsel %vm548_vm8, %v5529_v15, 0.0 }
0x1751   :  { %2592 = vadd.xlane.f32.xlu0 %v2591_v19  ;;  %v2588_v20 = vsel %vm548_vm8, %v5531_v18, 0.0 }
0x1752   :  { %2589 = vadd.xlane.f32.xlu1 %v2588_v20  ;;  %v5471_v20 = vld [vmem:[%s5961_s18 + $0x28] sm:$0xff]  }
0x17de   :  { %v2593_v21 = vpop.xlane.xlu0 %2592 }
0x17df   :  { %5532 = vrcp.f32 %v2593_v21  ;;  %v2590_v22 = vpop.xlane.xlu1 %2589 }
0x17e0   :  { %5534 = vrcp.f32 %v2590_v22 }
0x17e9   :  { %v5533_v23 = vpop.eup %5532 }
0x17ea   :  { %v5535_v24 = vpop.eup %5534  ;;  %v2597_v27 = vmul.f32 %v5533_v23, %v5529_v15  ;;  %v5472_v23 = vld [vmem:[%s5966_s22 + $0x20] sm:$0xff]  }
0x17eb   :  { %v2596_v25 = vmul.f32 %v5535_v24, %v5531_v18  ;;  %v4637_v24 = vld [vmem:[%s6020_s17 + $0x2] ss:$0 sm:$0xff] }
0x17ed   :  { %5131 = vmatprep.mubr.msk.f32.mxu0 %vm548_vm8, %v2596_v25 }
0x17ee   :  { %5132 = vmatmul.mubr.msk.f32.vlgmr.msra.gmra.mrb[30].mxu0 %vm548_vm8, %v2597_v27  ;;  %v5473_v27 = vld [vmem:[%s5966_s22 + $0x28] sm:$0xff]  }
0x17ef   :  { %5143 = vmatpush3.bf16.msra.mxu0 %v5466_v26  ;;  %5146 = vmatprep.mubr.msk.bf16.mxu0 %vm5573_vm0, %v5571_v1 }
0x17f0   :  { %5144 = vmatprep.subr.bf16.mxu0 %v5571_v1 }
0x17f3   :  { %5145 = vmatpush3.bf16.msra.mxu0 %v5467_v30 }
0x17f6   :  { %5147 = vmatmul.mubr.msk.bf16.vlgmr.msra.gmra.mrb[52].mxu0 %vm283_vm5, %v5993_v16 }
0x17f7   :  { %5162 = vmatprep.mubr.msk.f32.mxu0 %vm456_vm6, %v2741_v31 }
0x18c1   :  { %v6073_v17 = vpop.f32.mrb[30].mxu0 }
0x18c2   :  { %v6075_v14 = vpop.f32.mrb[31].mxu0 }
0x18c3   :  { %v2679_v33 = vpack.c.bf16 %v6073_v17, %v6075_v14 }
0x18c9   :  { %v2806_v35 = vpop.f32.mrb[52].mxu0 }
0x18ca   :  { %v5148_v36 = vpop.f32.mrb[53].mxu0  ;;  %v2807_v38 = vadd.f32 %v4601_v34, %v2806_v35 }
0x18cb   :  { %v2809_v37 = vpop.f32.mrb[54].mxu0 }
0x18cc   :  { %v2810_v39 = vadd.f32 %v4601_v34, %v2809_v37  ;;  %v5149_v40 = vpop.f32.mrb[55].mxu0 }
0x18cd   :  { %v4628_v40 = vld [vmem:[%s6008_s8 + $0x2] ss:$0 sm:$0xff] }
0x18ce   :  { %v5350_v41 = vpack.c.bf16 %v2810_v39, %v2807_v38 }
0x18d0   :  { %5352 = vmatprep.subr.msk.bf16.mxu0 %vm5725_vm7, %v5350_v41 }
0x18d1   :  { %5355 = vmatpush3.bf16.xpose.msk.msra.mxu0 %vm5725_vm7, %v5350_v41 }
0x18d2   :  { %5357 = vmatprep.subr.bf16.mxu0 %v5356_v7 }
0x18d8   :  { %5163 = vmatmul.mubr.msk.f32.vlgmr.msra.gmra.mrb[56].mxu0 %vm456_vm6, %v2744_v2 }
0x18d9   :  { %5359 = vmatpush3.bf16.msra.mxu0 %v5356_v7 }
0x18da   :  { %5178 = vmatprep.subr.bf16.mxu0 %v5571_v1 }
0x19ab   :  { %v5164_v42 = vpop.f32.mrb[56].mxu0 }
0x19ac   :  { %v2967_v43 = vmul.f32 0.35355338, %v5164_v42  ;;  %v2957_v44 = vpop.f32.mrb[57].mxu0 }
0x19ad   :  { %v2966_v45 = vmul.f32 0.35355338, %v2957_v44 }
0x19ae   :  { %v2969_v46 = vadd.f32 %v6050_v54, %v2967_v43 }
0x19af   :  { %v2968_v47 = vadd.f32 %v6054_v53, %v2966_v45 }
0x19b0   :  { %v2973_v49 = vsel %vm548_vm8, %v2969_v46, -inf }
0x19b1   :  { %2974 = vmax.xlane.f32.xlu0 %v2973_v49  ;;  %v2970_v50 = vsel %vm548_vm8, %v2968_v47, -inf }
0x19b2   :  { %2971 = vmax.xlane.f32.xlu1 %v2970_v50 }
0x1a3e   :  { %v2975_v52 = vpop.xlane.xlu0 %2974 }
0x1a3f   :  { %v2977_v55 = vsub.f32 %v2969_v46, %v2975_v52  ;;  %v2972_v56 = vpop.xlane.xlu1 %2971 }
0x1a40   :  { %v2976_v57 = vsub.f32 %v2968_v47, %v2972_v56  ;;  %v4646_v47 = vld [vmem:[%s6013_s14 + $0x2] ss:$0 sm:$0xff] }
0x1a41   :  { %v2980_v58 = vmul.f32 1.442695, %v2977_v55 }
0x1a42   :  { %v2978_v59 = vmul.f32 1.442695, %v2976_v57 }
0x1a43   :  { %5536 = vpow2.f32 %v2980_v58 }
0x1a44   :  { %5538 = vpow2.f32 %v2978_v59 }
0x1a4d   :  { %v5537_v60 = vpop.eup %5536 }
0x1a4e   :  { %v5539_v62 = vpop.eup %5538  ;;  %v2985_v63 = vsel %vm548_vm8, %v5537_v60, 0.0 }
0x1a4f   :  { %2986 = vadd.xlane.f32.xlu0 %v2985_v63  ;;  %v2982_v2 = vsel %vm548_vm8, %v5539_v62, 0.0 }
0x1a50   :  { %2983 = vadd.xlane.f32.xlu1 %v2982_v2 }
0x1adc   :  { %v2987_v4 = vpop.xlane.xlu0 %2986 }
0x1add   :  { %5540 = vrcp.f32 %v2987_v4  ;;  %v2984_v5 = vpop.xlane.xlu1 %2983 }
0x1ade   :  { %5542 = vrcp.f32 %v2984_v5 }
0x1ae7   :  { %v5541_v28 = vpop.eup %5540 }
0x1ae8   :  { %v5543_v32 = vpop.eup %5542  ;;  %v2991_v7 = vmul.f32 %v5541_v28, %v5537_v60 }
0x1ae9   :  { %v2990_v6 = vmul.f32 %v5543_v32, %v5539_v62 }
0x1aeb   :  { %5169 = vmatprep.mubr.msk.f32.mxu0 %vm548_vm8, %v2990_v6 }
0x1aec   :  { %5170 = vmatmul.mubr.msk.f32.vlgmr.msra.gmra.mrb[58].mxu0 %vm548_vm8, %v2991_v7 }
0x1aed   :  { %5179 = vmatpush3.bf16.msra.mxu0 %v3127_v8  ;;  %5180 = vmatprep.mubr.msk.bf16.mxu0 %vm5573_vm0, %v5571_v1 }
0x1aee   :  { %5192 = vmatprep.subr.bf16.mxu0 %v5571_v1 }
0x1af0   :  { %5181 = vmatmul.mubr.msk.bf16.vlgmr.msra.gmra.mrb[60].mxu0 %vm456_vm6, %v2679_v33 }
0x1af1   :  { %5193 = vmatpush3.bf16.msra.mxu0 %v5468_v9  ;;  %5196 = vmatprep.mubr.msk.bf16.mxu0 %vm5573_vm0, %v5571_v1 }
0x1af2   :  { %5194 = vmatprep.subr.bf16.mxu0 %v5571_v1 }
0x1af5   :  { %5195 = vmatpush3.bf16.msra.mxu0 %v5469_v10 }
0x1af8   :  { %5197 = vmatmul.mubr.msk.bf16.vlgmr.msra.gmra.mrb[64].mxu0 %vm283_vm5, %v5993_v16 }
0x1bbf   :  { %v5171_v11 = vpop.f32.mrb[58].mxu0 }
0x1bc0   :  { %v3064_v12 = vpop.f32.mrb[59].mxu0 }
0x1bc1   :  { %v3073_v15 = vpack.c.bf16 %v5171_v11, %v3064_v12  ;;  %v4656_v12 = vld [vmem:[%s6095_s21 + $0x8] sm:$0xf] }
0x1bc3   :  { %5175 = vmatmul.mubr.msk.bf16.vlgmr.msra.gmra.mrb[64].mxu1 %vm456_vm6, %v3073_v15  ;;  %v3163_v18 = vpop.f32.mrb[60].mxu0 }
0x1bc4   :  { %v5182_v19 = vpop.f32.mrb[61].mxu0  ;;  %5185 = vmatpush3.bf16.msra.mxu1 %v5470_v13  ;;  %5188 = vmatprep.mubr.msk.bf16.mxu1 %vm5573_vm0, %v5571_v1  ;;  %v3569_v13 = vsel %vm1052_vm9, %v4656_v12, 0 }
0x1bc5   :  { %v3166_v21 = vpop.f32.mrb[62].mxu0  ;;  %5186 = vmatprep.subr.bf16.mxu1 %v5571_v1 }
0x1bc6   :  { %v5183_v22 = vpop.f32.mrb[63].mxu0 }
0x1bc7   :  { %v5474_v22 = vld [vmem:[%s5961_s18 + $0x30] sm:$0xff]  }
0x1bc8   :  { %5187 = vmatpush3.bf16.msra.mxu1 %v5471_v20 }
0x1bc9   :  { %5200 = vmatprep.subr.bf16.mxu1 %v5571_v1 }
0x1bcb   :  { %5189 = vmatmul.mubr.msk.bf16.vlgmr.msra.gmra.mrb[68].mxu1 %vm283_vm5, %v5993_v16  ;;  %v3295_v25 = vpop.f32.mrb[64].mxu0 }
0x1bcc   :  { %v5198_v26 = vpop.f32.mrb[65].mxu0  ;;  %5201 = vmatpush3.bf16.msra.mxu1 %v5472_v23  ;;  %5204 = vmatprep.mubr.msk.bf16.mxu1 %vm5573_vm0, %v5571_v1  ;;  %v3296_v31 = vadd.f32 %v4637_v24, %v3295_v25  ;;  %v5476_v25 = vld [vmem:[%s5966_s22 + $0x30] sm:$0xff]  }
0x1bcd   :  { %v3298_v30 = vpop.f32.mrb[66].mxu0  ;;  %5202 = vmatprep.subr.bf16.mxu1 %v5571_v1  ;;  %v5477_v26 = vld [vmem:[%s5966_s22 + $0x38] sm:$0xff]   ;;  %s4390_s22 = sld [smem:[%s6282_s0 + %s5606_s20]]  }
0x1bce   :  { %v3299_v17 = vadd.f32 %v4637_v24, %v3298_v30  ;;  %v5199_v14 = vpop.f32.mrb[67].mxu0  ;;  %v5475_v24 = vld [vmem:[%s5961_s18 + $0x38] sm:$0xff]   ;;  %s5599_s18 = smov 29  }
0x1bcf   :  { %v5479_v14 = vld [vmem:[%s5973_s26 + $0x38] sm:$0xff]   ;;  %s4415_s24 = sld [smem:[%s6282_s0 + %s5599_s18]]  }
0x1bd0   :  { %v5360_v33 = vpack.c.bf16 %v3299_v17, %v3296_v31  ;;  %5203 = vmatpush3.bf16.msra.mxu1 %v5473_v27  ;;  %v5478_v31 = vld [vmem:[%s5973_s26 + $0x30] sm:$0xff]   ;;  %s4422_s26 = sld [smem:[%s6282_s0 + %s5607_s23]]  }
0x1bd1   :  { %5222 = vmatprep.subr.bf16.mxu1 %v5571_v1 }
0x1bd2   :  { %5362 = vmatprep.subr.msk.bf16.mxu0 %vm5725_vm7, %v5360_v33 }
0x1bd3   :  { %5205 = vmatmul.mubr.msk.bf16.vlgmr.msra.gmra.mrb[72].mxu1 %vm283_vm5, %v5993_v16  ;;  %5365 = vmatpush3.bf16.xpose.msk.msra.mxu0 %vm5725_vm7, %v5360_v33  ;;  %v4663_v33 = vld [vmem:[%s6008_s8 + $0x3] ss:$0 sm:$0xff]  ;;  %s4424_s8 = sld [smem:[%s6282_s0 + %s5610_s5]]  }
0x1bd4   :  { %5224 = vmatprep.mubr.msk.bf16.mxu1 %vm5573_vm0, %v5571_v1  ;;  %5223 = vmatpush3.bf16.msra.mxu1 %v3569_v13 }
0x1bd5   :  { %5236 = vmatprep.subr.bf16.mxu1 %v5571_v1 }
0x1c96   :  { %v3116_v34 = vpop.f32.mrb[64].mxu1 }
0x1c97   :  { %v6139_v35 = vadd.f32 %v3163_v18, %v3116_v34  ;;  %v5176_v36 = vpop.f32.mrb[65].mxu1 }
0x1c98   :  { %v3119_v37 = vpop.f32.mrb[66].mxu1 }
0x1c99   :  { %v6141_v38 = vadd.f32 %v3166_v21, %v3119_v37  ;;  %v5177_v39 = vpop.f32.mrb[67].mxu1 }
0x1c9e   :  { %v3229_v41 = vpop.f32.mrb[68].mxu1 }
0x1c9f   :  { %v3230_v42 = vadd.f32 %v4628_v40, %v3229_v41  ;;  %v5190_v43 = vpop.f32.mrb[69].mxu1 }
0x1ca0   :  { %v3232_v44 = vpop.f32.mrb[70].mxu1 }
0x1ca1   :  { %v3233_v45 = vadd.f32 %v4628_v40, %v3232_v44  ;;  %v5191_v46 = vpop.f32.mrb[71].mxu1  ;;  %5212 = vmatprep.mubr.msk.f32.mxu0 %vm456_vm6, %v3230_v42  ;;  %v4681_v42 = vld [vmem:[%s6013_s14 + $0x3] ss:$0 sm:$0xff] }
0x1ca3   :  { %5213 = vmatmul.mubr.msk.f32.vlgmr.msra.gmra.mrb[68].mxu0 %vm456_vm6, %v3233_v45 }
0x1ca6   :  { %v3361_v49 = vpop.f32.mrb[72].mxu1 }
0x1ca7   :  { %v5206_v50 = vpop.f32.mrb[73].mxu1  ;;  %v3362_v55 = vadd.f32 %v4646_v47, %v3361_v49 }
0x1ca8   :  { %v3364_v52 = vpop.f32.mrb[74].mxu1 }
0x1ca9   :  { %v3365_v56 = vadd.f32 %v4646_v47, %v3364_v52  ;;  %v5207_v57 = vpop.f32.mrb[75].mxu1 }
0x1cab   :  { %v5366_v58 = vpack.c.bf16 %v3365_v56, %v3362_v55 }
0x1cad   :  { %5367 = vmatprep.subr.bf16.mxu0 %v5366_v58 }
0x1cae   :  { %5369 = vmatpush3.bf16.msra.mxu0 %v5366_v58 }
0x1caf   :  { %5228 = vmatprep.subr.bf16.mxu0 %v5571_v1 }
0x1d76   :  { %v5214_v59 = vpop.f32.mrb[68].mxu0 }
0x1d77   :  { %v3456_v60 = vmul.f32 0.35355338, %v5214_v59  ;;  %v3446_v62 = vpop.f32.mrb[69].mxu0  ;;  %v4672_v59 = vld [vmem:[%s6020_s17 + $0x3] ss:$0 sm:$0xff] }
0x1d78   :  { %v3455_v63 = vmul.f32 0.35355338, %v3446_v62 }
0x1d79   :  { %v3458_v2 = vadd.f32 %v6050_v54, %v3456_v60 }
0x1d7a   :  { %v3457_v3 = vadd.f32 %v6054_v53, %v3455_v63 }
0x1d7b   :  { %v3462_v61 = vsel %vm548_vm8, %v3458_v2, -inf }
0x1d7c   :  { %3463 = vmax.xlane.f32.xlu0 %v3462_v61  ;;  %v3459_v4 = vsel %vm548_vm8, %v3457_v3, -inf }
0x1d7d   :  { %3460 = vmax.xlane.f32.xlu1 %v3459_v4 }
0x1e09   :  { %v3464_v5 = vpop.xlane.xlu0 %3463 }
0x1e0a   :  { %v3466_v28 = vsub.f32 %v3458_v2, %v3464_v5  ;;  %v3461_v29 = vpop.xlane.xlu1 %3460 }
0x1e0b   :  { %v3465_v32 = vsub.f32 %v3457_v3, %v3461_v29 }
0x1e0c   :  { %v3469_v6 = vmul.f32 1.442695, %v3466_v28 }
0x1e0d   :  { %v3467_v7 = vmul.f32 1.442695, %v3465_v32 }
0x1e0e   :  { %5544 = vpow2.f32 %v3469_v6 }
0x1e0f   :  { %5546 = vpow2.f32 %v3467_v7 }
0x1e18   :  { %v5545_v8 = vpop.eup %5544 }
0x1e19   :  { %v5547_v9 = vpop.eup %5546  ;;  %v3474_v10 = vsel %vm548_vm8, %v5545_v8, 0.0 }
0x1e1a   :  { %3475 = vadd.xlane.f32.xlu0 %v3474_v10  ;;  %v3471_v11 = vsel %vm548_vm8, %v5547_v9, 0.0 }
0x1e1b   :  { %3472 = vadd.xlane.f32.xlu1 %v3471_v11 }
0x1ea7   :  { %v3476_v15 = vpop.xlane.xlu0 %3475 }
0x1ea8   :  { %5548 = vrcp.f32 %v3476_v15  ;;  %v3473_v18 = vpop.xlane.xlu1 %3472 }
0x1ea9   :  { %5550 = vrcp.f32 %v3473_v18  ;;  %v4691_v18 = vld [vmem:[%s6095_s21 + $0xc] sm:$0xf] }
0x1eb2   :  { %v5549_v19 = vpop.eup %5548 }
0x1eb3   :  { %v5551_v20 = vpop.eup %5550  ;;  %v3480_v23 = vmul.f32 %v5549_v19, %v5545_v8  ;;  %v4013_v19 = vsel %vm1052_vm9, %v4691_v18, 0 }
0x1eb4   :  { %v3479_v21 = vmul.f32 %v5551_v20, %v5547_v9 }
0x1eb6   :  { %5219 = vmatprep.mubr.msk.f32.mxu0 %vm548_vm8, %v3479_v21 }
0x1eb7   :  { %5220 = vmatmul.mubr.msk.f32.vlgmr.msra.gmra.mrb[70].mxu0 %vm548_vm8, %v3480_v23 }
0x1eb8   :  { %5229 = vmatpush3.bf16.msra.mxu0 %v5474_v22  ;;  %5232 = vmatprep.mubr.msk.bf16.mxu0 %vm5573_vm0, %v5571_v1 }
0x1eb9   :  { %5230 = vmatprep.subr.bf16.mxu0 %v5571_v1 }
0x1ebc   :  { %5231 = vmatpush3.bf16.msra.mxu0 %v5475_v24 }
0x1ebd   :  { %5244 = vmatprep.subr.bf16.mxu0 %v5571_v1 }
0x1ebf   :  { %5233 = vmatmul.mubr.msk.bf16.vlgmr.msra.gmra.mrb[72].mxu0 %vm283_vm5, %v5993_v16 }
0x1ec0   :  { %5245 = vmatpush3.bf16.msra.mxu0 %v5476_v25  ;;  %5248 = vmatprep.mubr.msk.bf16.mxu0 %vm5573_vm0, %v5571_v1 }
0x1ec1   :  { %5246 = vmatprep.subr.bf16.mxu0 %v5571_v1 }
0x1ec4   :  { %5247 = vmatpush3.bf16.msra.mxu0 %v5477_v26 }
0x1ec5   :  { %5266 = vmatprep.subr.bf16.mxu0 %v5571_v1 }
0x1ec7   :  { %5249 = vmatmul.mubr.msk.bf16.vlgmr.msra.gmra.mrb[76].mxu0 %vm283_vm5, %v5993_v16 }
0x1ec8   :  { %5268 = vmatprep.mubr.msk.bf16.mxu0 %vm5573_vm0, %v5571_v1  ;;  %5267 = vmatpush3.bf16.msra.mxu0 %v4013_v19 }
0x1ec9   :  { %5280 = vmatprep.subr.bf16.mxu0 %v5571_v1 }
0x1f8a   :  { %v5221_v27 = vpop.f32.mrb[70].mxu0 }
0x1f8b   :  { %v3553_v30 = vpop.f32.mrb[71].mxu0 }
0x1f8c   :  { %v3562_v17 = vpack.c.bf16 %v5221_v27, %v3553_v30 }
0x1f8e   :  { %5225 = vmatmul.mubr.msk.bf16.vlgmr.msra.gmra.mrb[76].mxu1 %vm456_vm6, %v3562_v17  ;;  %v4693_v17 = vld [vmem:[%s4415_s24] ss:$0 sm:$0xff] }
0x1f8f   :  { %5237 = vmatpush3.bf16.msra.mxu1 %v5478_v31  ;;  %5240 = vmatprep.mubr.msk.bf16.mxu1 %vm5573_vm0, %v5571_v1 }
0x1f90   :  { %5238 = vmatprep.subr.bf16.mxu1 %v5571_v1 }
0x1f92   :  { %v3673_v34 = vpop.f32.mrb[72].mxu0 }
0x1f93   :  { %v5234_v36 = vpop.f32.mrb[73].mxu0  ;;  %5239 = vmatpush3.bf16.msra.mxu1 %v5479_v14  ;;  %v3674_v39 = vadd.f32 %v4663_v33, %v3673_v34 }
0x1f94   :  { %v3676_v37 = vpop.f32.mrb[74].mxu0 }
0x1f95   :  { %v3677_v40 = vadd.f32 %v4663_v33, %v3676_v37  ;;  %v5235_v41 = vpop.f32.mrb[75].mxu0 }
0x1f96   :  { %5241 = vmatmul.mubr.msk.bf16.vlgmr.msra.gmra.mrb[80].mxu1 %vm283_vm5, %v5993_v16 }
0x1f97   :  { %5256 = vmatprep.mubr.msk.f32.mxu1 %vm456_vm6, %v3674_v39 }
0x1f9a   :  { %v3805_v43 = vpop.f32.mrb[76].mxu0 }
0x1f9b   :  { %v5250_v44 = vpop.f32.mrb[77].mxu0  ;;  %v3806_v46 = vadd.f32 %v4681_v42, %v3805_v43 }
0x1f9c   :  { %v3808_v45 = vpop.f32.mrb[78].mxu0 }
0x1f9d   :  { %v3809_v47 = vadd.f32 %v4681_v42, %v3808_v45  ;;  %v5251_v49 = vpop.f32.mrb[79].mxu0 }
0x1f9f   :  { %v5376_v50 = vpack.c.bf16 %v3809_v47, %v3806_v46 }
0x2061   :  { %v3605_v52 = vpop.f32.mrb[76].mxu1 }
0x2062   :  { %v6189_v55 = vadd.f32 %v3605_v52, %v6139_v35  ;;  %v5226_v56 = vpop.f32.mrb[77].mxu1 }
0x2063   :  { %v3608_v57 = vpop.f32.mrb[78].mxu1 }
0x2064   :  { %v6192_v58 = vadd.f32 %v3608_v57, %v6141_v38  ;;  %v5227_v16 = vpop.f32.mrb[79].mxu1 }
0x2065   :  { %v5482_v16 = vld [vmem:[%s6236_s2] sm:$0xff]  }
0x2069   :  { %v3739_v60 = vpop.f32.mrb[80].mxu1 }
0x206a   :  { %v5242_v62 = vpop.f32.mrb[81].mxu1  ;;  %v3740_v2 = vadd.f32 %v4672_v59, %v3739_v60 }
0x206b   :  { %v3742_v63 = vpop.f32.mrb[82].mxu1 }
0x206c   :  { %v3743_v3 = vadd.f32 %v4672_v59, %v3742_v63  ;;  %v5243_v61 = vpop.f32.mrb[83].mxu1  ;;  %v5483_v59 = vld [vmem:[%s6236_s2 + $0x8] sm:$0xff]  }
0x206e   :  { %v5370_v4 = vpack.c.bf16 %v3743_v3, %v3740_v2 }
0x2070   :  { %5372 = vmatprep.subr.msk.bf16.mxu1 %vm5725_vm7, %v5370_v4 }
0x2071   :  { %5375 = vmatpush3.bf16.xpose.msk.msra.mxu1 %vm5725_vm7, %v5370_v4 }
0x2072   :  { %5377 = vmatprep.subr.bf16.mxu1 %v5376_v50 }
0x2078   :  { %5257 = vmatmul.mubr.msk.f32.vlgmr.msra.gmra.mrb[84].mxu1 %vm456_vm6, %v3677_v40 }
0x2079   :  { %5379 = vmatpush3.bf16.msra.mxu1 %v5376_v50 }
0x207a   :  { %5272 = vmatprep.subr.bf16.mxu1 %v5571_v1 }
0x214b   :  { %v5258_v35 = vpop.f32.mrb[84].mxu1 }
0x214c   :  { %v3900_v38 = vmul.f32 0.35355338, %v5258_v35  ;;  %v3890_v5 = vpop.f32.mrb[85].mxu1  ;;  %v4694_v35 = vld [vmem:[%s4416_s6] ss:$0 sm:$0xff] }
0x214d   :  { %v3899_v28 = vmul.f32 0.35355338, %v3890_v5 }
0x214e   :  { %v3902_v29 = vadd.f32 %v6050_v54, %v3900_v38 }
0x214f   :  { %v3901_v32 = vadd.f32 %v6054_v53, %v3899_v28 }
0x2150   :  { %v3906_v6 = vsel %vm548_vm8, %v3902_v29, -inf }
0x2151   :  { %3907 = vmax.xlane.f32.xlu0 %v3906_v6  ;;  %v3903_v0 = vsel %vm548_vm8, %v3901_v32, -inf }
0x2152   :  { %3904 = vmax.xlane.f32.xlu1 %v3903_v0 }
0x21de   :  { %v3908_v7 = vpop.xlane.xlu0 %3907 }
0x21df   :  { %v3910_v8 = vsub.f32 %v3902_v29, %v3908_v7  ;;  %v3905_v9 = vpop.xlane.xlu1 %3904 }
0x21e0   :  { %v3909_v10 = vsub.f32 %v3901_v32, %v3905_v9  ;;  %v4695_v32 = vld [vmem:[%s4417_s10] ss:$0 sm:$0xff]  ;;  %v5484_v9 = vld [vmem:[%s6236_s2 + $0x10] sm:$0xff]  }
0x21e1   :  { %v3913_v11 = vmul.f32 1.442695, %v3910_v8 }
0x21e2   :  { %v3911_v12 = vmul.f32 1.442695, %v3909_v10  ;;  %v5485_v10 = vld [vmem:[%s6236_s2 + $0x18] sm:$0xff]  }
0x21e3   :  { %5552 = vpow2.f32 %v3913_v11  ;;  %v4696_v11 = vld [vmem:[%s4419_s16] ss:$0 sm:$0xff] }
0x21e4   :  { %5554 = vpow2.f32 %v3911_v12 }
0x21ed   :  { %v5553_v13 = vpop.eup %5552 }
0x21ee   :  { %v5555_v15 = vpop.eup %5554  ;;  %v3918_v54 = vsel %vm548_vm8, %v5553_v13, 0.0 }
0x21ef   :  { %3919 = vadd.xlane.f32.xlu0 %v3918_v54  ;;  %v3915_v53 = vsel %vm548_vm8, %v5555_v15, 0.0 }
0x21f0   :  { %3916 = vadd.xlane.f32.xlu1 %v3915_v53 }
0x227c   :  { %v3920_v20 = vpop.xlane.xlu0 %3919 }
0x227d   :  { %5556 = vrcp.f32 %v3920_v20  ;;  %v3917_v21 = vpop.xlane.xlu1 %3916 }
0x227e   :  { %5558 = vrcp.f32 %v3917_v21 }
0x2287   :  { %v5557_v22 = vpop.eup %5556 }
0x2288   :  { %v5559_v23 = vpop.eup %5558  ;;  %v3924_v25 = vmul.f32 %v5557_v22, %v5553_v13  ;;  %v4700_v22 = vld [vmem:[%s4421_s19] ss:$0 sm:$0xff] }
0x2289   :  { %v3923_v24 = vmul.f32 %v5559_v23, %v5555_v15 }
0x228b   :  { %5263 = vmatprep.mubr.msk.f32.mxu1 %vm548_vm8, %v3923_v24 }
0x228c   :  { %5264 = vmatmul.mubr.msk.f32.vlgmr.msra.gmra.mrb[86].mxu1 %vm548_vm8, %v3924_v25 }
0x228d   :  { %5276 = vmatprep.mubr.msk.bf16.mxu1 %vm5573_vm0, %v5571_v1 }
0x235f   :  { %v5265_v26 = vpop.f32.mrb[86].mxu1 }
0x2360   :  { %v3997_v27 = vpop.f32.mrb[87].mxu1 }
0x2361   :  { %v4006_v30 = vpack.c.bf16 %v5265_v26, %v3997_v27 }
0x2363   :  { %5269 = vmatmul.mubr.msk.bf16.vlgmr.msra.gmra.mrb[80].mxu0 %vm456_vm6, %v4006_v30 }
0x2364   :  { %5288 = vmatprep.mubr.msk.bf16.mxu0 %vm5573_vm0, %v5571_v1  ;;  %5281 = vmatpush3.bf16.msra.mxu0 %v5482_v16 }
0x2365   :  { %5282 = vmatprep.subr.bf16.mxu0 %v5571_v1 }
0x2368   :  { %5283 = vmatpush3.bf16.msra.mxu0 %v5483_v59 }
0x2369   :  { %5284 = vmatprep.subr.bf16.mxu0 %v5571_v1 }
0x236c   :  { %5285 = vmatpush3.bf16.msra.mxu0 %v5484_v9 }
0x236d   :  { %5286 = vmatprep.subr.bf16.mxu0 %v5571_v1 }
0x2370   :  { %5287 = vmatpush3.bf16.msra.mxu0 %v5485_v10 }
0x2436   :  { %v4049_v31 = vpop.f32.mrb[80].mxu0 }
0x2437   :  { %v4056_v14 = vadd.f32 %v4049_v31, %v6189_v55  ;;  %v5270_v33 = vpop.f32.mrb[81].mxu0 }
0x2438   :  { %v4052_v34 = vpop.f32.mrb[82].mxu0 }
0x2439   :  { %v4065_v36 = vadd.f32 %v4693_v17, %v4056_v14  ;;  %v4057_v37 = vadd.f32 %v4052_v34, %v6192_v58  ;;  %v5271_v39 = vpop.f32.mrb[83].mxu0  ;;  %v5481_v58 = vld [vmem:[%s4418_s28 + $0x8] sm:$0xff]  }
0x243b   :  { %v4066_v40 = vadd.f32 %v4693_v17, %v4057_v37  ;;  %v4067_v41 = vadd.f32 %v4065_v36, %v5986_v48 }
0x243d   :  { %v4071_v42 = vsel %vm283_vm5, %v4067_v41, 0.0  ;;  %v4068_v43 = vadd.f32 %v4066_v40, %v5988_v51  ;;  %v5480_v51 = vld [vmem:[%s4418_s28] sm:$0xff]  }
0x243e   :  { %4072 = vadd.xlane.f32.xlu1 %v4071_v42  ;;  %5273 = vmatpush3.bf16.msra.mxu1 %v5480_v51 }
0x243f   :  { %v4074_v44 = vsel %vm283_vm5, %v4068_v43, 0.0  ;;  %5274 = vmatprep.subr.bf16.mxu1 %v5571_v1 }
0x2440   :  { %4075 = vadd.xlane.f32.xlu0 %v4074_v44 }
0x2442   :  { %5275 = vmatpush3.bf16.msra.mxu1 %v5481_v58 }
0x2443   :  { %5292 = vmatprep.subr.bf16.mxu1 %v5571_v1 }
0x24cb   :  { %v4073_v45 = vpop.xlane.xlu1 %4072 }
0x24cc   :  { %v4077_v46 = vmul.f32 0.03125, %v4073_v45 }
0x24cd   :  { %v4076_v47 = vpop.xlane.xlu0 %4075 }
0x24ce   :  { %v4079_v49 = vsub.f32 %v4067_v41, %v4077_v46  ;;  %v4078_v50 = vmul.f32 0.03125, %v4076_v47  ;;  %v5486_v46 = vld [vmem:[%s4390_s22] sm:$0xff]   ;;  %v5487_v47 = vld [vmem:[%s4390_s22 + $0x8] sm:$0xff]  }
0x24d0   :  { %v4080_v52 = vsub.f32 %v4068_v43, %v4078_v50  ;;  %v4081_v55 = vmul.f32 %v4079_v49, %v4079_v49 }
0x24d2   :  { %v4083_v56 = vsel %vm283_vm5, %v4081_v55, 0.0  ;;  %v4082_v57 = vmul.f32 %v4080_v52, %v4080_v52 }
0x24d3   :  { %4084 = vadd.xlane.f32.xlu1 %v4083_v56 }
0x24d4   :  { %v4086_v48 = vsel %vm283_vm5, %v4082_v57, 0.0 }
0x24d5   :  { %4087 = vadd.xlane.f32.xlu0 %v4086_v48  ;;  %v4706_v48 = vld [vmem:[%s4422_s26] ss:$0 sm:$0xff] }
0x2560   :  { %v4085_v60 = vpop.xlane.xlu1 %4084 }
0x2561   :  { %v4089_v62 = vmul.f32 0.03125, %v4085_v60  ;;  %v4707_v60 = vld [vmem:[%s4423_s30] ss:$0 sm:$0xff] }
0x2562   :  { %v4088_v63 = vpop.xlane.xlu0 %4087 }
0x2563   :  { %v4091_v2 = vadd.f32 1e-05, %v4089_v62  ;;  %v4090_v3 = vmul.f32 0.03125, %v4088_v63 }
0x2565   :  { %5560 = vrsqrt.f32 %v4091_v2  ;;  %v4092_v61 = vadd.f32 1e-05, %v4090_v3 }
0x2567   :  { %5562 = vrsqrt.f32 %v4092_v61  ;;  %v4708_v61 = vld [vmem:[%s4391_s4] ss:$0 sm:$0xff] }
0x256f   :  { %v5561_v4 = vpop.eup %5560 }
0x2570   :  { %v4095_v38 = vmul.f32 %v5561_v4, %v4079_v49 }
0x2571   :  { %v5563_v5 = vpop.eup %5562 }
0x2572   :  { %v4103_v28 = vmul.f32 %v4694_v35, %v4095_v38  ;;  %v4096_v29 = vmul.f32 %v5563_v5, %v4080_v52 }
0x2574   :  { %v4104_v6 = vmul.f32 %v4694_v35, %v4096_v29  ;;  %v4111_v0 = vadd.f32 %v4695_v32, %v4103_v28 }
0x2576   :  { %v4112_v7 = vadd.f32 %v4695_v32, %v4104_v6 }
0x2578   :  { %v4113_v8 = vpack.c.bf16 %v4112_v7, %v4111_v0 }
0x257a   :  { %5277 = vmatmul.mubr.msk.bf16.vlgmr.msra.gmra.mrb[88].mxu1 %vm283_vm5, %v4113_v8 }
0x257b   :  { %5296 = vmatprep.mubr.msk.bf16.mxu1 %vm5573_vm0, %v5571_v1  ;;  %5293 = vmatpush3.bf16.msra.mxu1 %v5486_v46 }
0x257c   :  { %5294 = vmatprep.subr.bf16.mxu1 %v5571_v1 }
0x257f   :  { %5295 = vmatpush3.bf16.msra.mxu1 %v5487_v47 }
0x264d   :  { %v4174_v12 = vpop.f32.mrb[88].mxu1 }
0x264e   :  { %v4175_v13 = vadd.f32 %v4696_v11, %v4174_v12  ;;  %v5278_v15 = vpop.f32.mrb[89].mxu1 }
0x264f   :  { %v4177_v54 = vpop.f32.mrb[90].mxu1 }
0x2650   :  { %v4178_v53 = vadd.f32 %v4696_v11, %v4177_v54  ;;  %v5279_v18 = vpop.f32.mrb[91].mxu1  ;;  %v4181_v19 = vmax.f32 %v4175_v13, 0.0 }
0x2652   :  { %v4182_v20 = vmax.f32 %v4178_v53, 0.0 }
0x2654   :  { %v4183_v21 = vpack.c.bf16 %v4182_v20, %v4181_v19 }
0x2656   :  { %5289 = vmatmul.mubr.msk.bf16.vlgmr.msra.gmra.mrb[84].mxu0 %vm2198_vm10, %v4183_v21 }
0x2729   :  { %v4260_v23 = vpop.f32.mrb[84].mxu0 }
0x272a   :  { %v4261_v24 = vadd.f32 %v4700_v22, %v4260_v23  ;;  %v5290_v25 = vpop.f32.mrb[85].mxu0 }
0x272b   :  { %v4263_v26 = vpop.f32.mrb[86].mxu0 }
0x272c   :  { %v4264_v27 = vadd.f32 %v4700_v22, %v4263_v26  ;;  %v5291_v30 = vpop.f32.mrb[87].mxu0  ;;  %v4267_v31 = vadd.f32 %v4261_v24, %v4111_v0 }
0x272e   :  { %v4271_v17 = vsel %vm283_vm5, %v4267_v31, 0.0  ;;  %v4268_v14 = vadd.f32 %v4264_v27, %v4112_v7 }
0x272f   :  { %4272 = vadd.xlane.f32.xlu1 %v4271_v17 }
0x2730   :  { %v4274_v33 = vsel %vm283_vm5, %v4268_v14, 0.0 }
0x2731   :  { %4275 = vadd.xlane.f32.xlu0 %v4274_v33 }
0x27bc   :  { %v4273_v34 = vpop.xlane.xlu1 %4272 }
0x27bd   :  { %v4277_v36 = vmul.f32 0.03125, %v4273_v34 }
0x27be   :  { %v4276_v37 = vpop.xlane.xlu0 %4275 }
0x27bf   :  { %v4279_v39 = vsub.f32 %v4267_v31, %v4277_v36  ;;  %v4278_v40 = vmul.f32 0.03125, %v4276_v37 }
0x27c1   :  { %v4280_v41 = vsub.f32 %v4268_v14, %v4278_v40  ;;  %v4281_v42 = vmul.f32 %v4279_v39, %v4279_v39 }
0x27c3   :  { %v4283_v43 = vsel %vm283_vm5, %v4281_v42, 0.0  ;;  %v4282_v44 = vmul.f32 %v4280_v41, %v4280_v41 }
0x27c4   :  { %4284 = vadd.xlane.f32.xlu1 %v4283_v43 }
0x27c5   :  { %v4286_v45 = vsel %vm283_vm5, %v4282_v44, 0.0 }
0x27c6   :  { %4287 = vadd.xlane.f32.xlu0 %v4286_v45 }
0x2851   :  { %v4285_v49 = vpop.xlane.xlu1 %4284 }
0x2852   :  { %v4289_v50 = vmul.f32 0.03125, %v4285_v49 }
0x2853   :  { %v4288_v52 = vpop.xlane.xlu0 %4287 }
0x2854   :  { %v4291_v55 = vadd.f32 1e-05, %v4289_v50  ;;  %v4290_v56 = vmul.f32 0.03125, %v4288_v52 }
0x2856   :  { %5564 = vrsqrt.f32 %v4291_v55  ;;  %v4292_v57 = vadd.f32 1e-05, %v4290_v56 }
0x2858   :  { %5566 = vrsqrt.f32 %v4292_v57 }
0x2860   :  { %v5565_v1 = vpop.eup %5564 }
0x2861   :  { %v4295_v51 = vmul.f32 %v5565_v1, %v4279_v39 }
0x2862   :  { %v5567_v58 = vpop.eup %5566 }
0x2863   :  { %v4303_v16 = vmul.f32 %v4706_v48, %v4295_v51  ;;  %v4296_v59 = vmul.f32 %v5567_v58, %v4280_v41 }
0x2865   :  { %v4304_v62 = vmul.f32 %v4706_v48, %v4296_v59  ;;  %v4311_v63 = vadd.f32 %v4707_v60, %v4303_v16 }
0x2867   :  { %v4312_v2 = vadd.f32 %v4707_v60, %v4304_v62 }
0x2869   :  { %v4313_v3 = vpack.c.bf16 %v4312_v2, %v4311_v63 }
0x286b   :  { %5297 = vmatmul.mubr.msk.bf16.vlgmr.msra.gmra.mrb[92].mxu1 %vm283_vm5, %v4313_v3 }
0x293e   :  { %v4374_v4 = vpop.f32.mrb[92].mxu1 }
0x293f   :  { %v4375_v35 = vadd.f32 %v4708_v61, %v4374_v4  ;;  %v5298_v38 = vpop.f32.mrb[93].mxu1 }
0x2940   :  { %v4377_v5 = vpop.f32.mrb[94].mxu1 }
0x2941   :  { %4381 = vst [vmem:[%s4424_s8] sm:$0xff] %v4375_v35  ;;  %v4378_v28 = vadd.f32 %v4708_v61, %v4377_v5  ;;  %v5299_v29 = vpop.f32.mrb[95].mxu1 }
0x2943   :  { %4382 = vst [vmem:[%s4424_s8 + $0x8] sm:$0xff] %v4378_v28 }

</bundles_post_ra>
